<compile_context>
chip_gen: v7x
topology: tpu7x:2x2x1
jax: 0.10.0
libtpu: 0.0.40
codegen_flags: <defaults>
</compile_context>

<pallas_src>
import functools

import jax
import jax.numpy as jnp
from jax.experimental import pallas as pl
from jax.experimental.pallas import tpu as pltpu


def _sv_blur_subsample_kernel(phase_ref, ker_ref, out_ref, *,
                              l, scale, pdepth, tr, w_out_pad):
    """One (batch, output-row-tile) grid step.

    phase_ref: (1, scale*scale, C, tr+pdepth, W_ph)  haloed, phase-split image row slab
    ker_ref:   (1, l*l, tr, w_out_pad)  bf16 tap-major per-output-pixel blur kernels
    out_ref:   (1, C, tr, w_out_pad)    blurred + subsampled output tile
    """
    C = out_ref.shape[1]
    acc = jnp.zeros((C, tr, w_out_pad), jnp.float32)

    # Tap (p, q) of output pixel (i, j) reads
    #   padded[i*scale + p, j*scale + q]
    #     == phase[p%scale, q%scale][i + p//scale, j + q//scale].
    # Group taps by (phase plane, ph = p//scale): load one full-width slab and
    # reuse it for every qh column offset (static lane-offset slices -> the
    # shifts land on the XLU/vector-extended slot, not extra vld work).
    for rp in range(scale):
        for rq in range(scale):
            plane = rp * scale + rq
            for ph in range(pdepth + 1):
                p = ph * scale + rp
                if p >= l:
                    continue
                slab = phase_ref[0, plane, :, pl.ds(ph, tr), :].astype(jnp.float32)
                for qh in range(pdepth + 1):
                    q = qh * scale + rq
                    if q >= l:
                        continue
                    win = slab[:, :, qh:qh + w_out_pad]                  # (C, tr, w_out_pad)
                    ktap = ker_ref[0, p * l + q].astype(jnp.float32)     # (tr, w_out_pad)
                    acc = acc + win * ktap[None]

    out_ref[0] = acc.astype(out_ref.dtype)


def _pick_row_tile(h_out, c, w_lanes, batch):
    """Row tile: multiple of 8, capped so the f32 accumulator + live slab stay
    well under the 64-vreg budget, and never larger than the (8-padded) h_out."""
    budget = 12  # ~vregs allowed for the accumulator (total working set ~3x this)
    tr = 8 * max(1, min(8, budget // max(1, c * w_lanes)))   # 8..64, multiple of 8
    h_pad8 = -(-h_out // 8) * 8
    tr = min(tr, h_pad8)
    # Guarantee >=2 grid steps on some parallel axis (v7x megacore) when batch==1.
    while batch == 1 and tr > 8 and h_pad8 // tr < 2:
        tr //= 2
    return max(8, tr)


def sv_blur_subsample(slabs, kq, *, l, scale, pdepth, tr, n_tiles,
                      h_out_pad, w_out_pad, out_dtype):
    BT, SS, C, TRH, W_ph = slabs.shape
    B = BT // n_tiles
    L = l * l
    out_itemsize = jnp.dtype(out_dtype).itemsize

    # Per-step VMEM blocks (double-buffered by the pipeline) -> derived limit.
    phase_block = SS * C * TRH * W_ph * slabs.dtype.itemsize
    kq_block = L * tr * w_out_pad * kq.dtype.itemsize
    out_block = C * tr * w_out_pad * out_itemsize
    vmem_need = 3 * (phase_block + kq_block + out_block)
    vmem_limit = int(min(100 * 1024 * 1024, max(16 * 1024 * 1024, vmem_need)))

    bytes_accessed = (slabs.size * slabs.dtype.itemsize
                      + kq.size * kq.dtype.itemsize
                      + B * C * h_out_pad * w_out_pad * out_itemsize)
    cost = pl.CostEstimate(flops=2 * B * C * h_out_pad * w_out_pad * L,
                           transcendentals=0,
                           bytes_accessed=int(bytes_accessed))

    kernel_fn = functools.partial(
        _sv_blur_subsample_kernel,
        l=l, scale=scale, pdepth=pdepth, tr=tr, w_out_pad=w_out_pad)

    return pl.pallas_call(
        kernel_fn,
        out_shape=jax.ShapeDtypeStruct((B, C, h_out_pad, w_out_pad), out_dtype),
        grid=(B, n_tiles),
        in_specs=[
            # Haloed phase row slab for this (batch, row-tile) step.
            pl.BlockSpec((1, SS, C, TRH, W_ph),
                         lambda b, r: (b * n_tiles + r, 0, 0, 0, 0)),
            # bf16 tap-major per-pixel kernels (subsampled pixels only), row-tiled.
            pl.BlockSpec((1, L, tr, w_out_pad), lambda b, r: (b, 0, r, 0)),
        ],
        out_specs=pl.BlockSpec((1, C, tr, w_out_pad), lambda b, r: (b, 0, r, 0)),
        compiler_params=pltpu.CompilerParams(
            dimension_semantics=("parallel", "parallel"),
            vmem_limit_bytes=vmem_limit,
        ),
        cost_estimate=cost,
    )(slabs, kq)


def degradation_model(image, kernel, kernel_size=15, scale=4,
                      weights_dtype=jnp.bfloat16):
    """JAX/Pallas equivalent of DegradationModel.forward(image, kernel).

    image : (B, C, H, W) float32, NCHW
    kernel: (B, H*W, l, l) float32, spatially-variant per-pixel blur kernel
    returns (B, C, ceil(H/scale), ceil(W/scale))
    """
    B, C, H, W = image.shape
    l = kernel_size
    pad_lo = l // 2
    pad_hi = l // 2 if l % 2 == 1 else l // 2 - 1

    h_out = -(-H // scale)
    w_out = -(-W // scale)
    pdepth = -(-(l - 1) // scale)

    # Lane-dense width; row tile + row padding chosen per the vreg budget.
    w_out_pad = -(-w_out // 128) * 128
    tr = _pick_row_tile(h_out, C, w_out_pad // 128, B)
    h_out_pad = -(-h_out // tr) * tr
    n_tiles = h_out_pad // tr

    H_ph = h_out_pad + pdepth
    W_ph = w_out_pad + pdepth

    # Replication ("edge") padding, then zero-extend to scale*(H_ph, W_ph).
    # The extension is never read by any valid tap of a kept output pixel.
    padded = jnp.pad(
        image, ((0, 0), (0, 0), (pad_lo, pad_hi), (pad_lo, pad_hi)), mode="edge")
    extra_h = scale * H_ph - padded.shape[2]
    extra_w = scale * W_ph - padded.shape[3]
    padded = jnp.pad(padded, ((0, 0), (0, 0), (0, extra_h), (0, extra_w)))

    # Space-to-depth phase split:
    #   phases[b, rp*scale+rq, c, i, j] == padded[b, c, i*scale+rp, j*scale+rq]
    SS = scale * scale
    phases = (padded.reshape(B, C, H_ph, scale, W_ph, scale)
              .transpose(0, 3, 5, 1, 2, 4)
              .reshape(B, SS, C, H_ph, W_ph))

    # Haloed row slabs so each grid step only DMAs (SS, C, tr+pdepth, W_ph).
    slabs = jnp.concatenate(
        [phases[:, None, :, :, r * tr: r * tr + tr + pdepth, :]
         for r in range(n_tiles)], axis=1)
    slabs = slabs.reshape(B * n_tiles, SS, C, tr + pdepth, W_ph)

    # Per-pixel kernels: only the subsampled output pixels (1/scale^2 of the
    # dominant HBM tensor), tap-major, zero-padded to lane-dense width, bf16.
    L = l * l
    kq = kernel.reshape(B, H, W, L)[:, ::scale, ::scale, :]     # (B, h_out, w_out, L)
    kq = jnp.transpose(kq, (0, 3, 1, 2))                        # (B, L, h_out, w_out)
    kq = jnp.pad(kq, ((0, 0), (0, 0),
                      (0, h_out_pad - h_out), (0, w_out_pad - w_out)))
    kq = kq.astype(weights_dtype)

    out_pad = sv_blur_subsample(
        slabs, kq, l=l, scale=scale, pdepth=pdepth, tr=tr, n_tiles=n_tiles,
        h_out_pad=h_out_pad, w_out_pad=w_out_pad, out_dtype=image.dtype)
    return out_pad[:, :, :h_out, :w_out]


def _reference(image, kernel, kernel_size, scale):
    # Pure-JAX reference (full-res blur then slice) for correctness checking.
    B, C, H, W = image.shape
    l = kernel_size
    pad_lo = l // 2
    pad_hi = l // 2 if l % 2 == 1 else l // 2 - 1
    padded = jnp.pad(
        image, ((0, 0), (0, 0), (pad_lo, pad_hi), (pad_lo, pad_hi)), mode="edge")
    kflat = kernel.reshape(B, H, W, l * l)
    out = jnp.zeros((B, C, H, W), jnp.float32)
    for p in range(l):
        for q in range(l):
            out = out + padded[:, :, p:p + H, q:q + W] * kflat[:, :, :, p * l + q][:, None]
    return out[:, :, 0::scale, 0::scale]


if __name__ == "__main__":
    # Small shapes consistent with the module's spatially-variant degradation path.
    B, C, H, W = 2, 3, 16, 16
    kernel_size, scale = 7, 2

    key = jax.random.PRNGKey(0)
    k_img, k_ker = jax.random.split(key)
    image = jax.random.normal(k_img, (B, C, H, W), dtype=jnp.float32)
    # Deterministic per-pixel blur kernels, normalized to sum to 1 per pixel.
    raw = jnp.abs(
        jax.random.normal(k_ker, (B, H * W, kernel_size, kernel_size), dtype=jnp.float32))
    kernel = raw / jnp.sum(raw, axis=(-2, -1), keepdims=True)

    out = degradation_model(image, kernel, kernel_size=kernel_size, scale=scale)
    out = jax.block_until_ready(out)

    # Reference uses the same bf16-rounded weights (math stays f32), so only the
    # f32 accumulation order differs.
    ref_w = kernel.astype(jnp.bfloat16).astype(jnp.float32)
    ref = _reference(image, ref_w, kernel_size, scale)

    assert out.shape == (B, C, H // scale, W // scale), out.shape
    assert jnp.allclose(out, ref, atol=1e-4, rtol=1e-4), "mismatch vs reference"

    print("KERNEL_OK")
</pallas_src>

<mosaic_0001>
module attributes {stable_mosaic.version = 11 : i64} {
  func.func @_sv_blur_subsample_kernel(%arg0: i32, %arg1: i32, %arg2: memref<1x4x3x11x131xf32, #tpu.memory_space<vmem>>, %arg3: memref<1x49x8x128xbf16, #tpu.memory_space<vmem>>, %arg4: memref<1x3x8x128xf32, #tpu.memory_space<vmem>>) attributes {dimension_semantics = [#tpu.dimension_semantics<parallel>, #tpu.dimension_semantics<parallel>], iteration_bounds = array<i64: 2, 1>, scalar_prefetch = 0 : i64, scratch_operands = 0 : i64, tpu.core_type = #tpu.core_type<tc>, window_params = [{transform_indices = @transform_0, window_bounds = array<i64: 1, 4, 3, 11, 131>}, {transform_indices = @transform_1, window_bounds = array<i64: 1, 49, 8, 128>}, {transform_indices = @transform_2, window_bounds = array<i64: 1, 3, 8, 128>}]} {
    %cst = arith.constant 0.000000e+00 : f32
    %0 = vector.broadcast %cst : f32 to vector<3x8x128xf32>
    %c0 = arith.constant 0 : index
    %c0_0 = arith.constant 0 : index
    %c0_1 = arith.constant 0 : index
    %c0_2 = arith.constant 0 : index
    %c0_3 = arith.constant 0 : index
    %1 = vector.load %arg2[%c0, %c0_0, %c0_1, %c0_2, %c0_3] : memref<1x4x3x11x131xf32, #tpu.memory_space<vmem>>, vector<1x1x3x8x131xf32>
    %2 = vector.shape_cast %1 : vector<1x1x3x8x131xf32> to vector<3x8x131xf32>
    %3 = vector.extract_strided_slice %2 {offsets = [0, 0, 0], sizes = [3, 8, 128], strides = [1, 1, 1]} : vector<3x8x131xf32> to vector<3x8x128xf32>
    %c0_4 = arith.constant 0 : index
    %c0_5 = arith.constant 0 : index
    %c0_6 = arith.constant 0 : index
    %c0_7 = arith.constant 0 : index
    %4 = vector.load %arg3[%c0_4, %c0_5, %c0_6, %c0_7] : memref<1x49x8x128xbf16, #tpu.memory_space<vmem>>, vector<1x1x8x128xbf16>
    %5 = vector.shape_cast %4 : vector<1x1x8x128xbf16> to vector<8x128xbf16>
    %6 = arith.extf %5 : vector<8x128xbf16> to vector<8x128xf32>
    %7 = vector.shape_cast %6 : vector<8x128xf32> to vector<1x8x128xf32>
    %8 = vector.broadcast %7 : vector<1x8x128xf32> to vector<3x8x128xf32>
    %9 = arith.mulf %3, %8 : vector<3x8x128xf32>
    %10 = arith.addf %0, %9 : vector<3x8x128xf32>
    %11 = vector.extract_strided_slice %2 {offsets = [0, 0, 1], sizes = [3, 8, 128], strides = [1, 1, 1]} : vector<3x8x131xf32> to vector<3x8x128xf32>
    %c0_8 = arith.constant 0 : index
    %c2 = arith.constant 2 : index
    %c0_9 = arith.constant 0 : index
    %c0_10 = arith.constant 0 : index
    %12 = vector.load %arg3[%c0_8, %c2, %c0_9, %c0_10] : memref<1x49x8x128xbf16, #tpu.memory_space<vmem>>, vector<1x1x8x128xbf16>
    %13 = vector.shape_cast %12 : vector<1x1x8x128xbf16> to vector<8x128xbf16>
    %14 = arith.extf %13 : vector<8x128xbf16> to vector<8x128xf32>
    %15 = vector.shape_cast %14 : vector<8x128xf32> to vector<1x8x128xf32>
    %16 = vector.broadcast %15 : vector<1x8x128xf32> to vector<3x8x128xf32>
    %17 = arith.mulf %11, %16 : vector<3x8x128xf32>
    %18 = arith.addf %10, %17 : vector<3x8x128xf32>
    %19 = vector.extract_strided_slice %2 {offsets = [0, 0, 2], sizes = [3, 8, 128], strides = [1, 1, 1]} : vector<3x8x131xf32> to vector<3x8x128xf32>
    %c0_11 = arith.constant 0 : index
    %c4 = arith.constant 4 : index
    %c0_12 = arith.constant 0 : index
    %c0_13 = arith.constant 0 : index
    %20 = vector.load %arg3[%c0_11, %c4, %c0_12, %c0_13] : memref<1x49x8x128xbf16, #tpu.memory_space<vmem>>, vector<1x1x8x128xbf16>
    %21 = vector.shape_cast %20 : vector<1x1x8x128xbf16> to vector<8x128xbf16>
    %22 = arith.extf %21 : vector<8x128xbf16> to vector<8x128xf32>
    %23 = vector.shape_cast %22 : vector<8x128xf32> to vector<1x8x128xf32>
    %24 = vector.broadcast %23 : vector<1x8x128xf32> to vector<3x8x128xf32>
    %25 = arith.mulf %19, %24 : vector<3x8x128xf32>
    %26 = arith.addf %18, %25 : vector<3x8x128xf32>
    %27 = vector.extract_strided_slice %2 {offsets = [0, 0, 3], sizes = [3, 8, 128], strides = [1, 1, 1]} : vector<3x8x131xf32> to vector<3x8x128xf32>
    %c0_14 = arith.constant 0 : index
    %c6 = arith.constant 6 : index
    %c0_15 = arith.constant 0 : index
    %c0_16 = arith.constant 0 : index
    %28 = vector.load %arg3[%c0_14, %c6, %c0_15, %c0_16] : memref<1x49x8x128xbf16, #tpu.memory_space<vmem>>, vector<1x1x8x128xbf16>
    %29 = vector.shape_cast %28 : vector<1x1x8x128xbf16> to vector<8x128xbf16>
    %30 = arith.extf %29 : vector<8x128xbf16> to vector<8x128xf32>
    %31 = vector.shape_cast %30 : vector<8x128xf32> to vector<1x8x128xf32>
    %32 = vector.broadcast %31 : vector<1x8x128xf32> to vector<3x8x128xf32>
    %33 = arith.mulf %27, %32 : vector<3x8x128xf32>
    %34 = arith.addf %26, %33 : vector<3x8x128xf32>
    %c0_17 = arith.constant 0 : index
    %c0_18 = arith.constant 0 : index
    %c0_19 = arith.constant 0 : index
    %c1 = arith.constant 1 : index
    %c0_20 = arith.constant 0 : index
    %35 = vector.load %arg2[%c0_17, %c0_18, %c0_19, %c1, %c0_20] : memref<1x4x3x11x131xf32, #tpu.memory_space<vmem>>, vector<1x1x3x8x131xf32>
    %36 = vector.shape_cast %35 : vector<1x1x3x8x131xf32> to vector<3x8x131xf32>
    %37 = vector.extract_strided_slice %36 {offsets = [0, 0, 0], sizes = [3, 8, 128], strides = [1, 1, 1]} : vector<3x8x131xf32> to vector<3x8x128xf32>
    %c0_21 = arith.constant 0 : index
    %c14 = arith.constant 14 : index
    %c0_22 = arith.constant 0 : index
    %c0_23 = arith.constant 0 : index
    %38 = vector.load %arg3[%c0_21, %c14, %c0_22, %c0_23] : memref<1x49x8x128xbf16, #tpu.memory_space<vmem>>, vector<1x1x8x128xbf16>
    %39 = vector.shape_cast %38 : vector<1x1x8x128xbf16> to vector<8x128xbf16>
    %40 = arith.extf %39 : vector<8x128xbf16> to vector<8x128xf32>
    %41 = vector.shape_cast %40 : vector<8x128xf32> to vector<1x8x128xf32>
    %42 = vector.broadcast %41 : vector<1x8x128xf32> to vector<3x8x128xf32>
    %43 = arith.mulf %37, %42 : vector<3x8x128xf32>
    %44 = arith.addf %34, %43 : vector<3x8x128xf32>
    %45 = vector.extract_strided_slice %36 {offsets = [0, 0, 1], sizes = [3, 8, 128], strides = [1, 1, 1]} : vector<3x8x131xf32> to vector<3x8x128xf32>
    %c0_24 = arith.constant 0 : index
    %c16 = arith.constant 16 : index
    %c0_25 = arith.constant 0 : index
    %c0_26 = arith.constant 0 : index
    %46 = vector.load %arg3[%c0_24, %c16, %c0_25, %c0_26] : memref<1x49x8x128xbf16, #tpu.memory_space<vmem>>, vector<1x1x8x128xbf16>
    %47 = vector.shape_cast %46 : vector<1x1x8x128xbf16> to vector<8x128xbf16>
    %48 = arith.extf %47 : vector<8x128xbf16> to vector<8x128xf32>
    %49 = vector.shape_cast %48 : vector<8x128xf32> to vector<1x8x128xf32>
    %50 = vector.broadcast %49 : vector<1x8x128xf32> to vector<3x8x128xf32>
    %51 = arith.mulf %45, %50 : vector<3x8x128xf32>
    %52 = arith.addf %44, %51 : vector<3x8x128xf32>
    %53 = vector.extract_strided_slice %36 {offsets = [0, 0, 2], sizes = [3, 8, 128], strides = [1, 1, 1]} : vector<3x8x131xf32> to vector<3x8x128xf32>
    %c0_27 = arith.constant 0 : index
    %c18 = arith.constant 18 : index
    %c0_28 = arith.constant 0 : index
    %c0_29 = arith.constant 0 : index
    %54 = vector.load %arg3[%c0_27, %c18, %c0_28, %c0_29] : memref<1x49x8x128xbf16, #tpu.memory_space<vmem>>, vector<1x1x8x128xbf16>
    %55 = vector.shape_cast %54 : vector<1x1x8x128xbf16> to vector<8x128xbf16>
    %56 = arith.extf %55 : vector<8x128xbf16> to vector<8x128xf32>
    %57 = vector.shape_cast %56 : vector<8x128xf32> to vector<1x8x128xf32>
    %58 = vector.broadcast %57 : vector<1x8x128xf32> to vector<3x8x128xf32>
    %59 = arith.mulf %53, %58 : vector<3x8x128xf32>
    %60 = arith.addf %52, %59 : vector<3x8x128xf32>
    %61 = vector.extract_strided_slice %36 {offsets = [0, 0, 3], sizes = [3, 8, 128], strides = [1, 1, 1]} : vector<3x8x131xf32> to vector<3x8x128xf32>
    %c0_30 = arith.constant 0 : index
    %c20 = arith.constant 20 : index
    %c0_31 = arith.constant 0 : index
    %c0_32 = arith.constant 0 : index
    %62 = vector.load %arg3[%c0_30, %c20, %c0_31, %c0_32] : memref<1x49x8x128xbf16, #tpu.memory_space<vmem>>, vector<1x1x8x128xbf16>
    %63 = vector.shape_cast %62 : vector<1x1x8x128xbf16> to vector<8x128xbf16>
    %64 = arith.extf %63 : vector<8x128xbf16> to vector<8x128xf32>
    %65 = vector.shape_cast %64 : vector<8x128xf32> to vector<1x8x128xf32>
    %66 = vector.broadcast %65 : vector<1x8x128xf32> to vector<3x8x128xf32>
    %67 = arith.mulf %61, %66 : vector<3x8x128xf32>
    %68 = arith.addf %60, %67 : vector<3x8x128xf32>
    %c0_33 = arith.constant 0 : index
    %c0_34 = arith.constant 0 : index
    %c0_35 = arith.constant 0 : index
    %c2_36 = arith.constant 2 : index
    %c0_37 = arith.constant 0 : index
    %69 = vector.load %arg2[%c0_33, %c0_34, %c0_35, %c2_36, %c0_37] : memref<1x4x3x11x131xf32, #tpu.memory_space<vmem>>, vector<1x1x3x8x131xf32>
    %70 = vector.shape_cast %69 : vector<1x1x3x8x131xf32> to vector<3x8x131xf32>
    %71 = vector.extract_strided_slice %70 {offsets = [0, 0, 0], sizes = [3, 8, 128], strides = [1, 1, 1]} : vector<3x8x131xf32> to vector<3x8x128xf32>
    %c0_38 = arith.constant 0 : index
    %c28 = arith.constant 28 : index
    %c0_39 = arith.constant 0 : index
    %c0_40 = arith.constant 0 : index
    %72 = vector.load %arg3[%c0_38, %c28, %c0_39, %c0_40] : memref<1x49x8x128xbf16, #tpu.memory_space<vmem>>, vector<1x1x8x128xbf16>
    %73 = vector.shape_cast %72 : vector<1x1x8x128xbf16> to vector<8x128xbf16>
    %74 = arith.extf %73 : vector<8x128xbf16> to vector<8x128xf32>
    %75 = vector.shape_cast %74 : vector<8x128xf32> to vector<1x8x128xf32>
    %76 = vector.broadcast %75 : vector<1x8x128xf32> to vector<3x8x128xf32>
    %77 = arith.mulf %71, %76 : vector<3x8x128xf32>
    %78 = arith.addf %68, %77 : vector<3x8x128xf32>
    %79 = vector.extract_strided_slice %70 {offsets = [0, 0, 1], sizes = [3, 8, 128], strides = [1, 1, 1]} : vector<3x8x131xf32> to vector<3x8x128xf32>
    %c0_41 = arith.constant 0 : index
    %c30 = arith.constant 30 : index
    %c0_42 = arith.constant 0 : index
    %c0_43 = arith.constant 0 : index
    %80 = vector.load %arg3[%c0_41, %c30, %c0_42, %c0_43] : memref<1x49x8x128xbf16, #tpu.memory_space<vmem>>, vector<1x1x8x128xbf16>
    %81 = vector.shape_cast %80 : vector<1x1x8x128xbf16> to vector<8x128xbf16>
    %82 = arith.extf %81 : vector<8x128xbf16> to vector<8x128xf32>
    %83 = vector.shape_cast %82 : vector<8x128xf32> to vector<1x8x128xf32>
    %84 = vector.broadcast %83 : vector<1x8x128xf32> to vector<3x8x128xf32>
    %85 = arith.mulf %79, %84 : vector<3x8x128xf32>
    %86 = arith.addf %78, %85 : vector<3x8x128xf32>
    %87 = vector.extract_strided_slice %70 {offsets = [0, 0, 2], sizes = [3, 8, 128], strides = [1, 1, 1]} : vector<3x8x131xf32> to vector<3x8x128xf32>
    %c0_44 = arith.constant 0 : index
    %c32 = arith.constant 32 : index
    %c0_45 = arith.constant 0 : index
    %c0_46 = arith.constant 0 : index
    %88 = vector.load %arg3[%c0_44, %c32, %c0_45, %c0_46] : memref<1x49x8x128xbf16, #tpu.memory_space<vmem>>, vector<1x1x8x128xbf16>
    %89 = vector.shape_cast %88 : vector<1x1x8x128xbf16> to vector<8x128xbf16>
    %90 = arith.extf %89 : vector<8x128xbf16> to vector<8x128xf32>
    %91 = vector.shape_cast %90 : vector<8x128xf32> to vector<1x8x128xf32>
    %92 = vector.broadcast %91 : vector<1x8x128xf32> to vector<3x8x128xf32>
    %93 = arith.mulf %87, %92 : vector<3x8x128xf32>
    %94 = arith.addf %86, %93 : vector<3x8x128xf32>
    %95 = vector.extract_strided_slice %70 {offsets = [0, 0, 3], sizes = [3, 8, 128], strides = [1, 1, 1]} : vector<3x8x131xf32> to vector<3x8x128xf32>
    %c0_47 = arith.constant 0 : index
    %c34 = arith.constant 34 : index
    %c0_48 = arith.constant 0 : index
    %c0_49 = arith.constant 0 : index
    %96 = vector.load %arg3[%c0_47, %c34, %c0_48, %c0_49] : memref<1x49x8x128xbf16, #tpu.memory_space<vmem>>, vector<1x1x8x128xbf16>
    %97 = vector.shape_cast %96 : vector<1x1x8x128xbf16> to vector<8x128xbf16>
    %98 = arith.extf %97 : vector<8x128xbf16> to vector<8x128xf32>
    %99 = vector.shape_cast %98 : vector<8x128xf32> to vector<1x8x128xf32>
    %100 = vector.broadcast %99 : vector<1x8x128xf32> to vector<3x8x128xf32>
    %101 = arith.mulf %95, %100 : vector<3x8x128xf32>
    %102 = arith.addf %94, %101 : vector<3x8x128xf32>
    %c0_50 = arith.constant 0 : index
    %c0_51 = arith.constant 0 : index
    %c0_52 = arith.constant 0 : index
    %c3 = arith.constant 3 : index
    %c0_53 = arith.constant 0 : index
    %103 = vector.load %arg2[%c0_50, %c0_51, %c0_52, %c3, %c0_53] : memref<1x4x3x11x131xf32, #tpu.memory_space<vmem>>, vector<1x1x3x8x131xf32>
    %104 = vector.shape_cast %103 : vector<1x1x3x8x131xf32> to vector<3x8x131xf32>
    %105 = vector.extract_strided_slice %104 {offsets = [0, 0, 0], sizes = [3, 8, 128], strides = [1, 1, 1]} : vector<3x8x131xf32> to vector<3x8x128xf32>
    %c0_54 = arith.constant 0 : index
    %c42 = arith.constant 42 : index
    %c0_55 = arith.constant 0 : index
    %c0_56 = arith.constant 0 : index
    %106 = vector.load %arg3[%c0_54, %c42, %c0_55, %c0_56] : memref<1x49x8x128xbf16, #tpu.memory_space<vmem>>, vector<1x1x8x128xbf16>
    %107 = vector.shape_cast %106 : vector<1x1x8x128xbf16> to vector<8x128xbf16>
    %108 = arith.extf %107 : vector<8x128xbf16> to vector<8x128xf32>
    %109 = vector.shape_cast %108 : vector<8x128xf32> to vector<1x8x128xf32>
    %110 = vector.broadcast %109 : vector<1x8x128xf32> to vector<3x8x128xf32>
    %111 = arith.mulf %105, %110 : vector<3x8x128xf32>
    %112 = arith.addf %102, %111 : vector<3x8x128xf32>
    %113 = vector.extract_strided_slice %104 {offsets = [0, 0, 1], sizes = [3, 8, 128], strides = [1, 1, 1]} : vector<3x8x131xf32> to vector<3x8x128xf32>
    %c0_57 = arith.constant 0 : index
    %c44 = arith.constant 44 : index
    %c0_58 = arith.constant 0 : index
    %c0_59 = arith.constant 0 : index
    %114 = vector.load %arg3[%c0_57, %c44, %c0_58, %c0_59] : memref<1x49x8x128xbf16, #tpu.memory_space<vmem>>, vector<1x1x8x128xbf16>
    %115 = vector.shape_cast %114 : vector<1x1x8x128xbf16> to vector<8x128xbf16>
    %116 = arith.extf %115 : vector<8x128xbf16> to vector<8x128xf32>
    %117 = vector.shape_cast %116 : vector<8x128xf32> to vector<1x8x128xf32>
    %118 = vector.broadcast %117 : vector<1x8x128xf32> to vector<3x8x128xf32>
    %119 = arith.mulf %113, %118 : vector<3x8x128xf32>
    %120 = arith.addf %112, %119 : vector<3x8x128xf32>
    %121 = vector.extract_strided_slice %104 {offsets = [0, 0, 2], sizes = [3, 8, 128], strides = [1, 1, 1]} : vector<3x8x131xf32> to vector<3x8x128xf32>
    %c0_60 = arith.constant 0 : index
    %c46 = arith.constant 46 : index
    %c0_61 = arith.constant 0 : index
    %c0_62 = arith.constant 0 : index
    %122 = vector.load %arg3[%c0_60, %c46, %c0_61, %c0_62] : memref<1x49x8x128xbf16, #tpu.memory_space<vmem>>, vector<1x1x8x128xbf16>
    %123 = vector.shape_cast %122 : vector<1x1x8x128xbf16> to vector<8x128xbf16>
    %124 = arith.extf %123 : vector<8x128xbf16> to vector<8x128xf32>
    %125 = vector.shape_cast %124 : vector<8x128xf32> to vector<1x8x128xf32>
    %126 = vector.broadcast %125 : vector<1x8x128xf32> to vector<3x8x128xf32>
    %127 = arith.mulf %121, %126 : vector<3x8x128xf32>
    %128 = arith.addf %120, %127 : vector<3x8x128xf32>
    %129 = vector.extract_strided_slice %104 {offsets = [0, 0, 3], sizes = [3, 8, 128], strides = [1, 1, 1]} : vector<3x8x131xf32> to vector<3x8x128xf32>
    %c0_63 = arith.constant 0 : index
    %c48 = arith.constant 48 : index
    %c0_64 = arith.constant 0 : index
    %c0_65 = arith.constant 0 : index
    %130 = vector.load %arg3[%c0_63, %c48, %c0_64, %c0_65] : memref<1x49x8x128xbf16, #tpu.memory_space<vmem>>, vector<1x1x8x128xbf16>
    %131 = vector.shape_cast %130 : vector<1x1x8x128xbf16> to vector<8x128xbf16>
    %132 = arith.extf %131 : vector<8x128xbf16> to vector<8x128xf32>
    %133 = vector.shape_cast %132 : vector<8x128xf32> to vector<1x8x128xf32>
    %134 = vector.broadcast %133 : vector<1x8x128xf32> to vector<3x8x128xf32>
    %135 = arith.mulf %129, %134 : vector<3x8x128xf32>
    %136 = arith.addf %128, %135 : vector<3x8x128xf32>
    %c0_66 = arith.constant 0 : index
    %c1_67 = arith.constant 1 : index
    %c0_68 = arith.constant 0 : index
    %c0_69 = arith.constant 0 : index
    %c0_70 = arith.constant 0 : index
    %137 = vector.load %arg2[%c0_66, %c1_67, %c0_68, %c0_69, %c0_70] : memref<1x4x3x11x131xf32, #tpu.memory_space<vmem>>, vector<1x1x3x8x131xf32>
    %138 = vector.shape_cast %137 : vector<1x1x3x8x131xf32> to vector<3x8x131xf32>
    %139 = vector.extract_strided_slice %138 {offsets = [0, 0, 0], sizes = [3, 8, 128], strides = [1, 1, 1]} : vector<3x8x131xf32> to vector<3x8x128xf32>
    %c0_71 = arith.constant 0 : index
    %c1_72 = arith.constant 1 : index
    %c0_73 = arith.constant 0 : index
    %c0_74 = arith.constant 0 : index
    %140 = vector.load %arg3[%c0_71, %c1_72, %c0_73, %c0_74] : memref<1x49x8x128xbf16, #tpu.memory_space<vmem>>, vector<1x1x8x128xbf16>
    %141 = vector.shape_cast %140 : vector<1x1x8x128xbf16> to vector<8x128xbf16>
    %142 = arith.extf %141 : vector<8x128xbf16> to vector<8x128xf32>
    %143 = vector.shape_cast %142 : vector<8x128xf32> to vector<1x8x128xf32>
    %144 = vector.broadcast %143 : vector<1x8x128xf32> to vector<3x8x128xf32>
    %145 = arith.mulf %139, %144 : vector<3x8x128xf32>
    %146 = arith.addf %136, %145 : vector<3x8x128xf32>
    %147 = vector.extract_strided_slice %138 {offsets = [0, 0, 1], sizes = [3, 8, 128], strides = [1, 1, 1]} : vector<3x8x131xf32> to vector<3x8x128xf32>
    %c0_75 = arith.constant 0 : index
    %c3_76 = arith.constant 3 : index
    %c0_77 = arith.constant 0 : index
    %c0_78 = arith.constant 0 : index
    %148 = vector.load %arg3[%c0_75, %c3_76, %c0_77, %c0_78] : memref<1x49x8x128xbf16, #tpu.memory_space<vmem>>, vector<1x1x8x128xbf16>
    %149 = vector.shape_cast %148 : vector<1x1x8x128xbf16> to vector<8x128xbf16>
    %150 = arith.extf %149 : vector<8x128xbf16> to vector<8x128xf32>
    %151 = vector.shape_cast %150 : vector<8x128xf32> to vector<1x8x128xf32>
    %152 = vector.broadcast %151 : vector<1x8x128xf32> to vector<3x8x128xf32>
    %153 = arith.mulf %147, %152 : vector<3x8x128xf32>
    %154 = arith.addf %146, %153 : vector<3x8x128xf32>
    %155 = vector.extract_strided_slice %138 {offsets = [0, 0, 2], sizes = [3, 8, 128], strides = [1, 1, 1]} : vector<3x8x131xf32> to vector<3x8x128xf32>
    %c0_79 = arith.constant 0 : index
    %c5 = arith.constant 5 : index
    %c0_80 = arith.constant 0 : index
    %c0_81 = arith.constant 0 : index
    %156 = vector.load %arg3[%c0_79, %c5, %c0_80, %c0_81] : memref<1x49x8x128xbf16, #tpu.memory_space<vmem>>, vector<1x1x8x128xbf16>
    %157 = vector.shape_cast %156 : vector<1x1x8x128xbf16> to vector<8x128xbf16>
    %158 = arith.extf %157 : vector<8x128xbf16> to vector<8x128xf32>
    %159 = vector.shape_cast %158 : vector<8x128xf32> to vector<1x8x128xf32>
    %160 = vector.broadcast %159 : vector<1x8x128xf32> to vector<3x8x128xf32>
    %161 = arith.mulf %155, %160 : vector<3x8x128xf32>
    %162 = arith.addf %154, %161 : vector<3x8x128xf32>
    %c0_82 = arith.constant 0 : index
    %c1_83 = arith.constant 1 : index
    %c0_84 = arith.constant 0 : index
    %c1_85 = arith.constant 1 : index
    %c0_86 = arith.constant 0 : index
    %163 = vector.load %arg2[%c0_82, %c1_83, %c0_84, %c1_85, %c0_86] : memref<1x4x3x11x131xf32, #tpu.memory_space<vmem>>, vector<1x1x3x8x131xf32>
    %164 = vector.shape_cast %163 : vector<1x1x3x8x131xf32> to vector<3x8x131xf32>
    %165 = vector.extract_strided_slice %164 {offsets = [0, 0, 0], sizes = [3, 8, 128], strides = [1, 1, 1]} : vector<3x8x131xf32> to vector<3x8x128xf32>
    %c0_87 = arith.constant 0 : index
    %c15 = arith.constant 15 : index
    %c0_88 = arith.constant 0 : index
    %c0_89 = arith.constant 0 : index
    %166 = vector.load %arg3[%c0_87, %c15, %c0_88, %c0_89] : memref<1x49x8x128xbf16, #tpu.memory_space<vmem>>, vector<1x1x8x128xbf16>
    %167 = vector.shape_cast %166 : vector<1x1x8x128xbf16> to vector<8x128xbf16>
    %168 = arith.extf %167 : vector<8x128xbf16> to vector<8x128xf32>
    %169 = vector.shape_cast %168 : vector<8x128xf32> to vector<1x8x128xf32>
    %170 = vector.broadcast %169 : vector<1x8x128xf32> to vector<3x8x128xf32>
    %171 = arith.mulf %165, %170 : vector<3x8x128xf32>
    %172 = arith.addf %162, %171 : vector<3x8x128xf32>
    %173 = vector.extract_strided_slice %164 {offsets = [0, 0, 1], sizes = [3, 8, 128], strides = [1, 1, 1]} : vector<3x8x131xf32> to vector<3x8x128xf32>
    %c0_90 = arith.constant 0 : index
    %c17 = arith.constant 17 : index
    %c0_91 = arith.constant 0 : index
    %c0_92 = arith.constant 0 : index
    %174 = vector.load %arg3[%c0_90, %c17, %c0_91, %c0_92] : memref<1x49x8x128xbf16, #tpu.memory_space<vmem>>, vector<1x1x8x128xbf16>
    %175 = vector.shape_cast %174 : vector<1x1x8x128xbf16> to vector<8x128xbf16>
    %176 = arith.extf %175 : vector<8x128xbf16> to vector<8x128xf32>
    %177 = vector.shape_cast %176 : vector<8x128xf32> to vector<1x8x128xf32>
    %178 = vector.broadcast %177 : vector<1x8x128xf32> to vector<3x8x128xf32>
    %179 = arith.mulf %173, %178 : vector<3x8x128xf32>
    %180 = arith.addf %172, %179 : vector<3x8x128xf32>
    %181 = vector.extract_strided_slice %164 {offsets = [0, 0, 2], sizes = [3, 8, 128], strides = [1, 1, 1]} : vector<3x8x131xf32> to vector<3x8x128xf32>
    %c0_93 = arith.constant 0 : index
    %c19 = arith.constant 19 : index
    %c0_94 = arith.constant 0 : index
    %c0_95 = arith.constant 0 : index
    %182 = vector.load %arg3[%c0_93, %c19, %c0_94, %c0_95] : memref<1x49x8x128xbf16, #tpu.memory_space<vmem>>, vector<1x1x8x128xbf16>
    %183 = vector.shape_cast %182 : vector<1x1x8x128xbf16> to vector<8x128xbf16>
    %184 = arith.extf %183 : vector<8x128xbf16> to vector<8x128xf32>
    %185 = vector.shape_cast %184 : vector<8x128xf32> to vector<1x8x128xf32>
    %186 = vector.broadcast %185 : vector<1x8x128xf32> to vector<3x8x128xf32>
    %187 = arith.mulf %181, %186 : vector<3x8x128xf32>
    %188 = arith.addf %180, %187 : vector<3x8x128xf32>
    %c0_96 = arith.constant 0 : index
    %c1_97 = arith.constant 1 : index
    %c0_98 = arith.constant 0 : index
    %c2_99 = arith.constant 2 : index
    %c0_100 = arith.constant 0 : index
    %189 = vector.load %arg2[%c0_96, %c1_97, %c0_98, %c2_99, %c0_100] : memref<1x4x3x11x131xf32, #tpu.memory_space<vmem>>, vector<1x1x3x8x131xf32>
    %190 = vector.shape_cast %189 : vector<1x1x3x8x131xf32> to vector<3x8x131xf32>
    %191 = vector.extract_strided_slice %190 {offsets = [0, 0, 0], sizes = [3, 8, 128], strides = [1, 1, 1]} : vector<3x8x131xf32> to vector<3x8x128xf32>
    %c0_101 = arith.constant 0 : index
    %c29 = arith.constant 29 : index
    %c0_102 = arith.constant 0 : index
    %c0_103 = arith.constant 0 : index
    %192 = vector.load %arg3[%c0_101, %c29, %c0_102, %c0_103] : memref<1x49x8x128xbf16, #tpu.memory_space<vmem>>, vector<1x1x8x128xbf16>
    %193 = vector.shape_cast %192 : vector<1x1x8x128xbf16> to vector<8x128xbf16>
    %194 = arith.extf %193 : vector<8x128xbf16> to vector<8x128xf32>
    %195 = vector.shape_cast %194 : vector<8x128xf32> to vector<1x8x128xf32>
    %196 = vector.broadcast %195 : vector<1x8x128xf32> to vector<3x8x128xf32>
    %197 = arith.mulf %191, %196 : vector<3x8x128xf32>
    %198 = arith.addf %188, %197 : vector<3x8x128xf32>
    %199 = vector.extract_strided_slice %190 {offsets = [0, 0, 1], sizes = [3, 8, 128], strides = [1, 1, 1]} : vector<3x8x131xf32> to vector<3x8x128xf32>
    %c0_104 = arith.constant 0 : index
    %c31 = arith.constant 31 : index
    %c0_105 = arith.constant 0 : index
    %c0_106 = arith.constant 0 : index
    %200 = vector.load %arg3[%c0_104, %c31, %c0_105, %c0_106] : memref<1x49x8x128xbf16, #tpu.memory_space<vmem>>, vector<1x1x8x128xbf16>
    %201 = vector.shape_cast %200 : vector<1x1x8x128xbf16> to vector<8x128xbf16>
    %202 = arith.extf %201 : vector<8x128xbf16> to vector<8x128xf32>
    %203 = vector.shape_cast %202 : vector<8x128xf32> to vector<1x8x128xf32>
    %204 = vector.broadcast %203 : vector<1x8x128xf32> to vector<3x8x128xf32>
    %205 = arith.mulf %199, %204 : vector<3x8x128xf32>
    %206 = arith.addf %198, %205 : vector<3x8x128xf32>
    %207 = vector.extract_strided_slice %190 {offsets = [0, 0, 2], sizes = [3, 8, 128], strides = [1, 1, 1]} : vector<3x8x131xf32> to vector<3x8x128xf32>
    %c0_107 = arith.constant 0 : index
    %c33 = arith.constant 33 : index
    %c0_108 = arith.constant 0 : index
    %c0_109 = arith.constant 0 : index
    %208 = vector.load %arg3[%c0_107, %c33, %c0_108, %c0_109] : memref<1x49x8x128xbf16, #tpu.memory_space<vmem>>, vector<1x1x8x128xbf16>
    %209 = vector.shape_cast %208 : vector<1x1x8x128xbf16> to vector<8x128xbf16>
    %210 = arith.extf %209 : vector<8x128xbf16> to vector<8x128xf32>
    %211 = vector.shape_cast %210 : vector<8x128xf32> to vector<1x8x128xf32>
    %212 = vector.broadcast %211 : vector<1x8x128xf32> to vector<3x8x128xf32>
    %213 = arith.mulf %207, %212 : vector<3x8x128xf32>
    %214 = arith.addf %206, %213 : vector<3x8x128xf32>
    %c0_110 = arith.constant 0 : index
    %c1_111 = arith.constant 1 : index
    %c0_112 = arith.constant 0 : index
    %c3_113 = arith.constant 3 : index
    %c0_114 = arith.constant 0 : index
    %215 = vector.load %arg2[%c0_110, %c1_111, %c0_112, %c3_113, %c0_114] : memref<1x4x3x11x131xf32, #tpu.memory_space<vmem>>, vector<1x1x3x8x131xf32>
    %216 = vector.shape_cast %215 : vector<1x1x3x8x131xf32> to vector<3x8x131xf32>
    %217 = vector.extract_strided_slice %216 {offsets = [0, 0, 0], sizes = [3, 8, 128], strides = [1, 1, 1]} : vector<3x8x131xf32> to vector<3x8x128xf32>
    %c0_115 = arith.constant 0 : index
    %c43 = arith.constant 43 : index
    %c0_116 = arith.constant 0 : index
    %c0_117 = arith.constant 0 : index
    %218 = vector.load %arg3[%c0_115, %c43, %c0_116, %c0_117] : memref<1x49x8x128xbf16, #tpu.memory_space<vmem>>, vector<1x1x8x128xbf16>
    %219 = vector.shape_cast %218 : vector<1x1x8x128xbf16> to vector<8x128xbf16>
    %220 = arith.extf %219 : vector<8x128xbf16> to vector<8x128xf32>
    %221 = vector.shape_cast %220 : vector<8x128xf32> to vector<1x8x128xf32>
    %222 = vector.broadcast %221 : vector<1x8x128xf32> to vector<3x8x128xf32>
    %223 = arith.mulf %217, %222 : vector<3x8x128xf32>
    %224 = arith.addf %214, %223 : vector<3x8x128xf32>
    %225 = vector.extract_strided_slice %216 {offsets = [0, 0, 1], sizes = [3, 8, 128], strides = [1, 1, 1]} : vector<3x8x131xf32> to vector<3x8x128xf32>
    %c0_118 = arith.constant 0 : index
    %c45 = arith.constant 45 : index
    %c0_119 = arith.constant 0 : index
    %c0_120 = arith.constant 0 : index
    %226 = vector.load %arg3[%c0_118, %c45, %c0_119, %c0_120] : memref<1x49x8x128xbf16, #tpu.memory_space<vmem>>, vector<1x1x8x128xbf16>
    %227 = vector.shape_cast %226 : vector<1x1x8x128xbf16> to vector<8x128xbf16>
    %228 = arith.extf %227 : vector<8x128xbf16> to vector<8x128xf32>
    %229 = vector.shape_cast %228 : vector<8x128xf32> to vector<1x8x128xf32>
    %230 = vector.broadcast %229 : vector<1x8x128xf32> to vector<3x8x128xf32>
    %231 = arith.mulf %225, %230 : vector<3x8x128xf32>
    %232 = arith.addf %224, %231 : vector<3x8x128xf32>
    %233 = vector.extract_strided_slice %216 {offsets = [0, 0, 2], sizes = [3, 8, 128], strides = [1, 1, 1]} : vector<3x8x131xf32> to vector<3x8x128xf32>
    %c0_121 = arith.constant 0 : index
    %c47 = arith.constant 47 : index
    %c0_122 = arith.constant 0 : index
    %c0_123 = arith.constant 0 : index
    %234 = vector.load %arg3[%c0_121, %c47, %c0_122, %c0_123] : memref<1x49x8x128xbf16, #tpu.memory_space<vmem>>, vector<1x1x8x128xbf16>
    %235 = vector.shape_cast %234 : vector<1x1x8x128xbf16> to vector<8x128xbf16>
    %236 = arith.extf %235 : vector<8x128xbf16> to vector<8x128xf32>
    %237 = vector.shape_cast %236 : vector<8x128xf32> to vector<1x8x128xf32>
    %238 = vector.broadcast %237 : vector<1x8x128xf32> to vector<3x8x128xf32>
    %239 = arith.mulf %233, %238 : vector<3x8x128xf32>
    %240 = arith.addf %232, %239 : vector<3x8x128xf32>
    %c0_124 = arith.constant 0 : index
    %c2_125 = arith.constant 2 : index
    %c0_126 = arith.constant 0 : index
    %c0_127 = arith.constant 0 : index
    %c0_128 = arith.constant 0 : index
    %241 = vector.load %arg2[%c0_124, %c2_125, %c0_126, %c0_127, %c0_128] : memref<1x4x3x11x131xf32, #tpu.memory_space<vmem>>, vector<1x1x3x8x131xf32>
    %242 = vector.shape_cast %241 : vector<1x1x3x8x131xf32> to vector<3x8x131xf32>
    %243 = vector.extract_strided_slice %242 {offsets = [0, 0, 0], sizes = [3, 8, 128], strides = [1, 1, 1]} : vector<3x8x131xf32> to vector<3x8x128xf32>
    %c0_129 = arith.constant 0 : index
    %c7 = arith.constant 7 : index
    %c0_130 = arith.constant 0 : index
    %c0_131 = arith.constant 0 : index
    %244 = vector.load %arg3[%c0_129, %c7, %c0_130, %c0_131] : memref<1x49x8x128xbf16, #tpu.memory_space<vmem>>, vector<1x1x8x128xbf16>
    %245 = vector.shape_cast %244 : vector<1x1x8x128xbf16> to vector<8x128xbf16>
    %246 = arith.extf %245 : vector<8x128xbf16> to vector<8x128xf32>
    %247 = vector.shape_cast %246 : vector<8x128xf32> to vector<1x8x128xf32>
    %248 = vector.broadcast %247 : vector<1x8x128xf32> to vector<3x8x128xf32>
    %249 = arith.mulf %243, %248 : vector<3x8x128xf32>
    %250 = arith.addf %240, %249 : vector<3x8x128xf32>
    %251 = vector.extract_strided_slice %242 {offsets = [0, 0, 1], sizes = [3, 8, 128], strides = [1, 1, 1]} : vector<3x8x131xf32> to vector<3x8x128xf32>
    %c0_132 = arith.constant 0 : index
    %c9 = arith.constant 9 : index
    %c0_133 = arith.constant 0 : index
    %c0_134 = arith.constant 0 : index
    %252 = vector.load %arg3[%c0_132, %c9, %c0_133, %c0_134] : memref<1x49x8x128xbf16, #tpu.memory_space<vmem>>, vector<1x1x8x128xbf16>
    %253 = vector.shape_cast %252 : vector<1x1x8x128xbf16> to vector<8x128xbf16>
    %254 = arith.extf %253 : vector<8x128xbf16> to vector<8x128xf32>
    %255 = vector.shape_cast %254 : vector<8x128xf32> to vector<1x8x128xf32>
    %256 = vector.broadcast %255 : vector<1x8x128xf32> to vector<3x8x128xf32>
    %257 = arith.mulf %251, %256 : vector<3x8x128xf32>
    %258 = arith.addf %250, %257 : vector<3x8x128xf32>
    %259 = vector.extract_strided_slice %242 {offsets = [0, 0, 2], sizes = [3, 8, 128], strides = [1, 1, 1]} : vector<3x8x131xf32> to vector<3x8x128xf32>
    %c0_135 = arith.constant 0 : index
    %c11 = arith.constant 11 : index
    %c0_136 = arith.constant 0 : index
    %c0_137 = arith.constant 0 : index
    %260 = vector.load %arg3[%c0_135, %c11, %c0_136, %c0_137] : memref<1x49x8x128xbf16, #tpu.memory_space<vmem>>, vector<1x1x8x128xbf16>
    %261 = vector.shape_cast %260 : vector<1x1x8x128xbf16> to vector<8x128xbf16>
    %262 = arith.extf %261 : vector<8x128xbf16> to vector<8x128xf32>
    %263 = vector.shape_cast %262 : vector<8x128xf32> to vector<1x8x128xf32>
    %264 = vector.broadcast %263 : vector<1x8x128xf32> to vector<3x8x128xf32>
    %265 = arith.mulf %259, %264 : vector<3x8x128xf32>
    %266 = arith.addf %258, %265 : vector<3x8x128xf32>
    %267 = vector.extract_strided_slice %242 {offsets = [0, 0, 3], sizes = [3, 8, 128], strides = [1, 1, 1]} : vector<3x8x131xf32> to vector<3x8x128xf32>
    %c0_138 = arith.constant 0 : index
    %c13 = arith.constant 13 : index
    %c0_139 = arith.constant 0 : index
    %c0_140 = arith.constant 0 : index
    %268 = vector.load %arg3[%c0_138, %c13, %c0_139, %c0_140] : memref<1x49x8x128xbf16, #tpu.memory_space<vmem>>, vector<1x1x8x128xbf16>
    %269 = vector.shape_cast %268 : vector<1x1x8x128xbf16> to vector<8x128xbf16>
    %270 = arith.extf %269 : vector<8x128xbf16> to vector<8x128xf32>
    %271 = vector.shape_cast %270 : vector<8x128xf32> to vector<1x8x128xf32>
    %272 = vector.broadcast %271 : vector<1x8x128xf32> to vector<3x8x128xf32>
    %273 = arith.mulf %267, %272 : vector<3x8x128xf32>
    %274 = arith.addf %266, %273 : vector<3x8x128xf32>
    %c0_141 = arith.constant 0 : index
    %c2_142 = arith.constant 2 : index
    %c0_143 = arith.constant 0 : index
    %c1_144 = arith.constant 1 : index
    %c0_145 = arith.constant 0 : index
    %275 = vector.load %arg2[%c0_141, %c2_142, %c0_143, %c1_144, %c0_145] : memref<1x4x3x11x131xf32, #tpu.memory_space<vmem>>, vector<1x1x3x8x131xf32>
    %276 = vector.shape_cast %275 : vector<1x1x3x8x131xf32> to vector<3x8x131xf32>
    %277 = vector.extract_strided_slice %276 {offsets = [0, 0, 0], sizes = [3, 8, 128], strides = [1, 1, 1]} : vector<3x8x131xf32> to vector<3x8x128xf32>
    %c0_146 = arith.constant 0 : index
    %c21 = arith.constant 21 : index
    %c0_147 = arith.constant 0 : index
    %c0_148 = arith.constant 0 : index
    %278 = vector.load %arg3[%c0_146, %c21, %c0_147, %c0_148] : memref<1x49x8x128xbf16, #tpu.memory_space<vmem>>, vector<1x1x8x128xbf16>
    %279 = vector.shape_cast %278 : vector<1x1x8x128xbf16> to vector<8x128xbf16>
    %280 = arith.extf %279 : vector<8x128xbf16> to vector<8x128xf32>
    %281 = vector.shape_cast %280 : vector<8x128xf32> to vector<1x8x128xf32>
    %282 = vector.broadcast %281 : vector<1x8x128xf32> to vector<3x8x128xf32>
    %283 = arith.mulf %277, %282 : vector<3x8x128xf32>
    %284 = arith.addf %274, %283 : vector<3x8x128xf32>
    %285 = vector.extract_strided_slice %276 {offsets = [0, 0, 1], sizes = [3, 8, 128], strides = [1, 1, 1]} : vector<3x8x131xf32> to vector<3x8x128xf32>
    %c0_149 = arith.constant 0 : index
    %c23 = arith.constant 23 : index
    %c0_150 = arith.constant 0 : index
    %c0_151 = arith.constant 0 : index
    %286 = vector.load %arg3[%c0_149, %c23, %c0_150, %c0_151] : memref<1x49x8x128xbf16, #tpu.memory_space<vmem>>, vector<1x1x8x128xbf16>
    %287 = vector.shape_cast %286 : vector<1x1x8x128xbf16> to vector<8x128xbf16>
    %288 = arith.extf %287 : vector<8x128xbf16> to vector<8x128xf32>
    %289 = vector.shape_cast %288 : vector<8x128xf32> to vector<1x8x128xf32>
    %290 = vector.broadcast %289 : vector<1x8x128xf32> to vector<3x8x128xf32>
    %291 = arith.mulf %285, %290 : vector<3x8x128xf32>
    %292 = arith.addf %284, %291 : vector<3x8x128xf32>
    %293 = vector.extract_strided_slice %276 {offsets = [0, 0, 2], sizes = [3, 8, 128], strides = [1, 1, 1]} : vector<3x8x131xf32> to vector<3x8x128xf32>
    %c0_152 = arith.constant 0 : index
    %c25 = arith.constant 25 : index
    %c0_153 = arith.constant 0 : index
    %c0_154 = arith.constant 0 : index
    %294 = vector.load %arg3[%c0_152, %c25, %c0_153, %c0_154] : memref<1x49x8x128xbf16, #tpu.memory_space<vmem>>, vector<1x1x8x128xbf16>
    %295 = vector.shape_cast %294 : vector<1x1x8x128xbf16> to vector<8x128xbf16>
    %296 = arith.extf %295 : vector<8x128xbf16> to vector<8x128xf32>
    %297 = vector.shape_cast %296 : vector<8x128xf32> to vector<1x8x128xf32>
    %298 = vector.broadcast %297 : vector<1x8x128xf32> to vector<3x8x128xf32>
    %299 = arith.mulf %293, %298 : vector<3x8x128xf32>
    %300 = arith.addf %292, %299 : vector<3x8x128xf32>
    %301 = vector.extract_strided_slice %276 {offsets = [0, 0, 3], sizes = [3, 8, 128], strides = [1, 1, 1]} : vector<3x8x131xf32> to vector<3x8x128xf32>
    %c0_155 = arith.constant 0 : index
    %c27 = arith.constant 27 : index
    %c0_156 = arith.constant 0 : index
    %c0_157 = arith.constant 0 : index
    %302 = vector.load %arg3[%c0_155, %c27, %c0_156, %c0_157] : memref<1x49x8x128xbf16, #tpu.memory_space<vmem>>, vector<1x1x8x128xbf16>
    %303 = vector.shape_cast %302 : vector<1x1x8x128xbf16> to vector<8x128xbf16>
    %304 = arith.extf %303 : vector<8x128xbf16> to vector<8x128xf32>
    %305 = vector.shape_cast %304 : vector<8x128xf32> to vector<1x8x128xf32>
    %306 = vector.broadcast %305 : vector<1x8x128xf32> to vector<3x8x128xf32>
    %307 = arith.mulf %301, %306 : vector<3x8x128xf32>
    %308 = arith.addf %300, %307 : vector<3x8x128xf32>
    %c0_158 = arith.constant 0 : index
    %c2_159 = arith.constant 2 : index
    %c0_160 = arith.constant 0 : index
    %c2_161 = arith.constant 2 : index
    %c0_162 = arith.constant 0 : index
    %309 = vector.load %arg2[%c0_158, %c2_159, %c0_160, %c2_161, %c0_162] : memref<1x4x3x11x131xf32, #tpu.memory_space<vmem>>, vector<1x1x3x8x131xf32>
    %310 = vector.shape_cast %309 : vector<1x1x3x8x131xf32> to vector<3x8x131xf32>
    %311 = vector.extract_strided_slice %310 {offsets = [0, 0, 0], sizes = [3, 8, 128], strides = [1, 1, 1]} : vector<3x8x131xf32> to vector<3x8x128xf32>
    %c0_163 = arith.constant 0 : index
    %c35 = arith.constant 35 : index
    %c0_164 = arith.constant 0 : index
    %c0_165 = arith.constant 0 : index
    %312 = vector.load %arg3[%c0_163, %c35, %c0_164, %c0_165] : memref<1x49x8x128xbf16, #tpu.memory_space<vmem>>, vector<1x1x8x128xbf16>
    %313 = vector.shape_cast %312 : vector<1x1x8x128xbf16> to vector<8x128xbf16>
    %314 = arith.extf %313 : vector<8x128xbf16> to vector<8x128xf32>
    %315 = vector.shape_cast %314 : vector<8x128xf32> to vector<1x8x128xf32>
    %316 = vector.broadcast %315 : vector<1x8x128xf32> to vector<3x8x128xf32>
    %317 = arith.mulf %311, %316 : vector<3x8x128xf32>
    %318 = arith.addf %308, %317 : vector<3x8x128xf32>
    %319 = vector.extract_strided_slice %310 {offsets = [0, 0, 1], sizes = [3, 8, 128], strides = [1, 1, 1]} : vector<3x8x131xf32> to vector<3x8x128xf32>
    %c0_166 = arith.constant 0 : index
    %c37 = arith.constant 37 : index
    %c0_167 = arith.constant 0 : index
    %c0_168 = arith.constant 0 : index
    %320 = vector.load %arg3[%c0_166, %c37, %c0_167, %c0_168] : memref<1x49x8x128xbf16, #tpu.memory_space<vmem>>, vector<1x1x8x128xbf16>
    %321 = vector.shape_cast %320 : vector<1x1x8x128xbf16> to vector<8x128xbf16>
    %322 = arith.extf %321 : vector<8x128xbf16> to vector<8x128xf32>
    %323 = vector.shape_cast %322 : vector<8x128xf32> to vector<1x8x128xf32>
    %324 = vector.broadcast %323 : vector<1x8x128xf32> to vector<3x8x128xf32>
    %325 = arith.mulf %319, %324 : vector<3x8x128xf32>
    %326 = arith.addf %318, %325 : vector<3x8x128xf32>
    %327 = vector.extract_strided_slice %310 {offsets = [0, 0, 2], sizes = [3, 8, 128], strides = [1, 1, 1]} : vector<3x8x131xf32> to vector<3x8x128xf32>
    %c0_169 = arith.constant 0 : index
    %c39 = arith.constant 39 : index
    %c0_170 = arith.constant 0 : index
    %c0_171 = arith.constant 0 : index
    %328 = vector.load %arg3[%c0_169, %c39, %c0_170, %c0_171] : memref<1x49x8x128xbf16, #tpu.memory_space<vmem>>, vector<1x1x8x128xbf16>
    %329 = vector.shape_cast %328 : vector<1x1x8x128xbf16> to vector<8x128xbf16>
    %330 = arith.extf %329 : vector<8x128xbf16> to vector<8x128xf32>
    %331 = vector.shape_cast %330 : vector<8x128xf32> to vector<1x8x128xf32>
    %332 = vector.broadcast %331 : vector<1x8x128xf32> to vector<3x8x128xf32>
    %333 = arith.mulf %327, %332 : vector<3x8x128xf32>
    %334 = arith.addf %326, %333 : vector<3x8x128xf32>
    %335 = vector.extract_strided_slice %310 {offsets = [0, 0, 3], sizes = [3, 8, 128], strides = [1, 1, 1]} : vector<3x8x131xf32> to vector<3x8x128xf32>
    %c0_172 = arith.constant 0 : index
    %c41 = arith.constant 41 : index
    %c0_173 = arith.constant 0 : index
    %c0_174 = arith.constant 0 : index
    %336 = vector.load %arg3[%c0_172, %c41, %c0_173, %c0_174] : memref<1x49x8x128xbf16, #tpu.memory_space<vmem>>, vector<1x1x8x128xbf16>
    %337 = vector.shape_cast %336 : vector<1x1x8x128xbf16> to vector<8x128xbf16>
    %338 = arith.extf %337 : vector<8x128xbf16> to vector<8x128xf32>
    %339 = vector.shape_cast %338 : vector<8x128xf32> to vector<1x8x128xf32>
    %340 = vector.broadcast %339 : vector<1x8x128xf32> to vector<3x8x128xf32>
    %341 = arith.mulf %335, %340 : vector<3x8x128xf32>
    %342 = arith.addf %334, %341 : vector<3x8x128xf32>
    %c0_175 = arith.constant 0 : index
    %c3_176 = arith.constant 3 : index
    %c0_177 = arith.constant 0 : index
    %c0_178 = arith.constant 0 : index
    %c0_179 = arith.constant 0 : index
    %343 = vector.load %arg2[%c0_175, %c3_176, %c0_177, %c0_178, %c0_179] : memref<1x4x3x11x131xf32, #tpu.memory_space<vmem>>, vector<1x1x3x8x131xf32>
    %344 = vector.shape_cast %343 : vector<1x1x3x8x131xf32> to vector<3x8x131xf32>
    %345 = vector.extract_strided_slice %344 {offsets = [0, 0, 0], sizes = [3, 8, 128], strides = [1, 1, 1]} : vector<3x8x131xf32> to vector<3x8x128xf32>
    %c0_180 = arith.constant 0 : index
    %c8 = arith.constant 8 : index
    %c0_181 = arith.constant 0 : index
    %c0_182 = arith.constant 0 : index
    %346 = vector.load %arg3[%c0_180, %c8, %c0_181, %c0_182] : memref<1x49x8x128xbf16, #tpu.memory_space<vmem>>, vector<1x1x8x128xbf16>
    %347 = vector.shape_cast %346 : vector<1x1x8x128xbf16> to vector<8x128xbf16>
    %348 = arith.extf %347 : vector<8x128xbf16> to vector<8x128xf32>
    %349 = vector.shape_cast %348 : vector<8x128xf32> to vector<1x8x128xf32>
    %350 = vector.broadcast %349 : vector<1x8x128xf32> to vector<3x8x128xf32>
    %351 = arith.mulf %345, %350 : vector<3x8x128xf32>
    %352 = arith.addf %342, %351 : vector<3x8x128xf32>
    %353 = vector.extract_strided_slice %344 {offsets = [0, 0, 1], sizes = [3, 8, 128], strides = [1, 1, 1]} : vector<3x8x131xf32> to vector<3x8x128xf32>
    %c0_183 = arith.constant 0 : index
    %c10 = arith.constant 10 : index
    %c0_184 = arith.constant 0 : index
    %c0_185 = arith.constant 0 : index
    %354 = vector.load %arg3[%c0_183, %c10, %c0_184, %c0_185] : memref<1x49x8x128xbf16, #tpu.memory_space<vmem>>, vector<1x1x8x128xbf16>
    %355 = vector.shape_cast %354 : vector<1x1x8x128xbf16> to vector<8x128xbf16>
    %356 = arith.extf %355 : vector<8x128xbf16> to vector<8x128xf32>
    %357 = vector.shape_cast %356 : vector<8x128xf32> to vector<1x8x128xf32>
    %358 = vector.broadcast %357 : vector<1x8x128xf32> to vector<3x8x128xf32>
    %359 = arith.mulf %353, %358 : vector<3x8x128xf32>
    %360 = arith.addf %352, %359 : vector<3x8x128xf32>
    %361 = vector.extract_strided_slice %344 {offsets = [0, 0, 2], sizes = [3, 8, 128], strides = [1, 1, 1]} : vector<3x8x131xf32> to vector<3x8x128xf32>
    %c0_186 = arith.constant 0 : index
    %c12 = arith.constant 12 : index
    %c0_187 = arith.constant 0 : index
    %c0_188 = arith.constant 0 : index
    %362 = vector.load %arg3[%c0_186, %c12, %c0_187, %c0_188] : memref<1x49x8x128xbf16, #tpu.memory_space<vmem>>, vector<1x1x8x128xbf16>
    %363 = vector.shape_cast %362 : vector<1x1x8x128xbf16> to vector<8x128xbf16>
    %364 = arith.extf %363 : vector<8x128xbf16> to vector<8x128xf32>
    %365 = vector.shape_cast %364 : vector<8x128xf32> to vector<1x8x128xf32>
    %366 = vector.broadcast %365 : vector<1x8x128xf32> to vector<3x8x128xf32>
    %367 = arith.mulf %361, %366 : vector<3x8x128xf32>
    %368 = arith.addf %360, %367 : vector<3x8x128xf32>
    %c0_189 = arith.constant 0 : index
    %c3_190 = arith.constant 3 : index
    %c0_191 = arith.constant 0 : index
    %c1_192 = arith.constant 1 : index
    %c0_193 = arith.constant 0 : index
    %369 = vector.load %arg2[%c0_189, %c3_190, %c0_191, %c1_192, %c0_193] : memref<1x4x3x11x131xf32, #tpu.memory_space<vmem>>, vector<1x1x3x8x131xf32>
    %370 = vector.shape_cast %369 : vector<1x1x3x8x131xf32> to vector<3x8x131xf32>
    %371 = vector.extract_strided_slice %370 {offsets = [0, 0, 0], sizes = [3, 8, 128], strides = [1, 1, 1]} : vector<3x8x131xf32> to vector<3x8x128xf32>
    %c0_194 = arith.constant 0 : index
    %c22 = arith.constant 22 : index
    %c0_195 = arith.constant 0 : index
    %c0_196 = arith.constant 0 : index
    %372 = vector.load %arg3[%c0_194, %c22, %c0_195, %c0_196] : memref<1x49x8x128xbf16, #tpu.memory_space<vmem>>, vector<1x1x8x128xbf16>
    %373 = vector.shape_cast %372 : vector<1x1x8x128xbf16> to vector<8x128xbf16>
    %374 = arith.extf %373 : vector<8x128xbf16> to vector<8x128xf32>
    %375 = vector.shape_cast %374 : vector<8x128xf32> to vector<1x8x128xf32>
    %376 = vector.broadcast %375 : vector<1x8x128xf32> to vector<3x8x128xf32>
    %377 = arith.mulf %371, %376 : vector<3x8x128xf32>
    %378 = arith.addf %368, %377 : vector<3x8x128xf32>
    %379 = vector.extract_strided_slice %370 {offsets = [0, 0, 1], sizes = [3, 8, 128], strides = [1, 1, 1]} : vector<3x8x131xf32> to vector<3x8x128xf32>
    %c0_197 = arith.constant 0 : index
    %c24 = arith.constant 24 : index
    %c0_198 = arith.constant 0 : index
    %c0_199 = arith.constant 0 : index
    %380 = vector.load %arg3[%c0_197, %c24, %c0_198, %c0_199] : memref<1x49x8x128xbf16, #tpu.memory_space<vmem>>, vector<1x1x8x128xbf16>
    %381 = vector.shape_cast %380 : vector<1x1x8x128xbf16> to vector<8x128xbf16>
    %382 = arith.extf %381 : vector<8x128xbf16> to vector<8x128xf32>
    %383 = vector.shape_cast %382 : vector<8x128xf32> to vector<1x8x128xf32>
    %384 = vector.broadcast %383 : vector<1x8x128xf32> to vector<3x8x128xf32>
    %385 = arith.mulf %379, %384 : vector<3x8x128xf32>
    %386 = arith.addf %378, %385 : vector<3x8x128xf32>
    %387 = vector.extract_strided_slice %370 {offsets = [0, 0, 2], sizes = [3, 8, 128], strides = [1, 1, 1]} : vector<3x8x131xf32> to vector<3x8x128xf32>
    %c0_200 = arith.constant 0 : index
    %c26 = arith.constant 26 : index
    %c0_201 = arith.constant 0 : index
    %c0_202 = arith.constant 0 : index
    %388 = vector.load %arg3[%c0_200, %c26, %c0_201, %c0_202] : memref<1x49x8x128xbf16, #tpu.memory_space<vmem>>, vector<1x1x8x128xbf16>
    %389 = vector.shape_cast %388 : vector<1x1x8x128xbf16> to vector<8x128xbf16>
    %390 = arith.extf %389 : vector<8x128xbf16> to vector<8x128xf32>
    %391 = vector.shape_cast %390 : vector<8x128xf32> to vector<1x8x128xf32>
    %392 = vector.broadcast %391 : vector<1x8x128xf32> to vector<3x8x128xf32>
    %393 = arith.mulf %387, %392 : vector<3x8x128xf32>
    %394 = arith.addf %386, %393 : vector<3x8x128xf32>
    %c0_203 = arith.constant 0 : index
    %c3_204 = arith.constant 3 : index
    %c0_205 = arith.constant 0 : index
    %c2_206 = arith.constant 2 : index
    %c0_207 = arith.constant 0 : index
    %395 = vector.load %arg2[%c0_203, %c3_204, %c0_205, %c2_206, %c0_207] : memref<1x4x3x11x131xf32, #tpu.memory_space<vmem>>, vector<1x1x3x8x131xf32>
    %396 = vector.shape_cast %395 : vector<1x1x3x8x131xf32> to vector<3x8x131xf32>
    %397 = vector.extract_strided_slice %396 {offsets = [0, 0, 0], sizes = [3, 8, 128], strides = [1, 1, 1]} : vector<3x8x131xf32> to vector<3x8x128xf32>
    %c0_208 = arith.constant 0 : index
    %c36 = arith.constant 36 : index
    %c0_209 = arith.constant 0 : index
    %c0_210 = arith.constant 0 : index
    %398 = vector.load %arg3[%c0_208, %c36, %c0_209, %c0_210] : memref<1x49x8x128xbf16, #tpu.memory_space<vmem>>, vector<1x1x8x128xbf16>
    %399 = vector.shape_cast %398 : vector<1x1x8x128xbf16> to vector<8x128xbf16>
    %400 = arith.extf %399 : vector<8x128xbf16> to vector<8x128xf32>
    %401 = vector.shape_cast %400 : vector<8x128xf32> to vector<1x8x128xf32>
    %402 = vector.broadcast %401 : vector<1x8x128xf32> to vector<3x8x128xf32>
    %403 = arith.mulf %397, %402 : vector<3x8x128xf32>
    %404 = arith.addf %394, %403 : vector<3x8x128xf32>
    %405 = vector.extract_strided_slice %396 {offsets = [0, 0, 1], sizes = [3, 8, 128], strides = [1, 1, 1]} : vector<3x8x131xf32> to vector<3x8x128xf32>
    %c0_211 = arith.constant 0 : index
    %c38 = arith.constant 38 : index
    %c0_212 = arith.constant 0 : index
    %c0_213 = arith.constant 0 : index
    %406 = vector.load %arg3[%c0_211, %c38, %c0_212, %c0_213] : memref<1x49x8x128xbf16, #tpu.memory_space<vmem>>, vector<1x1x8x128xbf16>
    %407 = vector.shape_cast %406 : vector<1x1x8x128xbf16> to vector<8x128xbf16>
    %408 = arith.extf %407 : vector<8x128xbf16> to vector<8x128xf32>
    %409 = vector.shape_cast %408 : vector<8x128xf32> to vector<1x8x128xf32>
    %410 = vector.broadcast %409 : vector<1x8x128xf32> to vector<3x8x128xf32>
    %411 = arith.mulf %405, %410 : vector<3x8x128xf32>
    %412 = arith.addf %404, %411 : vector<3x8x128xf32>
    %413 = vector.extract_strided_slice %396 {offsets = [0, 0, 2], sizes = [3, 8, 128], strides = [1, 1, 1]} : vector<3x8x131xf32> to vector<3x8x128xf32>
    %c0_214 = arith.constant 0 : index
    %c40 = arith.constant 40 : index
    %c0_215 = arith.constant 0 : index
    %c0_216 = arith.constant 0 : index
    %414 = vector.load %arg3[%c0_214, %c40, %c0_215, %c0_216] : memref<1x49x8x128xbf16, #tpu.memory_space<vmem>>, vector<1x1x8x128xbf16>
    %415 = vector.shape_cast %414 : vector<1x1x8x128xbf16> to vector<8x128xbf16>
    %416 = arith.extf %415 : vector<8x128xbf16> to vector<8x128xf32>
    %417 = vector.shape_cast %416 : vector<8x128xf32> to vector<1x8x128xf32>
    %418 = vector.broadcast %417 : vector<1x8x128xf32> to vector<3x8x128xf32>
    %419 = arith.mulf %413, %418 : vector<3x8x128xf32>
    %420 = arith.addf %412, %419 : vector<3x8x128xf32>
    %c0_217 = arith.constant 0 : index
    %c0_218 = arith.constant 0 : index
    %c0_219 = arith.constant 0 : index
    %c0_220 = arith.constant 0 : index
    %421 = vector.load %arg4[%c0_217, %c0_218, %c0_219, %c0_220] : memref<1x3x8x128xf32, #tpu.memory_space<vmem>>, vector<1x3x8x128xf32>
    %422 = vector.shape_cast %421 : vector<1x3x8x128xf32> to vector<3x8x128xf32>
    %423 = vector.shape_cast %420 : vector<3x8x128xf32> to vector<1x3x8x128xf32>
    tpu.vector_store %arg4[%c0_217, %c0_218, %c0_219, %c0_220], %423 {strides = array<i32>} : memref<1x3x8x128xf32, #tpu.memory_space<vmem>>, vector<1x3x8x128xf32>,
    return
  }
  func.func @transform_0(%arg0: i32, %arg1: i32) -> (i32, i32, i32, i32, i32) {
    %c1_i32 = arith.constant 1 : i32
    %0 = arith.muli %arg0, %c1_i32 : i32
    %1 = arith.addi %0, %arg1 : i32
    %c0_i32 = arith.constant 0 : i32
    %c0_i32_0 = arith.constant 0 : i32
    %c0_i32_1 = arith.constant 0 : i32
    %c0_i32_2 = arith.constant 0 : i32
    %c0_i32_3 = arith.constant 0 : i32
    return %1, %c0_i32, %c0_i32_0, %c0_i32_1, %c0_i32_2 : i32, i32, i32, i32, i32
  }
  func.func @transform_1(%arg0: i32, %arg1: i32) -> (i32, i32, i32, i32) {
    %c0_i32 = arith.constant 0 : i32
    %c0_i32_0 = arith.constant 0 : i32
    %c0_i32_1 = arith.constant 0 : i32
    return %arg0, %c0_i32, %arg1, %c0_i32_0 : i32, i32, i32, i32
  }
  func.func @transform_2(%arg0: i32, %arg1: i32) -> (i32, i32, i32, i32) {
    %c0_i32 = arith.constant 0 : i32
    %c0_i32_0 = arith.constant 0 : i32
    %c0_i32_1 = arith.constant 0 : i32
    return %arg0, %c0_i32, %arg1, %c0_i32_0 : i32, i32, i32, i32
  }
}

</mosaic_0001>

<bundles_post_ra>
// kernel: tpu_custom_call.1
= control target key start
LH: loop header
LB: loop body
LE: loop exit
PB: predicated region body
PF: predicated region fallthrough
CT: control target
= control target key end

     0   :  { %7 = vsyncpa [#allocation3], 0  ;;  %s5335_s0 = inlined_call_operand.vmem [shape: f32[2,4,3,11,131], index: 0, kind: input, shape index: {}]   ;;  %s5336_s1 = inlined_call_operand.vmem [shape: bf16[2,49,8,128], index: 1, kind: input, shape index: {}]   ;;  %s5337_s2 = inlined_call_operand.hbm [shape: f32[2,3,8,128], index: 2, kind: output, shape index: {}]  }
   0x1   :  { %9 = vsyncpa [#allocation3 + $0x1], 0  ;;  %s3411_s9 = smov 0   ;;  %s3413_s10 = smov 0  }
   0x2   :  { %s3415_s11 = smov 0   ;;  %s3417_s12 = smov 0  }
   0x3   :  { %s3419_s13 = smov 0   ;;  %s3421_s14 = smov 0  }
   0x4 LB: > { %s2995_s15 = sadd.s32 4294967295, %s3385_s14   ;;  %s2996_s16 = sadd.s32 4294967294, %s3385_s14   ;;  %s3385_s14 = sphi %s3421_s14, %s15_s14   ;;  %s3381_s13 = sphi %s3419_s13, %s5440_s13   ;;  %s3377_s12 = sphi %s3417_s12, %s5439_s12   ;;  %s3373_s11 = sphi %s3415_s11, %s5438_s11   ;;  %s3369_s10 = sphi %s3413_s10, %s5437_s10   ;;  %s3365_s9 = sphi %s3411_s9, %s5436_s9  }
   0x5   : > { %s27_s17 = sadd.s32 1, %s3381_s13  ;;  %s92_s18 = sadd.s32 1, %s3373_s11 }
   0x6   : > { %p29_p0 = scmp.ge.s32.totalorder %s27_s17, 2  ;;  %p102_p1 = scmp.ne.s32.totalorder %s3373_s11, %s3369_s10 }
   0x7   : > { %p103_p2 = scmp.eq.s32.totalorder %s2995_s15, 1  ;;  %p108_p3 = scmp.ne.s32.totalorder %s3369_s10, %s3365_s9 }
   0x8   : > { %s5442_s17 = smov (%p29_p0, %s27_s17), 0  ;;  %p109_p5 = scmp.eq.s32.totalorder %s2996_s16, 1 }
   0x9   : > { %p3451_p4 = por %p103_p2, %p102_p1  ;;  %s87_s20 = ssub.s32 %s3381_s13, %s5442_s17 }
   0xa   : > { %p2999_p6 = scmp.ge.s32.totalorder %s3385_s14, 1  ;;  %p90_p7 = scmp.eq.s32.totalorder %s87_s20, 0 }
   0xb   : > { %p3458_p8 = por %p109_p5, %p108_p3  ;;  %p148_p9 = scmp.lt.s32.totalorder %s3385_s14, 3 }
   0xc   : > { %s3464_s22 = scalar_select %p90_p7, %s3373_s11, %s92_s18  }
   0xd   : > { %p149_p10 = pnand %p2999_p6, %p148_p9 }
   0xf   : > { %152 = sbr.rel (%p149_p10) target bundleno = 1645 (0x66d), region = 28 }
  0x16   : > { %p180_p11 = scmp.lt.s32.totalorder %s3377_s12, 1  ;;  %s3387_s28 = smov 1   ;;  %vm361_vm0 = vcmask 1046528   ;;  %vm620_vm1 = vcmask 1045504   ;;  %vm879_vm2 = vcmask 1044480   ;;  %vm239_vm3 = vcmask 1039360  }
  0x17   : > { %s3388_s29 = smov 2   ;;  %s3389_s30 = smov 3   ;;  %vm280_vm4 = vcmask 1031168   ;;  %vm321_vm5 = vcmask 1022976  }
  0x18   : > { %s3468_s23 = scalar_select %p180_p11, %s3377_s12, 1 }
  0x19   : > { %s3390_s7 = smov 127   ;;  %s3391_s8 = smov 126  }
  0x1a   : > { %s3157_s24 = smul.u32 196, %s3468_s23  ;;  %s3392_s15 = smov 125  }
  0x1b   : > { %s3156_s3 = smul.u32 384, %s3468_s23  ;;  %s176_s16 = sand.u32 1, %s3369_s10  }
  0x1c   : > { %s3474_s27 = scalar_lea.vmem %s5336_s1, %s3157_s24  ;;  %s3155_s18 = smul.u32 24, %s176_s16 }
  0x1d   : > { %v3002_v0 = vld [vmem:[%s3474_s27 + $0x8] ss:$56 sps:$4 sm:$0xff]   ;;  %v3004_v2 = vld [vmem:[%s3474_s27 + $0x18] ss:$56 sps:$4 sm:$0xff]   ;;  %s3492_s6 = scalar_lea.vmem %s5335_s0, %s3156_s3  ;;  %s3158_s24 = smul.u32 384, %s3377_s12 }
  0x1e   : > { %v3003_v1 = vld [vmem:[%s3474_s27 + $0x10] ss:$56 sps:$4 sm:$0xff]   ;;  %v210_v3 = vunpack.c.l.bf16 %v3002_v0  ;;  %v379_v4 = vunpack.c.h.bf16 %v3002_v0  ;;  %v3011_v8 = vld [vmem:[%s3474_s27 + $0x80] ss:$56 sps:$4 sm:$0xff]   ;;  %v292_v10 = vunpack.c.l.bf16 %v3004_v2  ;;  %v521_v11 = vunpack.c.h.bf16 %v3004_v2  ;;  %s178_s20 = scalar_lea.vmem [#allocation2], %s3155_s18  ;;  %s5289_s12 = scalar_lea.sflag [#allocation3], %s176_s16 }
  0x1f   : > { %v251_v5 = vunpack.c.l.bf16 %v3003_v1  ;;  %v450_v6 = vunpack.c.h.bf16 %v3003_v1  ;;  %v3010_v7 = vld [vmem:[%s3474_s27 + $0x78] ss:$56 sps:$4 sm:$0xff]   ;;  %v3012_v9 = vld [vmem:[%s3474_s27 + $0x88] ss:$56 sps:$4 sm:$0xff]   ;;  %v709_v16 = vunpack.c.l.bf16 %v3011_v8  ;;  %v968_v17 = vunpack.c.h.bf16 %v3011_v8  ;;  %s2905_s23 = sshll.u32 %s178_s20, 4  ;;  %s5279_s23 = int_to_ptr.vmem [resolvable:$true] %s2905_s23 }
  0x20   : > { %v638_v12 = vunpack.c.l.bf16 %v3010_v7  ;;  %v897_v13 = vunpack.c.h.bf16 %v3010_v7  ;;  %v381_v14 = vrot.slane %v379_v4, 7  ;;  %v523_v18 = vrot.slane %v521_v11, 7  ;;  %v195_v34 = vld [vmem:[%s3492_s6 + $0x8] sm:$0xff]  ;;  %v3496_v35 = vld [vmem:[%s3492_s6] sm:$0xff]  ;;  %v3535_v61 = vld [vmem:[%s3492_s6 + $0x10] sm:$0x1] }
  0x21   : > { %v452_v15 = vrot.slane %v450_v6, 7  ;;  %v780_v21 = vunpack.c.l.bf16 %v3012_v9  ;;  %v711_v24 = vrot.slane %v709_v16, 6  ;;  %v1039_v25 = vunpack.c.h.bf16 %v3012_v9  ;;  %v3500_v39 = vld [vmem:[%s3492_s6 + $0x20] sm:$0xff]  ;;  %v197_v40 = vld [vmem:[%s3492_s6 + $0x28] sm:$0xff]  ;;  %v3543_v63 = vld [vmem:[%s3492_s6 + $0x18] sm:$0x1] }
  0x22   : > { %v640_v19 = vrot.slane %v638_v12, 6  ;;  %v899_v20 = vrot.slane %v897_v13, 5  ;;  %v3222_v22 = vpack.i.bf16 %v381_v14, %v210_v3  ;;  %v3232_v26 = vpack.i.bf16 %v523_v18, %v292_v10  ;;  %v3509_v44 = vld [vmem:[%s3492_s6 + $0x40] sm:$0xff]  ;;  %v199_v45 = vld [vmem:[%s3492_s6 + $0x48] sm:$0xff]  ;;  %v3554_v7 = vld [vmem:[%s3492_s6 + $0x30] sm:$0x1] }
  0x23   : > { %v3227_v23 = vpack.i.bf16 %v452_v15, %v251_v5  ;;  %v970_v28 = vrot.slane %v968_v17, 5  ;;  %v782_v29 = vrot.slane %v780_v21, 6  ;;  %v1041_v30 = vrot.slane %v1039_v25, 5  ;;  %v3532_v60 = vld [vmem:[%s3492_s6] sm:$0xfe] }
  0x24   : > { %3223 = vrot.lane.b32.xlu0 %v3222_v22, %s3387_s28  ;;  %v3237_v27 = vpack.i.bf16 %v899_v20, %v640_v19  ;;  %v3540_v62 = vld [vmem:[%s3492_s6 + $0x8] sm:$0xfe]  ;;  %v3549_v4 = vld [vmem:[%s3492_s6 + $0x20] sm:$0xfe]  ;;  %v3560_v9 = vld [vmem:[%s3492_s6 + $0x38] sm:$0x1] }
  0x25   : > { %3228 = vrot.lane.b32.xlu1 %v3227_v23, %s3388_s29  ;;  %v3242_v31 = vpack.i.bf16 %v970_v28, %v711_v24  ;;  %v3247_v32 = vpack.i.bf16 %v1041_v30, %v782_v29  ;;  %v3557_v8 = vld [vmem:[%s3492_s6 + $0x28] sm:$0xfe]  ;;  %v3570_v20 = vld [vmem:[%s3492_s6 + $0x40] sm:$0xfe]  ;;  %v3573_v21 = vld [vmem:[%s3492_s6 + $0x50] sm:$0x1] }
  0x26   : > { %v3578_v22 = vld [vmem:[%s3492_s6 + $0x48] sm:$0xfe]  ;;  %v3581_v23 = vld [vmem:[%s3492_s6 + $0x58] sm:$0x1] }
  0x28   : > { %3233 = vrot.lane.b32.xlu0 %v3232_v26, %s3389_s30 }
  0x29   : > { %3238 = vrot.lane.b32.xlu1 %v3237_v27, %s3387_s28 }
  0x2c   : > { %3243 = vrot.lane.b32.xlu0 %v3242_v31, %s3388_s29 }
  0x2d   : > { %3248 = vrot.lane.b32.xlu1 %v3247_v32, %s3389_s30 }
  0x96   : > { %v3224_v33 = vpop.permute.xlu0 %3223 }
  0x97   : > { %v3225_v36 = vunpack.i.l.bf16 %v3224_v33  ;;  %v3505_v41 = vpop.permute.xlu1 %3228  ;;  %v3226_v59 = vunpack.i.h.bf16 %v3224_v33 }
  0x98   : > { %v3230_v46 = vunpack.i.l.bf16 %v3505_v41  ;;  %v3231_v24 = vunpack.i.h.bf16 %v3505_v41 }
  0x99   : > { %v216_v37 = vmul.f32 %v3225_v36, %v195_v34  ;;  %v215_v38 = vmul.f32 %v3225_v36, %v3496_v35  ;;  %v217_v42 = vmul.f32 %v3225_v36, %v3500_v39  ;;  %v218_v43 = vmul.f32 %v3225_v36, %v197_v40 }
  0x9a   : > { %v219_v47 = vmul.f32 %v3225_v36, %v3509_v44  ;;  %v220_v48 = vmul.f32 %v3225_v36, %v199_v45  ;;  %v257_v49 = vmul.f32 %v3230_v46, %v195_v34  ;;  %v256_v50 = vmul.f32 %v3230_v46, %v3496_v35  ;;  %v3521_v51 = vpop.permute.xlu0 %3233 }
  0x9b   : > { %229 = vrot.lane.b32.xlu1 %v216_v37, %s3390_s7  ;;  %227 = vrot.lane.b32.xlu0 %v215_v38, %s3390_s7  ;;  %v259_v52 = vmul.f32 %v3230_v46, %v197_v40  ;;  %v258_v53 = vmul.f32 %v3230_v46, %v3500_v39  ;;  %v3235_v54 = vunpack.i.l.bf16 %v3521_v51  ;;  %v261_v55 = vmul.f32 %v3230_v46, %v199_v45 }
  0x9c   : > { %v260_v56 = vmul.f32 %v3230_v46, %v3509_v44  ;;  %v385_v0 = vmul.f32 %v3226_v59, %v3532_v60  ;;  %v387_v1 = vmul.f32 %v3226_v59, %v3535_v61  ;;  %v386_v5 = vmul.f32 %v3226_v59, %v3540_v62 }
  0x9d   : > { %v297_v57 = vmul.f32 %v3235_v54, %v3496_v35  ;;  %v298_v58 = vmul.f32 %v3235_v54, %v195_v34  ;;  %v299_v2 = vmul.f32 %v3235_v54, %v3500_v39  ;;  %v300_v3 = vmul.f32 %v3235_v54, %v197_v40 }
  0x9e   : > { %v388_v6 = vmul.f32 %v3226_v59, %v3543_v63  ;;  %v301_v10 = vmul.f32 %v3235_v54, %v3509_v44  ;;  %v409_v11 = vrot.slane %v385_v0, 1  ;;  %v410_v12 = vrot.slane %v387_v1, 1 }
  0x9f   : > { %231 = vrot.lane.b32.xlu1 %v217_v42, %s3390_s7  ;;  %233 = vrot.lane.b32.xlu0 %v218_v43, %s3390_s7  ;;  %v389_v13 = vmul.f32 %v3226_v59, %v3549_v4  ;;  %v302_v14 = vmul.f32 %v3235_v54, %v199_v45  ;;  %v391_v15 = vmul.f32 %v3226_v59, %v3554_v7  ;;  %v412_v18 = vrot.slane %v386_v5, 1 }
  0xa0   : > { %v390_v16 = vmul.f32 %v3226_v59, %v3557_v8  ;;  %v392_v17 = vmul.f32 %v3226_v59, %v3560_v9  ;;  %v413_v19 = vrot.slane %v388_v6, 1  ;;  %v411_v25 = vsel %vm361_vm0, %v409_v11, %v410_v12 }
  0xa1   : > { %v415_v26 = vrot.slane %v389_v13, 1  ;;  %v416_v27 = vrot.slane %v391_v15, 1  ;;  %v393_v30 = vmul.f32 %v3226_v59, %v3570_v20  ;;  %v395_v32 = vmul.f32 %v3226_v59, %v3573_v21 }
  0xa2   : > { %v418_v28 = vrot.slane %v390_v16, 1  ;;  %v419_v29 = vrot.slane %v392_v17, 1  ;;  %v414_v31 = vsel %vm361_vm0, %v412_v18, %v413_v19  ;;  %v394_v33 = vmul.f32 %v3226_v59, %v3578_v22 }
  0xa3   : > { %235 = vrot.lane.b32.xlu1 %v219_v47, %s3390_s7  ;;  %237 = vrot.lane.b32.xlu0 %v220_v48, %s3390_s7  ;;  %v396_v34 = vmul.f32 %v3226_v59, %v3581_v23  ;;  %v456_v36 = vmul.f32 %v3231_v24, %v3532_v60  ;;  %v458_v37 = vmul.f32 %v3231_v24, %v3535_v61  ;;  %v421_v40 = vrot.slane %v393_v30, 1 }
  0xa4   : > { %v417_v38 = vsel %vm361_vm0, %v415_v26, %v416_v27  ;;  %v457_v41 = vmul.f32 %v3231_v24, %v3540_v62  ;;  %v459_v42 = vmul.f32 %v3231_v24, %v3543_v63  ;;  %v420_v43 = vsel %vm361_vm0, %v418_v28, %v419_v29  ;;  %v3625_v29 = vpop.permute.xlu1 %3238 }
  0xa5   : > { %v422_v45 = vrot.slane %v395_v32, 1  ;;  %v424_v46 = vrot.slane %v394_v33, 1  ;;  %v425_v47 = vrot.slane %v396_v34, 1  ;;  %v480_v48 = vrot.slane %v456_v36, 1 }
  0xa6   : > { %v462_v54 = vmul.f32 %v3231_v24, %v3554_v7  ;;  %v3236_v59 = vunpack.i.h.bf16 %v3521_v51  ;;  %v464_v5 = vmul.f32 %v3231_v24, %v3570_v20  ;;  %v466_v6 = vmul.f32 %v3231_v24, %v3573_v21 }
  0xa7   : > { %270 = vrot.lane.b32.xlu1 %v257_v49, %s3391_s8  ;;  %268 = vrot.lane.b32.xlu0 %v256_v50, %s3391_s8  ;;  %v481_v49 = vrot.slane %v458_v37, 1  ;;  %v460_v50 = vmul.f32 %v3231_v24, %v3549_v4  ;;  %v465_v12 = vmul.f32 %v3231_v24, %v3578_v22  ;;  %v467_v51 = vmul.f32 %v3231_v24, %v3581_v23 }
  0xa8   : > { %v527_v13 = vmul.f32 %v3236_v59, %v3532_v60  ;;  %v528_v15 = vmul.f32 %v3236_v59, %v3540_v62  ;;  %v530_v16 = vmul.f32 %v3236_v59, %v3543_v63  ;;  %v492_v17 = vrot.slane %v464_v5, 1  ;;  %v3665_v5 = vld [vmem:[%s3492_s6 + $0x28] sm:$0xfc] }
  0xa9   : > { %v482_v0 = vsel %vm361_vm0, %v480_v48, %v481_v49  ;;  %v486_v1 = vrot.slane %v460_v50, 1  ;;  %v493_v18 = vrot.slane %v466_v6, 1  ;;  %v495_v26 = vrot.slane %v465_v12, 1  ;;  %v3668_v6 = vld [vmem:[%s3492_s6 + $0x38] sm:$0x3] }
  0xaa   : > { %v551_v27 = vrot.slane %v527_v13, 1  ;;  %v554_v62 = vrot.slane %v528_v15, 1  ;;  %v555_v63 = vrot.slane %v530_v16, 1  ;;  %v531_v30 = vmul.f32 %v3236_v59, %v3549_v4  ;;  %v3673_v12 = vld [vmem:[%s3492_s6 + $0x20] sm:$0xfc] }
  0xab   : > { %274 = vrot.lane.b32.xlu1 %v259_v52, %s3391_s8  ;;  %272 = vrot.lane.b32.xlu0 %v258_v53, %s3391_s8  ;;  %v483_v52 = vrot.slane %v457_v41, 1  ;;  %v484_v53 = vrot.slane %v459_v42, 1  ;;  %v494_v32 = vsel %vm361_vm0, %v492_v17, %v493_v18  ;;  %v3240_v34 = vunpack.i.l.bf16 %v3625_v29  ;;  %v3685_v15 = vld [vmem:[%s3492_s6 + $0x58] sm:$0x3] }
  0xac   : > { %v532_v36 = vmul.f32 %v3236_v59, %v3557_v8  ;;  %v534_v37 = vmul.f32 %v3236_v59, %v3560_v9  ;;  %v556_v42 = vsel %vm361_vm0, %v554_v62, %v555_v63  ;;  %v536_v48 = vmul.f32 %v3236_v59, %v3578_v22 }
  0xad   : > { %v538_v49 = vmul.f32 %v3236_v59, %v3581_v23  ;;  %v649_v18 = vmul.f32 %v3240_v34, %v3665_v5 }
  0xae   : > { %v560_v50 = vrot.slane %v532_v36, 1 }
  0xaf   : > { %278 = vrot.lane.b32.xlu1 %v261_v55, %s3391_s8  ;;  %276 = vrot.lane.b32.xlu0 %v260_v56, %s3391_s8  ;;  %v423_v55 = vsel %vm361_vm0, %v421_v40, %v422_v45  ;;  %v426_v56 = vsel %vm361_vm0, %v424_v46, %v425_v47  ;;  %v3640_v40 = vld [vmem:[%s3492_s6 + $0x18] sm:$0x3]  ;;  %v3645_v46 = vld [vmem:[%s3492_s6] sm:$0xfc] }
  0xb0   : > { %v3648_v47 = vld [vmem:[%s3492_s6 + $0x10] sm:$0x3] }
  0xb3   : > { %309 = vrot.lane.b32.xlu1 %v297_v57, %s3392_s15  ;;  %311 = vrot.lane.b32.xlu0 %v298_v58, %s3392_s15  ;;  %v461_v57 = vmul.f32 %v3231_v24, %v3557_v8  ;;  %v463_v58 = vmul.f32 %v3231_v24, %v3560_v9  ;;  %v496_v24 = vrot.slane %v467_v51, 1  ;;  %v535_v8 = vmul.f32 %v3236_v59, %v3570_v20  ;;  %v3676_v51 = vld [vmem:[%s3492_s6 + $0x30] sm:$0x3] }
  0xb4   : > { %v537_v9 = vmul.f32 %v3236_v59, %v3573_v21 }
  0xb5   : > { %v490_v11 = vrot.slane %v463_v58, 1  ;;  %v497_v33 = vsel %vm361_vm0, %v495_v26, %v496_v24  ;;  %v563_v22 = vrot.slane %v535_v8, 1  ;;  %v567_v58 = vrot.slane %v538_v49, 1 }
  0xb6   : > { %v564_v23 = vrot.slane %v537_v9, 1  ;;  %v651_v24 = vmul.f32 %v3240_v34, %v3668_v6 }
  0xb7   : > { %313 = vrot.lane.b32.xlu1 %v299_v2, %s3392_s15  ;;  %315 = vrot.lane.b32.xlu0 %v300_v3, %s3392_s15  ;;  %v485_v2 = vsel %vm361_vm0, %v483_v52, %v484_v53  ;;  %v487_v3 = vrot.slane %v462_v54, 1  ;;  %v561_v52 = vrot.slane %v534_v37, 1  ;;  %v647_v54 = vmul.f32 %v3240_v34, %v3640_v40 }
  0xb8   : > { %v565_v16 = vsel %vm361_vm0, %v563_v22, %v564_v23 }
  0xb9   : > { %v488_v19 = vsel %vm361_vm0, %v486_v1, %v487_v3  ;;  %v562_v1 = vsel %vm361_vm0, %v560_v50, %v561_v52  ;;  %v672_v3 = vrot.slane %v647_v54, 2 }
  0xbb   : > { %317 = vrot.lane.b32.xlu1 %v301_v10, %s3392_s15  ;;  %319 = vrot.lane.b32.xlu0 %v302_v14, %s3392_s15  ;;  %v489_v10 = vrot.slane %v461_v57, 1  ;;  %v529_v14 = vmul.f32 %v3236_v59, %v3535_v61  ;;  %v566_v57 = vrot.slane %v536_v48, 1 }
  0xbd   : > { %v552_v28 = vrot.slane %v529_v14, 1  ;;  %v3682_v14 = vld [vmem:[%s3492_s6 + $0x48] sm:$0xfc]  ;;  %v568_v17 = vsel %vm361_vm0, %v566_v57, %v567_v58 }
  0xbe   : > { %v653_v63 = vmul.f32 %v3240_v34, %v3682_v14 }
  0xbf   : > { %427 = vrot.lane.b32.xlu1 %v411_v25, %s3390_s7  ;;  %429 = vrot.lane.b32.xlu0 %v414_v31, %s3390_s7  ;;  %v491_v25 = vsel %vm361_vm0, %v489_v10, %v490_v11  ;;  %v533_v31 = vmul.f32 %v3236_v59, %v3554_v7  ;;  %v553_v41 = vsel %vm361_vm0, %v551_v27, %v552_v28  ;;  %v3660_v59 = vpop.permute.xlu0 %3243 }
  0xc0   : > { %v3679_v13 = vunpack.i.l.bf16 %v3660_v59  ;;  %v648_v27 = vmul.f32 %v3240_v34, %v3673_v12  ;;  %v650_v28 = vmul.f32 %v3240_v34, %v3676_v51 }
  0xc1   : > { %v558_v45 = vrot.slane %v533_v31, 1 }
  0xc2   : > { %v717_v36 = vmul.f32 %v3679_v13, %v3648_v47  ;;  %v675_v8 = vrot.slane %v650_v28, 2  ;;  %v719_v22 = vmul.f32 %v3679_v13, %v3673_v12  ;;  %v721_v58 = vmul.f32 %v3679_v13, %v3676_v51 }
  0xc3   : > { %431 = vrot.lane.b32.xlu1 %v417_v38, %s3390_s7  ;;  %433 = vrot.lane.b32.xlu0 %v420_v43, %s3390_s7  ;;  %v3637_v38 = vld [vmem:[%s3492_s6 + $0x8] sm:$0xfc]  ;;  %v557_v43 = vrot.slane %v531_v30, 1  ;;  %v655_v30 = vmul.f32 %v3240_v34, %v3685_v15 }
  0xc4   : > { %v645_v53 = vmul.f32 %v3240_v34, %v3637_v38  ;;  %v716_v37 = vmul.f32 %v3679_v13, %v3637_v38  ;;  %v740_v52 = vrot.slane %v717_v36, 2  ;;  %v726_v36 = vmul.f32 %v3679_v13, %v3685_v15 }
  0xc5   : > { %v684_v9 = vrot.slane %v655_v30, 2 }
  0xc6   : > { %v742_v54 = vrot.slane %v716_v37, 2 }
  0xc7   : > { %435 = vrot.lane.b32.xlu1 %v423_v55, %s3390_s7  ;;  %437 = vrot.lane.b32.xlu0 %v426_v56, %s3390_s7  ;;  %v644_v55 = vmul.f32 %v3240_v34, %v3645_v46  ;;  %v646_v56 = vmul.f32 %v3240_v34, %v3648_v47 }
  0xc9   : > { %v668_v10 = vrot.slane %v644_v55, 2  ;;  %v669_v11 = vrot.slane %v646_v56, 2  ;;  %v3720_v56 = vpop.permute.xlu1 %3248 }
  0xcb   : > { %498 = vrot.lane.b32.xlu1 %v482_v0, %s3391_s8  ;;  %500 = vrot.lane.b32.xlu0 %v485_v2, %s3391_s8  ;;  %v559_v0 = vsel %vm361_vm0, %v557_v43, %v558_v45  ;;  %v671_v2 = vrot.slane %v645_v53, 2  ;;  %v670_v62 = vsel %vm620_vm1, %v668_v10, %v669_v11  ;;  %v678_v43 = vrot.slane %v651_v24, 2  ;;  %v3718_v53 = vld [vmem:[%s3474_s27 + $0x70] ss:$56 sps:$4 sm:$0xff]  }
  0xcc   : > { %v674_v45 = vrot.slane %v648_v27, 2  ;;  %v746_v27 = vrot.slane %v721_v58, 2 }
  0xcd   : > { %v673_v26 = vsel %vm620_vm1, %v671_v2, %v672_v3  ;;  %v604_v2 = vunpack.c.l.bf16 %v3718_v53 }
  0xce   : > { %v676_v57 = vsel %vm620_vm1, %v674_v45, %v675_v8 }
  0xcf   : > { %502 = vrot.lane.b32.xlu1 %v488_v19, %s3391_s8  ;;  %504 = vrot.lane.b32.xlu0 %v491_v25, %s3391_s8  ;;  %v3691_v19 = vld [vmem:[%s3492_s6 + $0x40] sm:$0xfc]  ;;  %v3694_v25 = vld [vmem:[%s3492_s6 + $0x50] sm:$0x3]  ;;  %v606_v24 = vrot.slane %v604_v2, 6 }
  0xd0   : > { %v652_v31 = vmul.f32 %v3240_v34, %v3691_v19 }
  0xd1   : > { %v611_v37 = vmul.f32 %v606_v24, %v3676_v51 }
  0xd2   : > { %v680_v48 = vrot.slane %v652_v31, 2  ;;  %v608_v31 = vmul.f32 %v606_v24, %v3645_v46 }
  0xd3   : > { %506 = vrot.lane.b32.xlu1 %v494_v32, %s3391_s8  ;;  %508 = vrot.lane.b32.xlu0 %v497_v33, %s3391_s8  ;;  %v654_v32 = vmul.f32 %v3240_v34, %v3694_v25  ;;  %v715_v33 = vmul.f32 %v3679_v13, %v3645_v46  ;;  %v683_v34 = vrot.slane %v653_v63, 2  ;;  %v724_v63 = vmul.f32 %v3679_v13, %v3682_v14 }
  0xd4   : > { %v621_v45 = vrot.slane %v608_v31, 2  ;;  %v3810_v31 = vld [vmem:[%s3492_s6 + $0x8] sm:$0xf8] }
  0xd5   : > { %v681_v49 = vrot.slane %v654_v32, 2  ;;  %v739_v50 = vrot.slane %v715_v33, 2  ;;  %v685_v3 = vsel %vm620_vm1, %v683_v34, %v684_v9  ;;  %v609_v32 = vmul.f32 %v606_v24, %v3648_v47 }
  0xd6   : > { %v610_v33 = vmul.f32 %v606_v24, %v3673_v12  ;;  %v754_v58 = vrot.slane %v724_v63, 2 }
  0xd7   : > { %569 = vrot.lane.b32.xlu1 %v553_v41, %s3392_s15  ;;  %571 = vrot.lane.b32.xlu0 %v556_v42, %s3392_s15  ;;  %v718_v41 = vmul.f32 %v3679_v13, %v3640_v40  ;;  %v677_v42 = vrot.slane %v649_v18, 2  ;;  %v682_v10 = vsel %vm620_vm1, %v680_v48, %v681_v49  ;;  %v741_v11 = vsel %vm620_vm1, %v739_v50, %v740_v52 }
  0xd8   : > { %v745_v18 = vrot.slane %v719_v22, 2  ;;  %v622_v8 = vrot.slane %v609_v32, 2  ;;  %v624_v34 = vrot.slane %v610_v33, 2  ;;  %v625_v48 = vrot.slane %v611_v37, 2 }
  0xd9   : > { %v743_v55 = vrot.slane %v718_v41, 2  ;;  %v679_v23 = vsel %vm620_vm1, %v677_v42, %v678_v43  ;;  %v612_v41 = vmul.f32 %v606_v24, %v3691_v19  ;;  %v613_v42 = vmul.f32 %v606_v24, %v3694_v25 }
  0xda   : > { %v747_v22 = vsel %vm620_vm1, %v745_v18, %v746_v27  ;;  %v3795_v27 = vld [vmem:[%s3492_s6] sm:$0xf8] }
  0xdb   : > { %573 = vrot.lane.b32.xlu1 %v559_v0, %s3392_s15  ;;  %575 = vrot.lane.b32.xlu0 %v562_v1, %s3392_s15  ;;  %v720_v0 = vmul.f32 %v3679_v13, %v3665_v5  ;;  %v722_v1 = vmul.f32 %v3679_v13, %v3668_v6  ;;  %v627_v49 = vrot.slane %v612_v41, 2  ;;  %v628_v50 = vrot.slane %v613_v42, 2 }
  0xdd   : > { %v748_v28 = vrot.slane %v720_v0, 2  ;;  %v749_v30 = vrot.slane %v722_v1, 2  ;;  %v863_v1 = vunpack.c.h.bf16 %v3718_v53 }
  0xdf   : > { %577 = vrot.lane.b32.xlu1 %v565_v16, %s3392_s15  ;;  %579 = vrot.lane.b32.xlu0 %v568_v17, %s3392_s15  ;;  %v3739_v16 = vunpack.i.l.bf16 %v3720_v56  ;;  %v744_v17 = vsel %vm620_vm1, %v742_v54, %v743_v55  ;;  %v3772_v55 = vsel %vm620_vm1, %v624_v34, %v625_v48  ;;  %v865_v53 = vrot.slane %v863_v1, 5 }
  0xe1   : > { %v787_v43 = vmul.f32 %v3739_v16, %v3637_v38  ;;  %v789_v9 = vmul.f32 %v3739_v16, %v3640_v40  ;;  %v788_v52 = vmul.f32 %v3739_v16, %v3648_v47  ;;  %v3769_v38 = vsel %vm620_vm1, %v621_v45, %v622_v8  ;;  %v3820_v45 = vld [vmem:[%s3492_s6 + $0x20] sm:$0xf8]  ;;  %v3823_v8 = vld [vmem:[%s3492_s6 + $0x30] sm:$0x7] }
  0xe2   : > { %v3775_v40 = vsel %vm620_vm1, %v627_v49, %v628_v50  ;;  %v792_v18 = vmul.f32 %v3739_v16, %v3676_v51  ;;  %v797_v42 = vmul.f32 %v3739_v16, %v3685_v15  ;;  %v870_v15 = vmul.f32 %v865_v53, %v3823_v8  ;;  %v3841_v50 = vld [vmem:[%s3492_s6 + $0x28] sm:$0xf8] }
  0xe3   : > { %688 = vrot.lane.b32.xlu1 %v673_v26, %s3390_s7  ;;  %686 = vrot.lane.b32.xlu0 %v670_v62, %s3390_s7  ;;  %v723_v26 = vmul.f32 %v3679_v13, %v3691_v19  ;;  %v725_v62 = vmul.f32 %v3679_v13, %v3694_v25  ;;  %v786_v13 = vmul.f32 %v3739_v16, %v3645_v46  ;;  %v755_v46 = vrot.slane %v726_v36, 2  ;;  %v3813_v36 = vld [vmem:[%s3492_s6 + $0x18] sm:$0x7] }
  0xe4   : > { %v813_v47 = vrot.slane %v787_v43, 2  ;;  %v814_v0 = vrot.slane %v789_v9, 2  ;;  %v817_v33 = vrot.slane %v792_v18, 2  ;;  %v794_v43 = vmul.f32 %v3739_v16, %v3691_v19 }
  0xe5   : > { %v751_v54 = vrot.slane %v723_v26, 2  ;;  %v810_v2 = vrot.slane %v786_v13, 2  ;;  %v3791_v26 = vunpack.i.h.bf16 %v3625_v29  ;;  %v869_v9 = vmul.f32 %v865_v53, %v3820_v45 }
  0xe7   : > { %692 = vrot.lane.b32.xlu1 %v679_v23, %s3390_s7  ;;  %690 = vrot.lane.b32.xlu0 %v676_v57, %s3390_s7  ;;  %v750_v23 = vsel %vm620_vm1, %v748_v28, %v749_v30  ;;  %v752_v57 = vrot.slane %v725_v62, 2  ;;  %v815_v28 = vsel %vm620_vm1, %v813_v47, %v814_v0  ;;  %v795_v30 = vmul.f32 %v3739_v16, %v3682_v14  ;;  %v3854_v0 = vld [vmem:[%s3492_s6 + $0x38] sm:$0x7] }
  0xe8   : > { %v796_v14 = vmul.f32 %v3739_v16, %v3694_v25  ;;  %v904_v25 = vmul.f32 %v3791_v26, %v3810_v31  ;;  %v906_v49 = vmul.f32 %v3791_v26, %v3813_v36  ;;  %v883_v13 = vrot.slane %v869_v9, 3 }
  0xe9   : > { %v753_v24 = vsel %vm620_vm1, %v751_v54, %v752_v57  ;;  %v825_v48 = vrot.slane %v795_v30, 2  ;;  %v826_v54 = vrot.slane %v797_v42, 2  ;;  %v3877_v30 = vld [vmem:[%s3492_s6 + $0x58] sm:$0x7] }
  0xea   : > { %v823_v47 = vrot.slane %v796_v14, 2  ;;  %v914_v9 = vmul.f32 %v3791_v26, %v3877_v30 }
  0xeb   : > { %696 = vrot.lane.b32.xlu1 %v685_v3, %s3390_s7  ;;  %694 = vrot.lane.b32.xlu0 %v682_v10, %s3390_s7  ;;  %v811_v3 = vrot.slane %v788_v52, 2  ;;  %v791_v10 = vmul.f32 %v3739_v16, %v3665_v5  ;;  %v3798_v5 = vld [vmem:[%s3492_s6 + $0x10] sm:$0x7]  ;;  %v884_v52 = vrot.slane %v870_v15, 3 }
  0xec   : > { %v868_v51 = vmul.f32 %v865_v53, %v3798_v5  ;;  %v905_v57 = vmul.f32 %v3791_v26, %v3798_v5 }
  0xed   : > { %v812_v29 = vsel %vm620_vm1, %v810_v2, %v811_v3  ;;  %v819_v62 = vrot.slane %v791_v10, 2  ;;  %v3857_v1 = vsel %vm879_vm2, %v883_v13, %v884_v52  ;;  %v930_v10 = vrot.slane %v904_v25, 3 }
  0xee   : > { %v881_v41 = vrot.slane %v868_v51, 3  ;;  %v910_v51 = vmul.f32 %v3791_v26, %v3854_v0 }
  0xef   : > { %757 = vrot.lane.b32.xlu1 %v741_v11, %s3391_s8  ;;  %759 = vrot.lane.b32.xlu0 %v744_v17, %s3391_s8  ;;  %v793_v11 = vmul.f32 %v3739_v16, %v3668_v6  ;;  %v790_v17 = vmul.f32 %v3739_v16, %v3673_v12  ;;  %v756_v6 = vsel %vm620_vm1, %v754_v58, %v755_v46  ;;  %v3848_v58 = vld [vmem:[%s3492_s6 + $0x40] sm:$0xf8]  ;;  %v3851_v46 = vld [vmem:[%s3492_s6 + $0x50] sm:$0x7] }
  0xf0   : > { %v867_v12 = vmul.f32 %v865_v53, %v3795_v27  ;;  %v871_v2 = vmul.f32 %v865_v53, %v3848_v58  ;;  %v872_v3 = vmul.f32 %v865_v53, %v3851_v46 }
  0xf1   : > { %v820_v63 = vrot.slane %v793_v11, 2  ;;  %v816_v32 = vrot.slane %v790_v17, 2  ;;  %v931_v11 = vrot.slane %v906_v49, 3  ;;  %v908_v17 = vmul.f32 %v3791_v26, %v3841_v50 }
  0xf2   : > { %v880_v37 = vrot.slane %v867_v12, 3  ;;  %v886_v18 = vrot.slane %v871_v2, 3  ;;  %v928_v12 = vrot.slane %v905_v57, 3 }
  0xf3   : > { %761 = vrot.lane.b32.xlu1 %v747_v22, %s3391_s8  ;;  %763 = vrot.lane.b32.xlu0 %v750_v23, %s3391_s8  ;;  %v821_v19 = vsel %vm620_vm1, %v819_v62, %v820_v63  ;;  %v818_v16 = vsel %vm620_vm1, %v816_v32, %v817_v33  ;;  %v822_v22 = vrot.slane %v794_v43, 2  ;;  %v903_v23 = vmul.f32 %v3791_v26, %v3795_v27  ;;  %v3874_v63 = vld [vmem:[%s3492_s6 + $0x48] sm:$0xf8] }
  0xf4   : > { %v3828_v34 = vsel %vm879_vm2, %v880_v37, %v881_v41  ;;  %v909_v62 = vmul.f32 %v3791_v26, %v3823_v8  ;;  %v3246_v33 = vunpack.i.h.bf16 %v3660_v59  ;;  %v932_v37 = vsel %vm879_vm2, %v930_v10, %v931_v11 }
  0xf5   : > { %v824_v53 = vsel %vm620_vm1, %v822_v22, %v823_v47  ;;  %v936_v41 = vrot.slane %v908_v17, 3  ;;  %v937_v43 = vrot.slane %v910_v51, 3  ;;  %v912_v14 = vmul.f32 %v3791_v26, %v3874_v63 }
  0xf6   : > { %v913_v59 = vmul.f32 %v3791_v26, %v3851_v46  ;;  %v975_v25 = vmul.f32 %v3246_v33, %v3810_v31  ;;  %v974_v52 = vmul.f32 %v3246_v33, %v3795_v27  ;;  %v981_v10 = vmul.f32 %v3246_v33, %v3854_v0 }
  0xf7   : > { %765 = vrot.lane.b32.xlu1 %v753_v24, %s3391_s8  ;;  %767 = vrot.lane.b32.xlu0 %v756_v6, %s3391_s8  ;;  %v887_v24 = vrot.slane %v872_v3, 3  ;;  %v827_v6 = vsel %vm620_vm1, %v825_v48, %v826_v54  ;;  %v911_v48 = vmul.f32 %v3791_v26, %v3848_v58  ;;  %v938_v49 = vsel %vm879_vm2, %v936_v41, %v937_v43 }
  0xf8   : > { %v942_v13 = vrot.slane %v912_v14, 3  ;;  %v976_v54 = vmul.f32 %v3246_v33, %v3798_v5  ;;  %v1001_v47 = vrot.slane %v975_v25, 3  ;;  %v979_v3 = vmul.f32 %v3246_v33, %v3841_v50 }
  0xf9   : > { %v3880_v32 = vsel %vm879_vm2, %v886_v18, %v887_v24  ;;  %v939_v57 = vrot.slane %v911_v48, 3  ;;  %v998_v18 = vrot.slane %v974_v52, 3  ;;  %v1008_v43 = vrot.slane %v981_v10, 3 }
  0xfa   : > { %v999_v24 = vrot.slane %v976_v54, 3  ;;  %v982_v48 = vmul.f32 %v3246_v33, %v3848_v58 }
  0xfb   : > { %830 = vrot.lane.b32.xlu1 %v815_v28, %s3392_s15  ;;  %828 = vrot.lane.b32.xlu0 %v812_v29, %s3392_s15  ;;  %v927_v28 = vrot.slane %v903_v23, 3  ;;  %v907_v29 = vmul.f32 %v3791_v26, %v3820_v45  ;;  %v943_v23 = vrot.slane %v914_v9, 3  ;;  %v940_v26 = vrot.slane %v913_v59, 3 }
  0xfd   : > { %v929_v42 = vsel %vm879_vm2, %v927_v28, %v928_v12  ;;  %v933_v15 = vrot.slane %v907_v29, 3  ;;  %v980_v28 = vmul.f32 %v3246_v33, %v3823_v8  ;;  %v944_v12 = vsel %vm879_vm2, %v942_v13, %v943_v23 }
  0xfe   : > { %v941_v51 = vsel %vm879_vm2, %v939_v57, %v940_v26  ;;  %v1010_v57 = vrot.slane %v982_v48, 3 }
  0xff   : > { %834 = vrot.lane.b32.xlu1 %v821_v19, %s3392_s15  ;;  %832 = vrot.lane.b32.xlu0 %v818_v16, %s3392_s15  ;;  %v934_v19 = vrot.slane %v909_v62, 3  ;;  %v977_v16 = vmul.f32 %v3246_v33, %v3813_v36  ;;  %v1007_v62 = vrot.slane %v979_v3, 3  ;;  %v1005_v9 = vrot.slane %v980_v28, 3 }
 0x101   : > { %v935_v22 = vsel %vm879_vm2, %v933_v15, %v934_v19  ;;  %v1002_v2 = vrot.slane %v977_v16, 3  ;;  %v983_v15 = vmul.f32 %v3246_v33, %v3874_v63  ;;  %v985_v19 = vmul.f32 %v3246_v33, %v3877_v30 }
 0x102   : > { %v1009_v13 = vsel %vm879_vm2, %v1007_v62, %v1008_v43 }
 0x103   : > { %838 = vrot.lane.b32.xlu1 %v827_v6, %s3392_s15  ;;  %836 = vrot.lane.b32.xlu0 %v824_v53, %s3392_s15  ;;  %v978_v6 = vmul.f32 %v3246_v33, %v3820_v45  ;;  %v3251_v53 = vunpack.i.h.bf16 %v3720_v56  ;;  %v1003_v29 = vsel %vm879_vm2, %v1001_v47, %v1002_v2  ;;  %v984_v56 = vmul.f32 %v3246_v33, %v3851_v46 }
 0x104   : > { %v1014_v23 = vrot.slane %v985_v19, 3 }
 0x105   : > { %v1004_v14 = vrot.slane %v978_v6, 3  ;;  %v1046_v59 = vmul.f32 %v3251_v53, %v3810_v31  ;;  %v1048_v25 = vmul.f32 %v3251_v53, %v3813_v36  ;;  %v1045_v54 = vmul.f32 %v3251_v53, %v3795_v27 }
 0x106   : > { %v1047_v33 = vmul.f32 %v3251_v53, %v3798_v5  ;;  %v1011_v26 = vrot.slane %v984_v56, 3  ;;  %v1050_v47 = vmul.f32 %v3251_v53, %v3841_v50  ;;  %v1052_v5 = vmul.f32 %v3251_v53, %v3854_v0 }
 0x107   : > { %947 = vrot.lane.b32.xlu1 %v932_v37, %s3390_s7  ;;  %945 = vrot.lane.b32.xlu0 %v929_v42, %s3390_s7  ;;  %v1000_v42 = vsel %vm879_vm2, %v998_v18, %v999_v24  ;;  %v1006_v52 = vsel %vm879_vm2, %v1004_v14, %v1005_v9  ;;  %v1072_v31 = vrot.slane %v1046_v59, 3  ;;  %v1073_v36 = vrot.slane %v1048_v25, 3 }
 0x108   : > { %v1069_v27 = vrot.slane %v1045_v54, 3  ;;  %v1070_v10 = vrot.slane %v1047_v33, 3  ;;  %v1049_v18 = vmul.f32 %v3251_v53, %v3820_v45  ;;  %v1012_v6 = vsel %vm879_vm2, %v1010_v57, %v1011_v26 }
 0x109   : > { %v1051_v28 = vmul.f32 %v3251_v53, %v3823_v8  ;;  %v1074_v50 = vsel %vm879_vm2, %v1072_v31, %v1073_v36  ;;  %v1079_v0 = vrot.slane %v1052_v5, 3  ;;  %v1054_v43 = vmul.f32 %v3251_v53, %v3874_v63 }
 0x10a   : > { %v1071_v45 = vsel %vm879_vm2, %v1069_v27, %v1070_v10  ;;  %v1056_v8 = vmul.f32 %v3251_v53, %v3877_v30  ;;  %v1053_v9 = vmul.f32 %v3251_v53, %v3848_v58 }
 0x10b   : > { %951 = vrot.lane.b32.xlu1 %v938_v49, %s3390_s7  ;;  %949 = vrot.lane.b32.xlu0 %v935_v22, %s3390_s7  ;;  %v1013_v22 = vrot.slane %v983_v15, 3  ;;  %v1076_v14 = vrot.slane %v1051_v28, 3  ;;  %v1055_v15 = vmul.f32 %v3251_v53, %v3851_v46  ;;  %v1084_v25 = vrot.slane %v1054_v43, 3 }
 0x10c   : > { %v1081_v30 = vrot.slane %v1053_v9, 3 }
 0x10d   : > { %v3907_v11 = vpop.permute.xlu1 %229  ;;  %v3909_v17 = vpop.permute.xlu0 %227  ;;  %v1015_v24 = vsel %vm879_vm2, %v1013_v22, %v1014_v23 }
 0x10f   : > { %955 = vrot.lane.b32.xlu1 %v944_v12, %s3390_s7  ;;  %953 = vrot.lane.b32.xlu0 %v941_v51, %s3390_s7  ;;  %v1078_v12 = vrot.slane %v1050_v47, 3  ;;  %v3024_v51 = vld [vmem:[%s3474_s27 + $0xc] ss:$56 sps:$4 sm:$0xff]   ;;  %v200_v47 = vld [vmem:[%s3474_s27] ss:$56 sps:$4 sm:$0xff]  }
 0x110   : > { %v1251_v19 = vunpack.c.h.bf16 %v3024_v51  ;;  %v1126_v58 = vunpack.c.l.bf16 %v3024_v51  ;;  %v345_v5 = vunpack.c.h.bf16 %v200_v47 }
 0x111   : > { %v3919_v37 = vpop.permute.xlu1 %231  ;;  %v3921_v41 = vpop.permute.xlu0 %233  ;;  %v1080_v59 = vsel %vm879_vm2, %v1078_v12, %v1079_v0 }
 0x112   : > { %v1253_v46 = vrot.slane %v1251_v19, 7  ;;  %v347_v28 = vrot.slane %v345_v5, 7 }
 0x113   : > { %1018 = vrot.lane.b32.xlu1 %v1003_v29, %s3391_s8  ;;  %1016 = vrot.lane.b32.xlu0 %v1000_v42, %s3391_s8  ;;  %v1075_v42 = vrot.slane %v1049_v18, 3  ;;  %v201_v18 = vunpack.c.l.bf16 %v200_v47 }
 0x114   : > { %v3252_v23 = vpack.i.bf16 %v1253_v46, %v1126_v58  ;;  %v349_v0 = vmul.f32 %v347_v28, %v3532_v60  ;;  %v352_v9 = vmul.f32 %v347_v28, %v3554_v7  ;;  %v241_v60 = vsel %vm239_vm3, %v3919_v37, %v3921_v41 }
 0x115   : > { %v3932_v16 = vpop.permute.xlu1 %235  ;;  %v3934_v49 = vpop.permute.xlu0 %237  ;;  %v1077_v63 = vsel %vm879_vm2, %v1075_v42, %v1076_v14  ;;  %v350_v42 = vmul.f32 %v347_v28, %v3535_v61 }
 0x116   : > { %v242_v37 = vsel %vm239_vm3, %v3932_v16, %v3934_v49 }
 0x117   : > { %1022 = vrot.lane.b32.xlu1 %v1009_v13, %s3391_s8  ;;  %1020 = vrot.lane.b32.xlu0 %v1006_v52, %s3391_s8  ;;  %v1085_v13 = vrot.slane %v1056_v8, 3  ;;  %v1082_v52 = vrot.slane %v1055_v15, 3  ;;  %v203_v8 = vmul.f32 %v201_v18, %v3500_v39  ;;  %v363_v61 = vrot.slane %v350_v42, 1 }
 0x119   : > { %v3943_v2 = vpop.permute.xlu1 %270  ;;  %v3945_v3 = vpop.permute.xlu0 %268  ;;  %v1086_v33 = vsel %vm879_vm2, %v1084_v25, %v1085_v13  ;;  %v1083_v22 = vsel %vm879_vm2, %v1081_v30, %v1082_v52  ;;  %v247_v7 = vadd.f32 %v241_v60, %v203_v8  ;;  %v354_v52 = vmul.f32 %v347_v28, %v3573_v21 }
 0x11a   : > { %v281_v43 = vsel %vm280_vm4, %v3945_v3, %v3943_v2  ;;  %v204_v2 = vmul.f32 %v201_v18, %v3509_v44 }
 0x11b   : > { %1026 = vrot.lane.b32.xlu1 %v1015_v24, %s3391_s8  ;;  %1024 = vrot.lane.b32.xlu0 %v1012_v6, %s3391_s8  ;;  %v369_v49 = vrot.slane %v354_v52, 1 }
 0x11d   : > { %v3956_v29 = vpop.permute.xlu1 %274  ;;  %v3958_v62 = vpop.permute.xlu0 %272 }
 0x11e   : > { %v282_v39 = vsel %vm280_vm4, %v3958_v62, %v3956_v29  ;;  %v248_v62 = vadd.f32 %v242_v37, %v204_v2 }
 0x11f   : > { %1089 = vrot.lane.b32.xlu1 %v1074_v50, %s3392_s15  ;;  %1087 = vrot.lane.b32.xlu0 %v1071_v45, %s3392_s15  ;;  %v202_v50 = vmul.f32 %v201_v18, %v3496_v35  ;;  %v240_v45 = vsel %vm239_vm3, %v3909_v17, %v3907_v11  ;;  %v351_v35 = vmul.f32 %v347_v28, %v3549_v4  ;;  %v362_v11 = vrot.slane %v349_v0, 1 }
 0x120   : > { %v353_v4 = vmul.f32 %v347_v28, %v3570_v20  ;;  %v288_v58 = vadd.f32 %v282_v39, %v247_v7 }
 0x121   : > { %v3967_v48 = vpop.permute.xlu1 %278  ;;  %v3969_v56 = vpop.permute.xlu0 %276  ;;  %v246_v14 = vadd.f32 %v240_v45, %v202_v50  ;;  %v365_v25 = vrot.slane %v351_v35, 1  ;;  %v364_v41 = vsel %vm361_vm0, %v362_v11, %v363_v61 }
 0x122   : > { %v283_v20 = vsel %vm280_vm4, %v3969_v56, %v3967_v48 }
 0x123   : > { %1093 = vrot.lane.b32.xlu1 %v1080_v59, %s3392_s15  ;;  %1091 = vrot.lane.b32.xlu0 %v1077_v63, %s3392_s15  ;;  %v287_v59 = vadd.f32 %v281_v43, %v246_v14  ;;  %v366_v63 = vrot.slane %v352_v9, 1 }
 0x125   : > { %v310_v53 = vpop.permute.xlu1 %309  ;;  %v312_v54 = vpop.permute.xlu0 %311  ;;  %v367_v16 = vsel %vm361_vm0, %v365_v25, %v366_v63 }
 0x126   : > { %v322_v17 = vsel %vm321_vm5, %v310_v53, %v312_v54  ;;  %v368_v54 = vrot.slane %v353_v4, 1 }
 0x127   : > { %1097 = vrot.lane.b32.xlu1 %v1086_v33, %s3392_s15  ;;  %1095 = vrot.lane.b32.xlu0 %v1083_v22, %s3392_s15  ;;  %v328_v3 = vadd.f32 %v322_v17, %v287_v59 }
 0x128   : > { %v370_v18 = vsel %vm361_vm0, %v368_v54, %v369_v49 }
 0x129   : > { %v314_v57 = vpop.permute.xlu1 %313  ;;  %v316_v26 = vpop.permute.xlu0 %315  ;;  %v374_v46 = vadd.f32 %v364_v41, %v328_v3 }
 0x12a   : > { %v323_v44 = vsel %vm321_vm5, %v314_v57, %v316_v26  ;;  %v289_v57 = vadd.f32 %v283_v20, %v248_v62 }
 0x12b   : > { %3253 = vrot.lane.b32.xlu0 %v3252_v23, %s3387_s28  ;;  %v329_v53 = vadd.f32 %v323_v44, %v288_v58 }
 0x12d   : > { %v318_v31 = vpop.permute.xlu1 %317  ;;  %v320_v36 = vpop.permute.xlu0 %319  ;;  %v375_v48 = vadd.f32 %v367_v16, %v329_v53 }
 0x12e   : > { %v324_v23 = vsel %vm321_vm5, %v318_v31, %v320_v36 }
 0x12f   : > { %v330_v56 = vadd.f32 %v324_v23, %v289_v57 }
 0x131   : > { %v428_v27 = vpop.permute.xlu1 %427  ;;  %v430_v10 = vpop.permute.xlu0 %429  ;;  %v376_v36 = vadd.f32 %v370_v18, %v330_v56 }
 0x132   : > { %v439_v29 = vsel %vm239_vm3, %v428_v27, %v430_v10 }
 0x133   : > { %v445_v26 = vadd.f32 %v439_v29, %v374_v46 }
 0x135   : > { %v432_v24 = vpop.permute.xlu1 %431  ;;  %v434_v6 = vpop.permute.xlu0 %433 }
 0x136   : > { %v440_v47 = vsel %vm239_vm3, %v432_v24, %v434_v6 }
 0x137   : > { %v446_v45 = vadd.f32 %v440_v47, %v375_v48 }
 0x139   : > { %v436_v12 = vpop.permute.xlu1 %435  ;;  %v438_v51 = vpop.permute.xlu0 %437 }
 0x13a   : > { %v441_v31 = vsel %vm239_vm3, %v436_v12, %v438_v51 }
 0x13b   : > { %v447_v35 = vadd.f32 %v441_v31, %v376_v36 }
 0x13d   : > { %v499_v15 = vpop.permute.xlu1 %498  ;;  %v501_v19 = vpop.permute.xlu0 %500 }
 0x13e   : > { %v510_v21 = vsel %vm280_vm4, %v499_v15, %v501_v19 }
 0x13f   : > { %v516_v27 = vadd.f32 %v510_v21, %v445_v26 }
 0x141   : > { %v503_v13 = vpop.permute.xlu1 %502  ;;  %v505_v30 = vpop.permute.xlu0 %504 }
 0x142   : > { %v511_v28 = vsel %vm280_vm4, %v503_v13, %v505_v30 }
 0x143   : > { %v517_v42 = vadd.f32 %v511_v28, %v446_v45 }
 0x145   : > { %v507_v33 = vpop.permute.xlu1 %506  ;;  %v509_v22 = vpop.permute.xlu0 %508 }
 0x146   : > { %v512_v6 = vsel %vm280_vm4, %v507_v33, %v509_v22 }
 0x147   : > { %v518_v15 = vadd.f32 %v512_v6, %v447_v35  ;;  %v3020_v35 = vld [vmem:[%s3492_s6 + $0x88] sm:$0xff] }
 0x149   : > { %v570_v10 = vpop.permute.xlu1 %569  ;;  %v572_v5 = vpop.permute.xlu0 %571 }
 0x14a   : > { %v581_v50 = vsel %vm321_vm5, %v570_v10, %v572_v5 }
 0x14b   : > { %v587_v0 = vadd.f32 %v581_v50, %v516_v27 }
 0x14d   : > { %v574_v43 = vpop.permute.xlu1 %573  ;;  %v576_v14 = vpop.permute.xlu0 %575  ;;  %v633_v24 = vadd.f32 %v3769_v38, %v587_v0 }
 0x14e   : > { %v582_v8 = vsel %vm321_vm5, %v574_v43, %v576_v14  ;;  %v4064_v14 = vld [vmem:[%s3492_s6 + $0x60] sm:$0xff] }
 0x14f   : > { %v588_v9 = vadd.f32 %v582_v8, %v517_v42  ;;  %v3018_v42 = vld [vmem:[%s3492_s6 + $0x68] sm:$0xff] }
 0x151   : > { %v578_v19 = vpop.permute.xlu1 %577  ;;  %v580_v60 = vpop.permute.xlu0 %579  ;;  %v634_v11 = vadd.f32 %v3772_v55, %v588_v9 }
 0x152   : > { %v583_v61 = vsel %vm321_vm5, %v578_v19, %v580_v60 }
 0x153   : > { %v589_v12 = vadd.f32 %v583_v61, %v518_v15  ;;  %v4072_v15 = vld [vmem:[%s3492_s6 + $0x80] sm:$0xff] }
 0x155   : > { %v689_v51 = vpop.permute.xlu1 %688  ;;  %v687_v17 = vpop.permute.xlu0 %686  ;;  %v635_v59 = vadd.f32 %v3775_v40, %v589_v12 }
 0x156   : > { %v698_v13 = vsel %vm239_vm3, %v687_v17, %v689_v51  ;;  %v4079_v51 = vld [vmem:[%s3492_s6 + $0xa0] sm:$0xff] }
 0x157   : > { %v704_v41 = vadd.f32 %v698_v13, %v633_v24  ;;  %v3025_v24 = vld [vmem:[%s3474_s27 + $0x14] ss:$56 sps:$4 sm:$0xff]  }
 0x158   : > { %v1322_v9 = vunpack.c.h.bf16 %v3025_v24  ;;  %v1166_v61 = vunpack.c.l.bf16 %v3025_v24 }
 0x159   : > { %v693_v2 = vpop.permute.xlu1 %692  ;;  %v691_v38 = vpop.permute.xlu0 %690 }
 0x15a   : > { %v699_v44 = vsel %vm239_vm3, %v691_v38, %v693_v2  ;;  %v1324_v12 = vrot.slane %v1322_v9, 7 }
 0x15b   : > { %v705_v62 = vadd.f32 %v699_v44, %v634_v11  ;;  %v3022_v11 = vld [vmem:[%s3492_s6 + $0xa8] sm:$0xff] }
 0x15c   : > { %v3257_v2 = vpack.i.bf16 %v1324_v12, %v1166_v61  ;;  %v4141_v61 = vld [vmem:[%s3492_s6 + $0xa0] sm:$0xfe]  ;;  %v4144_v12 = vld [vmem:[%s3492_s6 + $0xb0] sm:$0x1] }
 0x15d   : > { %v697_v39 = vpop.permute.xlu1 %696  ;;  %v695_v4 = vpop.permute.xlu0 %694  ;;  %5360 = vst [vmem:[#allocation9_spill] sm:$0xff] %v4141_v61  ;;  %5361 = vst [vmem:[#allocation10_spill] sm:$0xff] %v4144_v12 }
 0x15e   : > { %v700_v53 = vsel %vm239_vm3, %v695_v4, %v697_v39 }
 0x15f   : > { %v706_v21 = vadd.f32 %v700_v53, %v635_v59  ;;  %v4116_v53 = vld [vmem:[%s3492_s6 + $0x70] sm:$0x1] }
 0x161   : > { %v758_v7 = vpop.permute.xlu1 %757  ;;  %v760_v3 = vpop.permute.xlu0 %759 }
 0x162   : > { %v769_v55 = vsel %vm280_vm4, %v758_v7, %v760_v3 }
 0x163   : > { %v775_v52 = vadd.f32 %v769_v55, %v704_v41 }
 0x165   : > { %v762_v25 = vpop.permute.xlu1 %761  ;;  %v764_v63 = vpop.permute.xlu0 %763 }
 0x166   : > { %v770_v20 = vsel %vm280_vm4, %v762_v25, %v764_v63 }
 0x167   : > { %v776_v54 = vadd.f32 %v770_v20, %v705_v62  ;;  %v3029_v62 = vld [vmem:[%s3492_s6 + $0x78] sm:$0x1] }
 0x169   : > { %v766_v30 = vpop.permute.xlu1 %765  ;;  %v768_v37 = vpop.permute.xlu0 %767 }
 0x16a   : > { %v771_v49 = vsel %vm280_vm4, %v766_v30, %v768_v37 }
 0x16b   : > { %v777_v26 = vadd.f32 %v771_v49, %v706_v21 }
 0x16d   : > { %v831_v58 = vpop.permute.xlu1 %830  ;;  %v829_v40 = vpop.permute.xlu0 %828 }
 0x16e   : > { %v840_v29 = vsel %vm321_vm5, %v829_v40, %v831_v58 }
 0x16f   : > { %v846_v46 = vadd.f32 %v840_v29, %v775_v52  ;;  %v3027_v29 = vld [vmem:[%s3492_s6 + $0x68] sm:$0xfe] }
 0x171   : > { %v835_v33 = vpop.permute.xlu1 %834  ;;  %v833_v22 = vpop.permute.xlu0 %832  ;;  %v4033_v16 = vadd.f32 %v3828_v34, %v846_v46  ;;  %v4113_v46 = vld [vmem:[%s3492_s6 + $0x60] sm:$0xfe] }
 0x172   : > { %v841_v23 = vsel %vm321_vm5, %v833_v22, %v835_v33  ;;  %v3031_v22 = vld [vmem:[%s3492_s6 + $0x88] sm:$0xfe] }
 0x173   : > { %v847_v57 = vadd.f32 %v841_v23, %v776_v54 }
 0x175   : > { %v839_v47 = vpop.permute.xlu1 %838  ;;  %v837_v48 = vpop.permute.xlu0 %836  ;;  %v4038_v56 = vadd.f32 %v3857_v1, %v847_v57 }
 0x176   : > { %v842_v27 = vsel %vm321_vm5, %v837_v48, %v839_v47  ;;  %v4126_v47 = vld [vmem:[%s3492_s6 + $0x80] sm:$0xfe] }
 0x177   : > { %v848_v10 = vadd.f32 %v842_v27, %v777_v26  ;;  %v3033_v26 = vld [vmem:[%s3492_s6 + $0x98] sm:$0x1]  ;;  %5358 = vst [vmem:[#allocation7_spill] sm:$0xff] %v4126_v47  ;;  %v4131_v27 = vld [vmem:[%s3492_s6 + $0x90] sm:$0x1] }
 0x178   : > { %5359 = vst [vmem:[#allocation8_spill] sm:$0xff] %v4131_v27 }
 0x179   : > { %v4041_v34 = vpop.permute.xlu0 %945  ;;  %v4044_v5 = vadd.f32 %v3880_v32, %v848_v10  ;;  %v4085_v38 = vpop.permute.xlu1 %947 }
 0x17d   : > { %v4046_v18 = vpop.permute.xlu0 %949  ;;  %v4087_v39 = vpop.permute.xlu1 %951 }
 0x181   : > { %v4048_v28 = vpop.permute.xlu0 %953  ;;  %v4089_v4 = vpop.permute.xlu1 %955 }
 0x185   : > { %v4050_v50 = vpop.permute.xlu0 %1016  ;;  %v4091_v7 = vpop.permute.xlu1 %1018 }
 0x189   : > { %v4052_v45 = vpop.permute.xlu0 %1020  ;;  %v4093_v3 = vpop.permute.xlu1 %1022 }
 0x18d   : > { %v4054_v1 = vpop.permute.xlu0 %1024  ;;  %v4095_v25 = vpop.permute.xlu1 %1026 }
 0x191   : > { %v4056_v0 = vpop.permute.xlu0 %1087  ;;  %v4097_v63 = vpop.permute.xlu1 %1089 }
 0x195   : > { %v4058_v31 = vpop.permute.xlu0 %1091  ;;  %v4099_v13 = vpop.permute.xlu1 %1093 }
 0x199   : > { %v4060_v36 = vpop.permute.xlu0 %1095  ;;  %v4101_v30 = vpop.permute.xlu1 %1097 }
 0x19d   : > { %v3254_v32 = vpop.permute.xlu0 %3253 }
 0x19e   : > { %v3255_v43 = vunpack.i.l.bf16 %v3254_v32  ;;  %v3256_v58 = vunpack.i.h.bf16 %v3254_v32 }
 0x1a0   : > { %v1132_v6 = vmul.f32 %v3255_v43, %v3018_v42  ;;  %v1131_v8 = vmul.f32 %v3255_v43, %v4064_v14  ;;  %v1134_v19 = vmul.f32 %v3255_v43, %v3020_v35  ;;  %v1133_v60 = vmul.f32 %v3255_v43, %v4072_v15 }
 0x1a1   : > { %v1136_v17 = vmul.f32 %v3255_v43, %v3022_v11  ;;  %v1135_v59 = vmul.f32 %v3255_v43, %v4079_v51  ;;  %v1258_v54 = vmul.f32 %v3256_v58, %v3027_v29  ;;  %v1260_v33 = vmul.f32 %v3256_v58, %v3029_v62 }
 0x1a2   : > { %1145 = vrot.lane.b32.xlu0 %v1132_v6, %s3390_s7  ;;  %1143 = vrot.lane.b32.xlu1 %v1131_v8, %s3390_s7  ;;  %v1257_v21 = vmul.f32 %v3256_v58, %v4113_v46  ;;  %v1259_v57 = vmul.f32 %v3256_v58, %v4116_v53  ;;  %v1262_v48 = vmul.f32 %v3256_v58, %v3031_v22 }
 0x1a3   : > { %v1284_v10 = vrot.slane %v1258_v54, 1  ;;  %v1285_v32 = vrot.slane %v1260_v33, 1  ;;  %v1261_v43 = vmul.f32 %v3256_v58, %v4126_v47  ;;  %v1263_v9 = vmul.f32 %v3256_v58, %v4131_v27 }
 0x1a4   : > { %v1281_v8 = vrot.slane %v1257_v21, 1 }
 0x1a5   : > { %v1288_v54 = vrot.slane %v1263_v9, 1 }
 0x1a6   : > { %1149 = vrot.lane.b32.xlu0 %v1134_v19, %s3390_s7  ;;  %1147 = vrot.lane.b32.xlu1 %v1133_v60, %s3390_s7  ;;  %v3035_v19 = vld [vmem:[%s3492_s6 + $0xa8] sm:$0xfe]  ;;  %v3037_v60 = vld [vmem:[%s3492_s6 + $0xb8] sm:$0x1] }
 0x1a7   : > { %v1268_v33 = vmul.f32 %v3256_v58, %v3037_v60 }
 0x1aa   : > { %1153 = vrot.lane.b32.xlu0 %v1136_v17, %s3390_s7  ;;  %1151 = vrot.lane.b32.xlu1 %v1135_v59, %s3390_s7  ;;  %v1286_v59 = vsel %vm361_vm0, %v1284_v10, %v1285_v32 }
 0x1ae   : > { %3258 = vrot.lane.b32.xlu1 %v3257_v2, %s3388_s29 }
 0x214   : > { %v4103_v37 = vpop.permute.xlu1 %1143 }
 0x218   : > { %v4105_v55 = vpop.permute.xlu1 %1147 }
 0x219   : > { %5356 = vst [vmem:[#allocation5_spill] sm:$0xff] %v4105_v55 }
 0x21c   : > { %v4107_v41 = vpop.permute.xlu1 %1151 }
 0x21d   : > { %5357 = vst [vmem:[#allocation6_spill] sm:$0xff] %v4107_v41 }
 0x220   : > { %v3259_v44 = vpop.permute.xlu1 %3258 }
 0x221   : > { %v3260_v52 = vunpack.i.l.bf16 %v3259_v44  ;;  %v3261_v17 = vunpack.i.h.bf16 %v3259_v44 }
 0x223   : > { %v1172_v40 = vmul.f32 %v3260_v52, %v3018_v42  ;;  %v1171_v20 = vmul.f32 %v3260_v52, %v4064_v14  ;;  %v1174_v49 = vmul.f32 %v3260_v52, %v3020_v35  ;;  %v1173_v23 = vmul.f32 %v3260_v52, %v4072_v15 }
 0x224   : > { %v1264_v42 = vmul.f32 %v3256_v58, %v3033_v26  ;;  %v1176_v24 = vmul.f32 %v3260_v52, %v3022_v11  ;;  %v1175_v6 = vmul.f32 %v3260_v52, %v4079_v51  ;;  %v1282_v35 = vrot.slane %v1259_v57, 1 }
 0x225   : > { %1185 = vrot.lane.b32.xlu1 %v1172_v40, %s3391_s8  ;;  %1183 = vrot.lane.b32.xlu0 %v1171_v20, %s3391_s8  ;;  %v1290_v11 = vrot.slane %v1262_v48, 1  ;;  %v1287_v40 = vrot.slane %v1261_v43, 1  ;;  %v1266_v20 = vmul.f32 %v3256_v58, %v3035_v19  ;;  %v1329_v21 = vmul.f32 %v3261_v17, %v3027_v29 }
 0x226   : > { %v1283_v2 = vsel %vm361_vm0, %v1281_v8, %v1282_v35  ;;  %v1291_v52 = vrot.slane %v1264_v42, 1  ;;  %v1331_v44 = vmul.f32 %v3261_v17, %v3029_v62  ;;  %v1328_v10 = vmul.f32 %v3261_v17, %v4113_v46 }
 0x227   : > { %v1296_v48 = vrot.slane %v1266_v20, 1  ;;  %v1330_v32 = vmul.f32 %v3261_v17, %v4116_v53  ;;  %v1289_v42 = vsel %vm361_vm0, %v1287_v40, %v1288_v54  ;;  %v1297_v43 = vrot.slane %v1268_v33, 1 }
 0x228   : > { %v1292_v57 = vsel %vm361_vm0, %v1290_v11, %v1291_v52  ;;  %v1356_v29 = vrot.slane %v1331_v44, 1  ;;  %v1333_v62 = vmul.f32 %v3261_v17, %v3031_v22  ;;  %v1352_v8 = vrot.slane %v1328_v10, 1  ;;  %v4166_v22 = vld [vmem:[%s3474_s27 + $0x3c] ss:$120 sps:$4 sm:$0xff]  }
 0x229   : > { %1189 = vrot.lane.b32.xlu1 %v1174_v49, %s3391_s8  ;;  %1187 = vrot.lane.b32.xlu0 %v1173_v23, %s3391_s8  ;;  %v1265_v49 = vmul.f32 %v3256_v58, %v4141_v61  ;;  %v1267_v23 = vmul.f32 %v3256_v58, %v4144_v12  ;;  %v1355_v58 = vrot.slane %v1329_v21, 1  ;;  %v1353_v35 = vrot.slane %v1330_v32, 1 }
 0x22a   : > { %v1335_v9 = vmul.f32 %v3261_v17, %v3033_v26  ;;  %v1298_v11 = vsel %vm361_vm0, %v1296_v48, %v1297_v43  ;;  %v1334_v52 = vmul.f32 %v3261_v17, %v4131_v27  ;;  %v1361_v20 = vrot.slane %v1333_v62, 1 }
 0x22b   : > { %v1357_v40 = vsel %vm361_vm0, %v1355_v58, %v1356_v29  ;;  %v1354_v54 = vsel %vm361_vm0, %v1352_v8, %v1353_v35  ;;  %v1339_v44 = vmul.f32 %v3261_v17, %v3037_v60  ;;  %v1338_v48 = vmul.f32 %v3261_v17, %v4144_v12  ;;  %v4187_v35 = vpop.permute.xlu0 %1145 }
 0x22c   : > { %v1362_v26 = vrot.slane %v1335_v9, 1  ;;  %v1359_v21 = vrot.slane %v1334_v52, 1  ;;  %v1625_v32 = vunpack.c.h.bf16 %v4166_v22 }
 0x22d   : > { %1193 = vrot.lane.b32.xlu1 %v1176_v24, %s3391_s8  ;;  %1191 = vrot.lane.b32.xlu0 %v1175_v6, %s3391_s8  ;;  %v1293_v24 = vrot.slane %v1265_v49, 1  ;;  %v1294_v6 = vrot.slane %v1267_v23, 1  ;;  %v1337_v49 = vmul.f32 %v3261_v17, %v3035_v19  ;;  %v4170_v23 = vld [vmem:[%s3474_s27 + $0x4] ss:$120 sps:$4 sm:$0xff]   ;;  %v1365_v60 = vrot.slane %v1338_v48, 1 }
 0x22e   : > { %v1438_v10 = vunpack.c.h.bf16 %v4170_v23  ;;  %v1627_v58 = vrot.slane %v1625_v32, 5  ;;  %v4224_v32 = vld [vmem:[%s3492_s6 + $0x98] sm:$0x3] }
 0x22f   : > { %v1367_v43 = vrot.slane %v1337_v49, 1  ;;  %v4189_v9 = vpop.permute.xlu0 %1149 }
 0x230   : > { %5362 = vst [vmem:[#allocation11_spill] sm:$0xff] %v4189_v9  ;;  %v4258_v9 = vld [vmem:[%s3492_s6 + $0xa0] sm:$0xfc] }
 0x231   : > { %1301 = vrot.lane.b32.xlu1 %v1286_v59, %s3390_s7  ;;  %1299 = vrot.lane.b32.xlu0 %v1283_v2, %s3390_s7  ;;  %v1332_v59 = vmul.f32 %v3261_v17, %v4126_v47  ;;  %v1295_v2 = vsel %vm361_vm0, %v1293_v24, %v1294_v6  ;;  %v1368_v24 = vrot.slane %v1339_v44, 1  ;;  %v4214_v44 = vld [vmem:[%s3492_s6 + $0x68] sm:$0xfc]  ;;  %5377 = vst [vmem:[#allocation26_spill] sm:$0xff] %v4258_v9 }
 0x233   : > { %v1358_v33 = vrot.slane %v1332_v59, 1  ;;  %v1369_v29 = vsel %vm361_vm0, %v1367_v43, %v1368_v24  ;;  %v4191_v59 = vpop.permute.xlu0 %1153  ;;  %v4230_v43 = vld [vmem:[%s3492_s6 + $0x70] sm:$0x3] }
 0x234   : > { %5363 = vst [vmem:[#allocation12_spill] sm:$0xff] %v4191_v59  ;;  %5374 = vst [vmem:[#allocation23_spill] sm:$0xff] %v4230_v43 }
 0x235   : > { %1305 = vrot.lane.b32.xlu1 %v1292_v57, %s3390_s7  ;;  %1303 = vrot.lane.b32.xlu0 %v1289_v42, %s3390_s7  ;;  %v1336_v57 = vmul.f32 %v3261_v17, %v4141_v61  ;;  %v1363_v42 = vsel %vm361_vm0, %v1361_v20, %v1362_v26  ;;  %v1360_v19 = vsel %vm361_vm0, %v1358_v33, %v1359_v21  ;;  %v1440_v17 = vrot.slane %v1438_v10, 6  ;;  %v4221_v10 = vld [vmem:[%s3492_s6 + $0x88] sm:$0xfc] }
 0x237   : > { %v1364_v6 = vrot.slane %v1336_v57, 1  ;;  %v3262_v8 = vpack.i.bf16 %v1627_v58, %v1440_v17  ;;  %v4217_v57 = vld [vmem:[%s3492_s6 + $0x78] sm:$0x3]  ;;  %v4237_v17 = vld [vmem:[%s3492_s6 + $0x80] sm:$0xfc] }
 0x238   : > { %5375 = vst [vmem:[#allocation24_spill] sm:$0xff] %v4237_v17  ;;  %v4240_v58 = vld [vmem:[%s3492_s6 + $0x90] sm:$0x3] }
 0x239   : > { %1309 = vrot.lane.b32.xlu1 %v1298_v11, %s3390_s7  ;;  %1307 = vrot.lane.b32.xlu0 %v1295_v2, %s3390_s7  ;;  %v1366_v62 = vsel %vm361_vm0, %v1364_v6, %v1365_v60  ;;  %5376 = vst [vmem:[#allocation25_spill] sm:$0xff] %v4240_v58 }
 0x23d   : > { %1372 = vrot.lane.b32.xlu1 %v1357_v40, %s3391_s8  ;;  %1370 = vrot.lane.b32.xlu0 %v1354_v54, %s3391_s8 }
 0x241   : > { %1376 = vrot.lane.b32.xlu1 %v1363_v42, %s3391_s8  ;;  %1374 = vrot.lane.b32.xlu0 %v1360_v19, %s3391_s8  ;;  %v4227_v42 = vld [vmem:[%s3492_s6 + $0x60] sm:$0xfc] }
 0x242   : > { %5373 = vst [vmem:[#allocation22_spill] sm:$0xff] %v4227_v42 }
 0x245   : > { %1380 = vrot.lane.b32.xlu1 %v1369_v29, %s3391_s8  ;;  %1378 = vrot.lane.b32.xlu0 %v1366_v62, %s3391_s8 }
 0x249   : > { %3263 = vrot.lane.b32.xlu0 %v3262_v8, %s3387_s28 }
 0x297   : > { %v4193_v11 = vpop.permute.xlu0 %1183 }
 0x298   : > { %5364 = vst [vmem:[#allocation13_spill] sm:$0xff] %v4193_v11 }
 0x29b   : > { %v4195_v2 = vpop.permute.xlu0 %1187 }
 0x29c   : > { %5365 = vst [vmem:[#allocation14_spill] sm:$0xff] %v4195_v2  ;;  %v3055_v2 = vld [vmem:[%s3474_s27 + $0x84] ss:$56 sps:$4 sm:$0xff]  }
 0x29f   : > { %v4197_v52 = vpop.permute.xlu0 %1191 }
 0x2a0   : > { %5366 = vst [vmem:[#allocation15_spill] sm:$0xff] %v4197_v52 }
 0x2a3   : > { %v4199_v40 = vpop.permute.xlu0 %1299 }
 0x2a4   : > { %5367 = vst [vmem:[#allocation16_spill] sm:$0xff] %v4199_v40 }
 0x2a7   : > { %v4201_v20 = vpop.permute.xlu0 %1303 }
 0x2a8   : > { %5368 = vst [vmem:[#allocation17_spill] sm:$0xff] %v4201_v20 }
 0x2ab   : > { %v4203_v54 = vpop.permute.xlu0 %1307 }
 0x2ac   : > { %5369 = vst [vmem:[#allocation18_spill] sm:$0xff] %v4203_v54  ;;  %v4250_v54 = vld [vmem:[%s3492_s6 + $0xb8] sm:$0x3] }
 0x2af   : > { %v4205_v26 = vpop.permute.xlu0 %1370 }
 0x2b0   : > { %5370 = vst [vmem:[#allocation19_spill] sm:$0xff] %v4205_v26 }
 0x2b3   : > { %v4207_v33 = vpop.permute.xlu0 %1374 }
 0x2b4   : > { %5371 = vst [vmem:[#allocation20_spill] sm:$0xff] %v4207_v33  ;;  %v4247_v33 = vld [vmem:[%s3492_s6 + $0xa8] sm:$0xfc] }
 0x2b7   : > { %v4209_v49 = vpop.permute.xlu0 %1378 }
 0x2b8   : > { %5372 = vst [vmem:[#allocation21_spill] sm:$0xff] %v4209_v49 }
 0x2bb   : > { %v4211_v21 = vpop.permute.xlu0 %3263 }
 0x2bc   : > { %v3265_v48 = vunpack.i.l.bf16 %v4211_v21 }
 0x2be   : > { %v1445_v19 = vmul.f32 %v3265_v48, %v4214_v44  ;;  %v1447_v24 = vmul.f32 %v3265_v48, %v4217_v57  ;;  %v1444_v6 = vmul.f32 %v3265_v48, %v4227_v42  ;;  %v1446_v60 = vmul.f32 %v3265_v48, %v4230_v43 }
 0x2bf   : > { %v1449_v29 = vmul.f32 %v3265_v48, %v4221_v10  ;;  %v1451_v62 = vmul.f32 %v3265_v48, %v4224_v32  ;;  %v1448_v8 = vmul.f32 %v3265_v48, %v4237_v17  ;;  %v1450_v49 = vmul.f32 %v3265_v48, %v4240_v58 }
 0x2c0   : > { %v1471_v20 = vrot.slane %v1445_v19, 2  ;;  %v1472_v26 = vrot.slane %v1447_v24, 2  ;;  %v1468_v40 = vrot.slane %v1444_v6, 2  ;;  %v1469_v52 = vrot.slane %v1446_v60, 2  ;;  %v4263_v19 = vld [vmem:[%s3492_s6 + $0xb0] sm:$0x3] }
 0x2c1   : > { %v1477_v41 = vrot.slane %v1449_v29, 2  ;;  %v1478_v59 = vrot.slane %v1451_v62, 2  ;;  %v1474_v12 = vrot.slane %v1448_v8, 2  ;;  %v1475_v61 = vrot.slane %v1450_v49, 2  ;;  %5378 = vst [vmem:[#allocation27_spill] sm:$0xff] %v4263_v19 }
 0x2c2   : > { %v1473_v11 = vsel %vm620_vm1, %v1471_v20, %v1472_v26  ;;  %v1470_v27 = vsel %vm620_vm1, %v1468_v40, %v1469_v52  ;;  %v1453_v47 = vmul.f32 %v3265_v48, %v4247_v33  ;;  %v1455_v55 = vmul.f32 %v3265_v48, %v4250_v54 }
 0x2c3   : > { %1488 = vrot.lane.b32.xlu0 %v1473_v11, %s3390_s7  ;;  %1486 = vrot.lane.b32.xlu1 %v1470_v27, %s3390_s7  ;;  %v1452_v24 = vmul.f32 %v3265_v48, %v4258_v9  ;;  %v1509_v6 = vunpack.c.l.bf16 %v3055_v2  ;;  %v1696_v49 = vunpack.c.h.bf16 %v3055_v2  ;;  %v1454_v20 = vmul.f32 %v3265_v48, %v4263_v19 }
 0x2c4   : > { %v1479_v52 = vsel %vm620_vm1, %v1477_v41, %v1478_v59  ;;  %v1476_v40 = vsel %vm620_vm1, %v1474_v12, %v1475_v61  ;;  %v1483_v26 = vrot.slane %v1453_v47, 2  ;;  %v1484_v60 = vrot.slane %v1455_v55, 2  ;;  %v4276_v55 = vpop.permute.xlu1 %1185 }
 0x2c5   : > { %v1480_v29 = vrot.slane %v1452_v24, 2  ;;  %v1481_v62 = vrot.slane %v1454_v20, 2  ;;  %v1511_v27 = vrot.slane %v1509_v6, 6  ;;  %v1698_v11 = vrot.slane %v1696_v49, 5  ;;  %5379 = vst [vmem:[#allocation28_spill] sm:$0xff] %v4276_v55 }
 0x2c6   : > { %v1485_v8 = vsel %vm620_vm1, %v1483_v26, %v1484_v60 }
 0x2c7   : > { %1492 = vrot.lane.b32.xlu0 %v1479_v52, %s3390_s7  ;;  %1490 = vrot.lane.b32.xlu1 %v1476_v40, %s3390_s7  ;;  %v1482_v2 = vsel %vm620_vm1, %v1480_v29, %v1481_v62  ;;  %v3267_v41 = vpack.i.bf16 %v1698_v11, %v1511_v27  ;;  %v4301_v29 = vunpack.i.h.bf16 %v4211_v21 }
 0x2c8   : > { %v4278_v47 = vpop.permute.xlu1 %1189 }
 0x2c9   : > { %5380 = vst [vmem:[#allocation29_spill] sm:$0xff] %v4278_v47 }
 0x2cb   : > { %1496 = vrot.lane.b32.xlu0 %v1485_v8, %s3390_s7  ;;  %1494 = vrot.lane.b32.xlu1 %v1482_v2, %s3390_s7 }
 0x2cc   : > { %v4280_v61 = vpop.permute.xlu1 %1193 }
 0x2cd   : > { %5381 = vst [vmem:[#allocation30_spill] sm:$0xff] %v4280_v61  ;;  %v3067_v61 = vld [vmem:[%s3492_s6 + $0xb8] sm:$0x7] }
 0x2ce   : > { %v1642_v47 = vmul.f32 %v4301_v29, %v3067_v61 }
 0x2cf   : > { %3268 = vrot.lane.b32.xlu1 %v3267_v41, %s3388_s29 }
 0x2d0   : > { %v4282_v12 = vpop.permute.xlu1 %1301 }
 0x2d1   : > { %5382 = vst [vmem:[#allocation31_spill] sm:$0xff] %v4282_v12  ;;  %v3059_v12 = vld [vmem:[%s3492_s6 + $0x78] sm:$0x7] }
 0x2d4   : > { %v4284_v59 = vpop.permute.xlu1 %1305 }
 0x2d5   : > { %5383 = vst [vmem:[#allocation32_spill] sm:$0xff] %v4284_v59 }
 0x2d8   : > { %v4286_v48 = vpop.permute.xlu1 %1309 }
 0x2d9   : > { %5384 = vst [vmem:[#allocation33_spill] sm:$0xff] %v4286_v48 }
 0x2dc   : > { %v4288_v24 = vpop.permute.xlu1 %1372 }
 0x2dd   : > { %5385 = vst [vmem:[#allocation34_spill] sm:$0xff] %v4288_v24 }
 0x2e0   : > { %v4290_v6 = vpop.permute.xlu1 %1376 }
 0x2e1   : > { %5386 = vst [vmem:[#allocation35_spill] sm:$0xff] %v4290_v6 }
 0x2e4   : > { %v4292_v49 = vpop.permute.xlu1 %1380 }
 0x2e5   : > { %5387 = vst [vmem:[#allocation36_spill] sm:$0xff] %v4292_v49 }
 0x335   : > { %v4294_v20 = vpop.permute.xlu1 %1486 }
 0x336   : > { %5388 = vst [vmem:[#allocation37_spill] sm:$0xff] %v4294_v20 }
 0x339   : > { %v4296_v52 = vpop.permute.xlu1 %1490 }
 0x33a   : > { %5389 = vst [vmem:[#allocation38_spill] sm:$0xff] %v4296_v52 }
 0x33d   : > { %v4298_v40 = vpop.permute.xlu1 %1494 }
 0x33e   : > { %5390 = vst [vmem:[#allocation39_spill] sm:$0xff] %v4298_v40 }
 0x341   : > { %v3269_v26 = vpop.permute.xlu1 %3268 }
 0x342   : > { %v3270_v60 = vunpack.i.l.bf16 %v3269_v26 }
 0x344   : > { %v1516_v62 = vmul.f32 %v3270_v60, %v4214_v44  ;;  %v1518_v27 = vmul.f32 %v3270_v60, %v4217_v57  ;;  %v1515_v11 = vmul.f32 %v3270_v60, %v4227_v42  ;;  %v1517_v8 = vmul.f32 %v3270_v60, %v4230_v43  ;;  %v3057_v57 = vld [vmem:[%s3492_s6 + $0x68] sm:$0xf8] }
 0x345   : > { %v1520_v2 = vmul.f32 %v3270_v60, %v4221_v10  ;;  %v1522_v41 = vmul.f32 %v3270_v60, %v4224_v32  ;;  %v1519_v40 = vmul.f32 %v3270_v60, %v4237_v17  ;;  %v1521_v52 = vmul.f32 %v3270_v60, %v4240_v58 }
 0x346   : > { %v1542_v21 = vrot.slane %v1516_v62, 2  ;;  %v1543_v49 = vrot.slane %v1518_v27, 2  ;;  %v1539_v44 = vrot.slane %v1515_v11, 2  ;;  %v1540_v20 = vrot.slane %v1517_v8, 2  ;;  %v4318_v62 = vld [vmem:[%s3492_s6 + $0x60] sm:$0xf8] }
 0x347   : > { %v1548_v6 = vrot.slane %v1520_v2, 2  ;;  %v1549_v48 = vrot.slane %v1522_v41, 2  ;;  %v1545_v59 = vrot.slane %v1519_v40, 2  ;;  %v1546_v24 = vrot.slane %v1521_v52, 2  ;;  %v4321_v27 = vld [vmem:[%s3492_s6 + $0x70] sm:$0x7] }
 0x348   : > { %v1544_v10 = vsel %vm620_vm1, %v1542_v21, %v1543_v49  ;;  %v1541_v32 = vsel %vm620_vm1, %v1539_v44, %v1540_v20  ;;  %v1524_v17 = vmul.f32 %v3270_v60, %v4247_v33  ;;  %v1526_v58 = vmul.f32 %v3270_v60, %v4250_v54  ;;  %v3061_v2 = vld [vmem:[%s3492_s6 + $0x88] sm:$0xf8]  ;;  %v3063_v41 = vld [vmem:[%s3492_s6 + $0x98] sm:$0x7] }
 0x349   : > { %1559 = vrot.lane.b32.xlu1 %v1544_v10, %s3391_s8  ;;  %1557 = vrot.lane.b32.xlu0 %v1541_v32, %s3391_s8  ;;  %v1523_v52 = vmul.f32 %v3270_v60, %v4258_v9  ;;  %v1525_v49 = vmul.f32 %v3270_v60, %v4263_v19  ;;  %v1632_v20 = vmul.f32 %v4301_v29, %v3057_v57  ;;  %v4338_v32 = vld [vmem:[%s3492_s6 + $0x80] sm:$0xf8]  ;;  %v3065_v9 = vld [vmem:[%s3492_s6 + $0xa8] sm:$0xf8] }
 0x34a   : > { %v1634_v33 = vmul.f32 %v4301_v29, %v3059_v12  ;;  %v1550_v54 = vsel %vm620_vm1, %v1548_v6, %v1549_v48  ;;  %v1547_v40 = vsel %vm620_vm1, %v1545_v59, %v1546_v24  ;;  %v1631_v11 = vmul.f32 %v4301_v29, %v4318_v62  ;;  %v4343_v59 = vld [vmem:[%s3492_s6 + $0x90] sm:$0x7] }
 0x34b   : > { %v1633_v8 = vmul.f32 %v4301_v29, %v4321_v27  ;;  %v1554_v21 = vrot.slane %v1524_v17, 2  ;;  %v1555_v44 = vrot.slane %v1526_v58, 2  ;;  %v1551_v60 = vrot.slane %v1523_v52, 2 }
 0x34c   : > { %v1552_v10 = vrot.slane %v1525_v49, 2  ;;  %v1658_v48 = vrot.slane %v1632_v20, 3  ;;  %v1659_v24 = vrot.slane %v1634_v33, 3  ;;  %v1636_v6 = vmul.f32 %v4301_v29, %v3061_v2  ;;  %v4358_v20 = vld [vmem:[%s3492_s6 + $0xa0] sm:$0xf8] }
 0x34d   : > { %1563 = vrot.lane.b32.xlu1 %v1550_v54, %s3391_s8  ;;  %1561 = vrot.lane.b32.xlu0 %v1547_v40, %s3391_s8  ;;  %v1655_v17 = vrot.slane %v1631_v11, 3  ;;  %v1656_v58 = vrot.slane %v1633_v8, 3  ;;  %v1638_v52 = vmul.f32 %v4301_v29, %v3063_v41  ;;  %v1635_v49 = vmul.f32 %v4301_v29, %v4338_v32  ;;  %v4361_v33 = vld [vmem:[%s3492_s6 + $0xb0] sm:$0x7] }
 0x34e   : > { %v1556_v19 = vsel %vm620_vm1, %v1554_v21, %v1555_v44  ;;  %v1553_v54 = vsel %vm620_vm1, %v1551_v60, %v1552_v10  ;;  %v1637_v40 = vmul.f32 %v4301_v29, %v4343_v59  ;;  %v3271_v11 = vunpack.i.h.bf16 %v3269_v26 }
 0x34f   : > { %v1660_v8 = vsel %vm879_vm2, %v1658_v48, %v1659_v24  ;;  %v1664_v43 = vrot.slane %v1636_v6, 3  ;;  %v1657_v21 = vsel %vm879_vm2, %v1655_v17, %v1656_v58  ;;  %v1665_v44 = vrot.slane %v1638_v52, 3 }
 0x350   : > { %v1661_v60 = vrot.slane %v1635_v49, 3  ;;  %v1640_v10 = vmul.f32 %v4301_v29, %v3065_v9  ;;  %v1662_v42 = vrot.slane %v1637_v40, 3  ;;  %v1703_v26 = vmul.f32 %v3271_v11, %v3057_v57 }
 0x351   : > { %1567 = vrot.lane.b32.xlu1 %v1556_v19, %s3391_s8  ;;  %1565 = vrot.lane.b32.xlu0 %v1553_v54, %s3391_s8  ;;  %v1639_v19 = vmul.f32 %v4301_v29, %v4358_v20  ;;  %v1641_v54 = vmul.f32 %v4301_v29, %v4361_v33  ;;  %v1705_v48 = vmul.f32 %v3271_v11, %v3059_v12  ;;  %v1671_v49 = vrot.slane %v1642_v47, 3 }
 0x352   : > { %v1666_v24 = vsel %vm879_vm2, %v1664_v43, %v1665_v44  ;;  %v1670_v6 = vrot.slane %v1640_v10, 3  ;;  %v1702_v17 = vmul.f32 %v3271_v11, %v4318_v62  ;;  %v1704_v58 = vmul.f32 %v3271_v11, %v4321_v27 }
 0x353   : > { %v1663_v52 = vsel %vm879_vm2, %v1661_v60, %v1662_v42  ;;  %v1667_v40 = vrot.slane %v1639_v19, 3  ;;  %v1668_v55 = vrot.slane %v1641_v54, 3  ;;  %v1729_v29 = vrot.slane %v1703_v26, 3 }
 0x354   : > { %v1730_v57 = vrot.slane %v1705_v48, 3  ;;  %v1707_v12 = vmul.f32 %v3271_v11, %v3061_v2  ;;  %v1727_v43 = vrot.slane %v1704_v58, 3  ;;  %v1706_v44 = vmul.f32 %v3271_v11, %v4338_v32  ;;  %v4387_v2 = vld [vmem:[%s3474_s27 + $0x5c] sm:$0xff]  }
 0x355   : > { %1675 = vrot.lane.b32.xlu1 %v1660_v8, %s3390_s7  ;;  %1673 = vrot.lane.b32.xlu0 %v1657_v21, %s3390_s7  ;;  %v1726_v8 = vrot.slane %v1702_v17, 3  ;;  %v1709_v21 = vmul.f32 %v3271_v11, %v3063_v41  ;;  %v1672_v10 = vsel %vm879_vm2, %v1670_v6, %v1671_v49  ;;  %v1669_v42 = vsel %vm879_vm2, %v1667_v40, %v1668_v55 }
 0x356   : > { %v1708_v47 = vmul.f32 %v3271_v11, %v4343_v59  ;;  %v1731_v60 = vsel %vm879_vm2, %v1729_v29, %v1730_v57  ;;  %v1735_v19 = vrot.slane %v1707_v12, 3  ;;  %5391 = vst [vmem:[#allocation40_spill] sm:$0xff] %v4387_v2  ;;  %v1732_v26 = vrot.slane %v1706_v44, 3  ;;  %v4408_v44 = vpop.permute.xlu0 %1488 }
 0x357   : > { %v1728_v41 = vsel %vm879_vm2, %v1726_v8, %v1727_v43  ;;  %v1736_v54 = vrot.slane %v1709_v21, 3  ;;  %v1711_v48 = vmul.f32 %v3271_v11, %v3065_v9  ;;  %v1713_v6 = vmul.f32 %v3271_v11, %v3067_v61 }
 0x358   : > { %v1710_v55 = vmul.f32 %v3271_v11, %v4358_v20  ;;  %v1712_v17 = vmul.f32 %v3271_v11, %v4361_v33  ;;  %v1948_v58 = vunpack.c.l.bf16 %v4387_v2 }
 0x359   : > { %1679 = vrot.lane.b32.xlu1 %v1666_v24, %s3390_s7  ;;  %1677 = vrot.lane.b32.xlu0 %v1663_v52, %s3390_s7  ;;  %v1733_v24 = vrot.slane %v1708_v47, 3  ;;  %v4396_v52 = vld [vmem:[%s3474_s27 + $0x24] sm:$0xff]   ;;  %v1737_v49 = vsel %vm879_vm2, %v1735_v19, %v1736_v54  ;;  %v1741_v40 = vrot.slane %v1711_v48, 3  ;;  %v1742_v9 = vrot.slane %v1713_v6, 3 }
 0x35a   : > { %5392 = vst [vmem:[#allocation41_spill] sm:$0xff] %v4396_v52  ;;  %v1738_v57 = vrot.slane %v1710_v55, 3  ;;  %v1739_v61 = vrot.slane %v1712_v17, 3  ;;  %v1783_v11 = vunpack.c.l.bf16 %v4396_v52  ;;  %v1950_v12 = vrot.slane %v1948_v58, 7  ;;  %v4435_v17 = vld [vmem:[%s3492_s6 + $0xc8] sm:$0xff] }
 0x35b   : > { %v1734_v29 = vsel %vm879_vm2, %v1732_v26, %v1733_v24  ;;  %v1743_v8 = vsel %vm879_vm2, %v1741_v40, %v1742_v9  ;;  %v4442_v40 = vld [vmem:[%s3474_s27 + $0x64] sm:$0xff]  }
 0x35c   : > { %v1740_v43 = vsel %vm879_vm2, %v1738_v57, %v1739_v61  ;;  %v3272_v21 = vpack.i.bf16 %v1950_v12, %v1783_v11  ;;  %5394 = vst [vmem:[#allocation43_spill] sm:$0xff] %v4442_v40  ;;  %v4447_v57 = vld [vmem:[%s3492_s6 + $0xe8] sm:$0xff]  ;;  %v2019_v61 = vunpack.c.l.bf16 %v4442_v40  ;;  %v4453_v11 = vld [vmem:[%s3492_s6 + $0xe0] sm:$0xff] }
 0x35d   : > { %1683 = vrot.lane.b32.xlu1 %v1672_v10, %s3390_s7  ;;  %1681 = vrot.lane.b32.xlu0 %v1669_v42, %s3390_s7  ;;  %v4410_v10 = vpop.permute.xlu0 %1492  ;;  %5395 = vst [vmem:[#allocation44_spill] sm:$0xff] %v4447_v57  ;;  %v4456_v12 = vld [vmem:[%s3474_s27 + $0x2c] sm:$0xff]  }
 0x35e   : > { %v2021_v2 = vrot.slane %v2019_v61, 7  ;;  %v1218_v61 = vunpack.c.l.bf16 %v4166_v22  ;;  %v1029_v22 = vsel %vm280_vm4, %v4052_v45, %v4093_v3  ;;  %v3053_v45 = vld [vmem:[%s3474_s27 + $0x74] ss:$56 sps:$4 sm:$0xff]  }
 0x361   : > { %1746 = vrot.lane.b32.xlu1 %v1731_v60, %s3391_s8  ;;  %1744 = vrot.lane.b32.xlu0 %v1728_v41, %s3391_s8  ;;  %v4412_v42 = vpop.permute.xlu0 %1496 }
 0x365   : > { %1750 = vrot.lane.b32.xlu1 %v1737_v49, %s3391_s8  ;;  %1748 = vrot.lane.b32.xlu0 %v1734_v29, %s3391_s8  ;;  %v4439_v49 = vld [vmem:[%s3492_s6 + $0xc0] sm:$0xff] }
 0x369   : > { %1754 = vrot.lane.b32.xlu1 %v1743_v8, %s3391_s8  ;;  %1752 = vrot.lane.b32.xlu0 %v1740_v43, %s3391_s8 }
 0x36d   : > { %3273 = vrot.lane.b32.xlu0 %v3272_v21, %s3387_s28  ;;  %v4461_v21 = vld [vmem:[%s3492_s6 + $0x108] sm:$0xff] }
 0x3bb   : > { %v4414_v47 = vpop.permute.xlu0 %1557 }
 0x3bf   : > { %v4416_v60 = vpop.permute.xlu0 %1561 }
 0x3c3   : > { %v4418_v19 = vpop.permute.xlu0 %1565 }
 0x3c7   : > { %v4420_v41 = vpop.permute.xlu0 %1673 }
 0x3cb   : > { %v4422_v54 = vpop.permute.xlu0 %1677 }
 0x3cf   : > { %v4424_v26 = vpop.permute.xlu0 %1681 }
 0x3d3   : > { %v4426_v48 = vpop.permute.xlu0 %1744 }
 0x3d7   : > { %v4428_v24 = vpop.permute.xlu0 %1748 }
 0x3db   : > { %v4430_v6 = vpop.permute.xlu0 %1752 }
 0x3df   : > { %v4432_v55 = vpop.permute.xlu0 %3273 }
 0x3e0   : > { %5393 = vst [vmem:[#allocation42_spill] sm:$0xff] %v4432_v55  ;;  %v3275_v58 = vunpack.i.l.bf16 %v4432_v55 }
 0x3e2   : > { %v1789_v29 = vmul.f32 %v3275_v58, %v4435_v17  ;;  %v1788_v9 = vmul.f32 %v3275_v58, %v4439_v49  ;;  %v1791_v8 = vmul.f32 %v3275_v58, %v4447_v57  ;;  %v1790_v43 = vmul.f32 %v3275_v58, %v4453_v11  ;;  %v4474_v57 = vpop.permute.xlu1 %1559 }
 0x3e3   : > { %v1793_v40 = vmul.f32 %v3275_v58, %v4461_v21 }
 0x3e4   : > { %1802 = vrot.lane.b32.xlu0 %v1789_v29, %s3390_s7  ;;  %1800 = vrot.lane.b32.xlu1 %v1788_v9, %s3390_s7  ;;  %v1823_v29 = vunpack.c.l.bf16 %v4456_v12  ;;  %v4467_v9 = vld [vmem:[%s3492_s6 + $0x100] sm:$0xff] }
 0x3e5   : > { %v1792_v52 = vmul.f32 %v3275_v58, %v4467_v9  ;;  %v958_v58 = vsel %vm239_vm3, %v4046_v18, %v4087_v39 }
 0x3e6   : > { %v3277_v55 = vpack.i.bf16 %v2021_v2, %v1823_v29  ;;  %v1028_v2 = vsel %vm280_vm4, %v4050_v50, %v4091_v7  ;;  %v964_v18 = vadd.f32 %v958_v58, %v4038_v56  ;;  %v1099_v50 = vsel %vm321_vm5, %v4056_v0, %v4097_v63 }
 0x3e7   : > { %v1101_v0 = vsel %vm321_vm5, %v4060_v36, %v4101_v30  ;;  %v5396_v36 = vld [vmem:[#allocation11_spill] sm:$0xff]  ;;  %v5397_v30 = vld [vmem:[#allocation5_spill] sm:$0xff] }
 0x3e8   : > { %1806 = vrot.lane.b32.xlu0 %v1791_v8, %s3390_s7  ;;  %1804 = vrot.lane.b32.xlu1 %v1790_v43, %s3390_s7  ;;  %v4476_v8 = vpop.permute.xlu1 %1563  ;;  %v957_v43 = vsel %vm239_vm3, %v4041_v34, %v4085_v38  ;;  %v1117_v34 = vunpack.c.l.bf16 %v4170_v23  ;;  %v1035_v7 = vadd.f32 %v1029_v22, %v964_v18 }
 0x3ea   : > { %v1118_v63 = vmul.f32 %v4064_v14, %v1117_v34  ;;  %v1119_v29 = vmul.f32 %v4072_v15, %v1117_v34  ;;  %v1156_v14 = vsel %vm239_vm3, %v5397_v30, %v5396_v36  ;;  %v5399_v15 = vld [vmem:[#allocation8_spill] sm:$0xff]  ;;  %v5406_v30 = vld [vmem:[#allocation29_spill] sm:$0xff] }
 0x3ec   : > { %1810 = vrot.lane.b32.xlu0 %v1793_v40, %s3390_s7  ;;  %1808 = vrot.lane.b32.xlu1 %v1792_v52, %s3390_s7  ;;  %v1220_v52 = vrot.slane %v1218_v61, 7  ;;  %v959_v40 = vsel %vm239_vm3, %v4048_v28, %v4089_v4  ;;  %v4496_v38 = vpop.permute.xlu1 %1567  ;;  %v1100_v28 = vsel %vm321_vm5, %v4058_v31, %v4099_v13  ;;  %v1405_v31 = vunpack.c.l.bf16 %v3053_v45 }
 0x3ed   : > { %v965_v4 = vadd.f32 %v959_v40, %v4044_v5  ;;  %v1120_v13 = vmul.f32 %v4079_v51, %v1117_v34  ;;  %v5400_v51 = vld [vmem:[#allocation28_spill] sm:$0xff]  ;;  %v5401_v34 = vld [vmem:[#allocation13_spill] sm:$0xff] }
 0x3ee   : > { %v1222_v3 = vmul.f32 %v4113_v46, %v1220_v52  ;;  %v1223_v56 = vmul.f32 %v4116_v53, %v1220_v52  ;;  %v1155_v46 = vsel %vm239_vm3, %v4103_v37, %v4187_v35  ;;  %v1225_v40 = vmul.f32 %v5399_v15, %v1220_v52  ;;  %v5403_v35 = vld [vmem:[#allocation10_spill] sm:$0xff]  ;;  %v5411_v15 = vld [vmem:[#allocation15_spill] sm:$0xff] }
 0x3ef   : > { %v1195_v18 = vsel %vm280_vm4, %v5401_v34, %v5400_v51  ;;  %v5414_v34 = vld [vmem:[#allocation31_spill] sm:$0xff] }
 0x3f0   : > { %3278 = vrot.lane.b32.xlu1 %v3277_v55, %s3388_s29  ;;  %v963_v55 = vadd.f32 %v957_v43, %v4033_v16  ;;  %v1030_v16 = vsel %vm280_vm4, %v4054_v1, %v4095_v25  ;;  %v1106_v25 = vadd.f32 %v1100_v28, %v1035_v7  ;;  %v4518_v5 = vpop.permute.xlu1 %1675  ;;  %v1234_v53 = vrot.slane %v1222_v3, 1  ;;  %v5404_v3 = vld [vmem:[#allocation12_spill] sm:$0xff] }
 0x3f1   : > { %v1036_v1 = vadd.f32 %v1030_v16, %v965_v4  ;;  %v1235_v43 = vrot.slane %v1223_v56, 1  ;;  %v1407_v16 = vrot.slane %v1405_v31, 6  ;;  %v1227_v28 = vmul.f32 %v5403_v35, %v1220_v52  ;;  %v5405_v56 = vld [vmem:[#allocation6_spill] sm:$0xff] }
 0x3f2   : > { %v1034_v39 = vadd.f32 %v1028_v2, %v963_v55  ;;  %v5398_v2 = vld [vmem:[#allocation7_spill] sm:$0xff]  ;;  %v1122_v22 = vadd.f32 %v1119_v29, %v1106_v25  ;;  %v1238_v25 = vrot.slane %v1225_v40, 1  ;;  %v1592_v29 = vunpack.c.h.bf16 %v3053_v45  ;;  %v5413_v40 = vld [vmem:[#allocation25_spill] sm:$0xff] }
 0x3f3   : > { %v1107_v61 = vadd.f32 %v1101_v0, %v1036_v1  ;;  %v1224_v55 = vmul.f32 %v5398_v2, %v1220_v52  ;;  %v1236_v0 = vsel %vm361_vm0, %v1234_v53, %v1235_v43  ;;  %v5407_v2 = vld [vmem:[#allocation14_spill] sm:$0xff]  ;;  %v1241_v53 = vrot.slane %v1227_v28, 1  ;;  %v5412_v43 = vld [vmem:[#allocation24_spill] sm:$0xff] }
 0x3f4   : > { %v1105_v23 = vadd.f32 %v1099_v50, %v1034_v39  ;;  %v5402_v50 = vld [vmem:[#allocation9_spill] sm:$0xff]  ;;  %v1162_v4 = vadd.f32 %v1156_v14, %v1122_v22  ;;  %v4537_v36 = vpop.permute.xlu1 %1679  ;;  %v1196_v31 = vsel %vm280_vm4, %v5407_v2, %v5406_v30  ;;  %v5410_v14 = vld [vmem:[#allocation30_spill] sm:$0xff]  ;;  %v1412_v45 = vmul.f32 %v5413_v40, %v1407_v16  ;;  %v5417_v2 = vld [vmem:[#allocation19_spill] sm:$0xff] }
 0x3f5   : > { %v1226_v39 = vmul.f32 %v5402_v50, %v1220_v52  ;;  %v1123_v7 = vadd.f32 %v1120_v13, %v1107_v61  ;;  %v1237_v1 = vrot.slane %v1224_v55, 1  ;;  %v5408_v52 = vld [vmem:[#allocation22_spill] sm:$0xff]  ;;  %v5409_v13 = vld [vmem:[#allocation23_spill] sm:$0xff]  ;;  %v1197_v22 = vsel %vm280_vm4, %v5411_v15, %v5410_v14  ;;  %v5418_v40 = vld [vmem:[#allocation32_spill] sm:$0xff] }
 0x3f6   : > { %v1121_v58 = vadd.f32 %v1118_v63, %v1105_v23  ;;  %v1157_v23 = vsel %vm239_vm3, %v5405_v56, %v5404_v3  ;;  %v1410_v61 = vmul.f32 %v5409_v13, %v1407_v16  ;;  %v1411_v55 = vmul.f32 %v5412_v43, %v1407_v16  ;;  %v5416_v30 = vld [vmem:[#allocation34_spill] sm:$0xff] }
 0x3f7   : > { %v1163_v51 = vadd.f32 %v1157_v23, %v1123_v7  ;;  %v1239_v35 = vsel %vm361_vm0, %v1237_v1, %v1238_v25  ;;  %v1594_v3 = vrot.slane %v1592_v29, 5  ;;  %v1425_v23 = vrot.slane %v1412_v45, 2  ;;  %v5421_v25 = vld [vmem:[#allocation27_spill] sm:$0xff]  ;;  %v5425_v45 = vld [vmem:[#allocation20_spill] sm:$0xff] }
 0x3f8   : > { %v1161_v37 = vadd.f32 %v1155_v46, %v1121_v58  ;;  %v1240_v46 = vrot.slane %v1226_v39, 1  ;;  %v1409_v58 = vmul.f32 %v5408_v52, %v1407_v16  ;;  %v1382_v52 = vsel %vm280_vm4, %v5417_v2, %v5416_v30  ;;  %v4557_v43 = vpop.permute.xlu1 %1683 }
 0x3f9   : > { %v1203_v56 = vadd.f32 %v1197_v22, %v1163_v51  ;;  %v1422_v13 = vrot.slane %v1410_v61, 2  ;;  %v1424_v7 = vrot.slane %v1411_v55, 2  ;;  %v1414_v29 = vmul.f32 %v5421_v25, %v1407_v16  ;;  %v5422_v22 = vld [vmem:[#allocation33_spill] sm:$0xff]  ;;  %v5423_v51 = vld [vmem:[#allocation18_spill] sm:$0xff]  ;;  %v5424_v55 = vld [vmem:[#allocation35_spill] sm:$0xff] }
 0x3fa   : > { %v1201_v63 = vadd.f32 %v1195_v18, %v1161_v37  ;;  %v5415_v18 = vld [vmem:[#allocation16_spill] sm:$0xff]  ;;  %v1202_v37 = vadd.f32 %v1196_v31, %v1162_v4  ;;  %v1421_v28 = vrot.slane %v1409_v58, 2  ;;  %v1242_v15 = vsel %vm361_vm0, %v1240_v46, %v1241_v53  ;;  %v5419_v4 = vld [vmem:[#allocation17_spill] sm:$0xff] }
 0x3fb   : > { %v1311_v50 = vsel %vm239_vm3, %v5415_v18, %v5414_v34  ;;  %v1313_v58 = vsel %vm239_vm3, %v5423_v51, %v5422_v22  ;;  %v1596_v46 = vmul.f32 %v4318_v62, %v1594_v3  ;;  %v1248_v53 = vadd.f32 %v1242_v15, %v1203_v56  ;;  %v5427_v56 = vld [vmem:[#allocation36_spill] sm:$0xff] }
 0x3fc   : > { %v1246_v39 = vadd.f32 %v1236_v0, %v1201_v63  ;;  %v1312_v0 = vsel %vm239_vm3, %v5419_v4, %v5418_v40  ;;  %v5420_v63 = vld [vmem:[#allocation26_spill] sm:$0xff]  ;;  %v1247_v31 = vadd.f32 %v1239_v35, %v1202_v37  ;;  %v1383_v34 = vsel %vm280_vm4, %v5425_v45, %v5424_v55  ;;  %v5426_v35 = vld [vmem:[#allocation37_spill] sm:$0xff] }
 0x3fd   : > { %v1413_v1 = vmul.f32 %v5420_v63, %v1407_v16  ;;  %v1423_v18 = vsel %vm620_vm1, %v1421_v28, %v1422_v13  ;;  %v1426_v16 = vsel %vm620_vm1, %v1424_v7, %v1425_v23  ;;  %v1319_v37 = vadd.f32 %v1313_v58, %v1248_v53  ;;  %v1747_v28 = vpop.permute.xlu1 %1746  ;;  %v5429_v63 = vld [vmem:[#allocation38_spill] sm:$0xff]  ;;  %v5430_v53 = vld [vmem:[#allocation39_spill] sm:$0xff] }
 0x3fe   : > { %v1317_v14 = vadd.f32 %v1311_v50, %v1246_v39  ;;  %v1597_v50 = vmul.f32 %v4321_v27, %v1594_v3  ;;  %v1318_v39 = vadd.f32 %v1312_v0, %v1247_v31  ;;  %v1498_v30 = vsel %vm239_vm3, %v5426_v35, %v4408_v44  ;;  %v4596_v58 = vld [vmem:[%s3474_s27 + $0x1c] ss:$24 sps:$4 sm:$0xff]  }
 0x3ff   : > { %v1427_v2 = vrot.slane %v1413_v1, 2  ;;  %v1608_v4 = vrot.slane %v1596_v46, 3  ;;  %v1569_v27 = vsel %vm280_vm4, %v4414_v47, %v4474_v57  ;;  %v1598_v7 = vmul.f32 %v4338_v32, %v1594_v3 }
 0x400   : > { %v1388_v61 = vadd.f32 %v1382_v52, %v1317_v14  ;;  %v1428_v52 = vrot.slane %v1414_v29, 2  ;;  %v1389_v62 = vadd.f32 %v1383_v34, %v1318_v39  ;;  %v5428_v14 = vld [vmem:[#allocation21_spill] sm:$0xff]  ;;  %v1609_v13 = vrot.slane %v1597_v50, 3 }
 0x401   : > { %v1384_v15 = vsel %vm280_vm4, %v5428_v14, %v5427_v56  ;;  %v1599_v44 = vmul.f32 %v4343_v59, %v1594_v3  ;;  %v1499_v1 = vsel %vm239_vm3, %v5429_v63, %v4410_v10  ;;  %v1600_v22 = vmul.f32 %v4358_v20, %v1594_v3  ;;  %v1751_v10 = vpop.permute.xlu1 %1750 }
 0x402   : > { %v1433_v40 = vadd.f32 %v1423_v18, %v1388_v61  ;;  %v1390_v0 = vadd.f32 %v1384_v15, %v1319_v37  ;;  %v1429_v25 = vsel %vm620_vm1, %v1427_v2, %v1428_v52  ;;  %v1434_v29 = vadd.f32 %v1426_v16, %v1389_v62 }
 0x403   : > { %v1601_v47 = vmul.f32 %v4361_v33, %v1594_v3  ;;  %v1570_v32 = vsel %vm280_vm4, %v4416_v60, %v4476_v8  ;;  %v1610_v59 = vsel %vm879_vm2, %v1608_v4, %v1609_v13  ;;  %v1611_v57 = vrot.slane %v1598_v7, 3 }
 0x404   : > { %v1504_v23 = vadd.f32 %v1498_v30, %v1433_v40  ;;  %v1612_v51 = vrot.slane %v1599_v44, 3  ;;  %v1505_v61 = vadd.f32 %v1499_v1, %v1434_v29  ;;  %v1435_v46 = vadd.f32 %v1429_v25, %v1390_v0 }
 0x405   : > { %v1500_v55 = vsel %vm239_vm3, %v5430_v53, %v4412_v42  ;;  %v1685_v20 = vsel %vm239_vm3, %v4420_v41, %v4518_v5  ;;  %v1614_v60 = vrot.slane %v1600_v22, 3  ;;  %v1774_v8 = vunpack.c.l.bf16 %v4596_v58  ;;  %v1755_v35 = vpop.permute.xlu1 %1754 }
 0x406   : > { %v1575_v31 = vadd.f32 %v1569_v27, %v1504_v23  ;;  %v1576_v33 = vadd.f32 %v1570_v32, %v1505_v61  ;;  %v1571_v45 = vsel %vm280_vm4, %v4418_v19, %v4496_v38  ;;  %v1613_v34 = vsel %vm879_vm2, %v1611_v57, %v1612_v51 }
 0x407   : > { %v1615_v18 = vrot.slane %v1601_v47, 3  ;;  %v1756_v50 = vsel %vm280_vm4, %v4426_v48, %v1747_v28  ;;  %v1506_v42 = vadd.f32 %v1500_v55, %v1435_v46  ;;  %v1686_v41 = vsel %vm239_vm3, %v4422_v54, %v4537_v36 }
 0x408   : > { %v1620_v3 = vadd.f32 %v1610_v59, %v1575_v31  ;;  %v1621_v16 = vadd.f32 %v1613_v34, %v1576_v33  ;;  %v1775_v30 = vmul.f32 %v4439_v49, %v1774_v8  ;;  %v1757_v38 = vsel %vm280_vm4, %v4428_v24, %v1751_v10  ;;  %v4632_v31 = vld [vmem:[%s3474_s27 + $0x6c] ss:$56 sps:$4 sm:$0xff]  }
 0x409   : > { %v1577_v5 = vadd.f32 %v1571_v45, %v1506_v42  ;;  %v1616_v19 = vsel %vm879_vm2, %v1614_v60, %v1615_v18  ;;  %v1687_v48 = vsel %vm239_vm3, %v4424_v26, %v4557_v43  ;;  %v1776_v14 = vmul.f32 %v4453_v11, %v1774_v8  ;;  %v5431_v59 = vld [vmem:[#allocation44_spill] sm:$0xff] }
 0x40a   : > { %v1691_v39 = vadd.f32 %v1685_v20, %v1620_v3  ;;  %v1692_v2 = vadd.f32 %v1686_v41, %v1621_v16  ;;  %v1758_v15 = vsel %vm280_vm4, %v4430_v6, %v1755_v35  ;;  %v1777_v26 = vmul.f32 %v4467_v9, %v1774_v8  ;;  %v5432_v35 = vld [vmem:[#allocation42_spill] sm:$0xff] }
 0x40b   : > { %v1622_v52 = vadd.f32 %v1616_v19, %v1577_v5  ;;  %v2090_v32 = vunpack.c.l.bf16 %v4632_v31  ;;  %v1863_v61 = vunpack.c.h.bf16 %v4596_v58  ;;  %v4665_v19 = vld [vmem:[%s3492_s6 + $0xc8] sm:$0xfe] }
 0x40c   : > { %v1762_v37 = vadd.f32 %v1756_v50, %v1691_v39  ;;  %v1763_v62 = vadd.f32 %v1757_v38, %v1692_v2  ;;  %v4668_v38 = vld [vmem:[%s3492_s6 + $0xd8] sm:$0x1]  ;;  %v4673_v2 = vld [vmem:[%s3492_s6 + $0xc0] sm:$0xfe] }
 0x40d   : > { %v1693_v4 = vadd.f32 %v1687_v48, %v1622_v52  ;;  %v2092_v10 = vrot.slane %v2090_v32, 7  ;;  %v4676_v48 = vld [vmem:[%s3492_s6 + $0xd0] sm:$0x1] }
 0x40e   : > { %v1778_v36 = vadd.f32 %v1775_v30, %v1762_v37  ;;  %v1779_v13 = vadd.f32 %v1776_v14, %v1763_v62  ;;  %v3276_v30 = vunpack.i.h.bf16 %v5432_v35  ;;  %v4684_v62 = vld [vmem:[%s3492_s6 + $0xf8] sm:$0x1] }
 0x40f   : > { %v1764_v28 = vadd.f32 %v1758_v15, %v1693_v4  ;;  %v3282_v55 = vpack.i.bf16 %v2092_v10, %v1863_v61 }
 0x410   : > { %v1954_v14 = vmul.f32 %v3276_v30, %v4673_v2  ;;  %v1956_v15 = vmul.f32 %v3276_v30, %v4676_v48  ;;  %v1961_v4 = vmul.f32 %v3276_v30, %v4684_v62 }
 0x411   : > { %v1780_v0 = vadd.f32 %v1777_v26, %v1764_v28  ;;  %v4708_v26 = vld [vmem:[%s3492_s6 + $0x118] sm:$0x1] }
 0x456   : > { %v1803_v56 = vpop.permute.xlu0 %1802  ;;  %v1801_v54 = vpop.permute.xlu1 %1800 }
 0x457   : > { %v1812_v40 = vsel %vm239_vm3, %v1801_v54, %v1803_v56  ;;  %v4687_v56 = vld [vmem:[%s3492_s6 + $0xe0] sm:$0xfe]  ;;  %v1955_v54 = vmul.f32 %v3276_v30, %v4665_v19 }
 0x458   : > { %v1818_v24 = vadd.f32 %v1812_v40, %v1778_v36  ;;  %v1957_v36 = vmul.f32 %v3276_v30, %v4668_v38  ;;  %v4694_v40 = vld [vmem:[%s3492_s6 + $0xf0] sm:$0x1] }
 0x45a   : > { %v1807_v27 = vpop.permute.xlu0 %1806  ;;  %v1805_v7 = vpop.permute.xlu1 %1804 }
 0x45b   : > { %v1813_v43 = vsel %vm239_vm3, %v1805_v7, %v1807_v27  ;;  %v4705_v7 = vld [vmem:[%s3492_s6 + $0x108] sm:$0xfe] }
 0x45c   : > { %v1819_v44 = vadd.f32 %v1813_v43, %v1779_v13  ;;  %v1960_v13 = vmul.f32 %v3276_v30, %v4694_v40  ;;  %v4711_v43 = vld [vmem:[%s3492_s6 + $0x100] sm:$0xfe] }
 0x45d   : > { %v1962_v32 = vmul.f32 %v3276_v30, %v4711_v43 }
 0x45e   : > { %v1811_v23 = vpop.permute.xlu0 %1810  ;;  %v1809_v63 = vpop.permute.xlu1 %1808 }
 0x45f   : > { %v1814_v1 = vsel %vm239_vm3, %v1809_v63, %v1811_v23  ;;  %v1982_v23 = vrot.slane %v1957_v36, 1  ;;  %v1979_v63 = vrot.slane %v1956_v15, 1 }
 0x460   : > { %v1820_v6 = vadd.f32 %v1814_v1, %v1780_v0  ;;  %v1978_v0 = vrot.slane %v1954_v14, 1  ;;  %v4714_v1 = vld [vmem:[%s3492_s6 + $0x110] sm:$0x1] }
 0x461   : > { %v5433_v14 = vld [vmem:[#allocation41_spill] sm:$0xff] }
 0x462   : > { %v4628_v25 = vpop.permute.xlu1 %3278  ;;  %v1980_v61 = vsel %vm361_vm0, %v1978_v0, %v1979_v63  ;;  %v2435_v15 = vunpack.c.h.bf16 %v5433_v14 }
 0x463   : > { %v3280_v29 = vunpack.i.l.bf16 %v4628_v25 }
 0x465   : > { %v1829_v22 = vmul.f32 %v3280_v29, %v4435_v17  ;;  %v1828_v47 = vmul.f32 %v3280_v29, %v4439_v49  ;;  %v1831_v57 = vmul.f32 %v3280_v29, %v5431_v59  ;;  %v1830_v51 = vmul.f32 %v3280_v29, %v4453_v11 }
 0x466   : > { %v1833_v46 = vmul.f32 %v3280_v29, %v4461_v21  ;;  %v1832_v53 = vmul.f32 %v3280_v29, %v4467_v9  ;;  %v1963_v29 = vmul.f32 %v3276_v30, %v4705_v7 }
 0x467   : > { %1842 = vrot.lane.b32.xlu1 %v1829_v22, %s3391_s8  ;;  %1840 = vrot.lane.b32.xlu0 %v1828_v47, %s3391_s8  ;;  %v1985_v22 = vrot.slane %v1960_v13, 1  ;;  %v1965_v47 = vmul.f32 %v3276_v30, %v4708_v26 }
 0x46b   : > { %1846 = vrot.lane.b32.xlu1 %v1831_v57, %s3391_s8  ;;  %1844 = vrot.lane.b32.xlu0 %v1830_v51, %s3391_s8  ;;  %v4723_v57 = vunpack.i.h.bf16 %v4628_v25 }
 0x46d   : > { %v2026_v25 = vmul.f32 %v4723_v57, %v4665_v19 }
 0x46f   : > { %1850 = vrot.lane.b32.xlu1 %v1833_v46, %s3391_s8  ;;  %1848 = vrot.lane.b32.xlu0 %v1832_v53, %s3391_s8  ;;  %v1993_v46 = vrot.slane %v1963_v29, 1  ;;  %v3111_v53 = vld [vmem:[%s3474_s27 + $0x9c] sm:$0xff]   ;;  %v2032_v29 = vmul.f32 %v4723_v57, %v4684_v62 }
 0x473   : > { %3283 = vrot.lane.b32.xlu0 %v3282_v55, %s3389_s30  ;;  %v3110_v55 = vld [vmem:[%s3474_s27 + $0x94] sm:$0xff]  }
 0x474   : > { %v2747_v0 = vunpack.c.h.bf16 %v3110_v55 }
 0x4d9   : > { %v1843_v20 = vpop.permute.xlu1 %1842  ;;  %v1841_v33 = vpop.permute.xlu0 %1840 }
 0x4da   : > { %v1852_v3 = vsel %vm280_vm4, %v1841_v33, %v1843_v20  ;;  %v1994_v33 = vrot.slane %v1965_v47, 1  ;;  %v5435_v47 = vld [vmem:[#allocation43_spill] sm:$0xff] }
 0x4db   : > { %v4650_v60 = vadd.f32 %v1852_v3, %v1818_v24  ;;  %v1958_v24 = vmul.f32 %v3276_v30, %v4687_v56  ;;  %v1990_v3 = vrot.slane %v1962_v32, 1  ;;  %v2631_v32 = vunpack.c.h.bf16 %v5435_v47 }
 0x4dd   : > { %v1847_v58 = vpop.permute.xlu1 %1846  ;;  %v1845_v8 = vpop.permute.xlu0 %1844 }
 0x4de   : > { %v1853_v45 = vsel %vm280_vm4, %v1845_v8, %v1847_v58  ;;  %v2028_v8 = vmul.f32 %v4723_v57, %v4668_v38 }
 0x4df   : > { %v4653_v34 = vadd.f32 %v1853_v45, %v1819_v44  ;;  %v1981_v44 = vrot.slane %v1955_v54, 1  ;;  %v2025_v45 = vmul.f32 %v4723_v57, %v4673_v2  ;;  %v2475_v54 = vunpack.c.h.bf16 %v4456_v12 }
 0x4e0   : > { %v2053_v35 = vrot.slane %v2028_v8, 1 }
 0x4e1   : > { %v1851_v18 = vpop.permute.xlu1 %1850  ;;  %v1849_v50 = vpop.permute.xlu0 %1848  ;;  %v1983_v51 = vsel %vm361_vm0, %v1981_v44, %v1982_v23  ;;  %v5434_v44 = vld [vmem:[#allocation40_spill] sm:$0xff] }
 0x4e2   : > { %v1854_v42 = vsel %vm280_vm4, %v1849_v50, %v1851_v18  ;;  %v2027_v18 = vmul.f32 %v4723_v57, %v4676_v48  ;;  %v2277_v50 = vunpack.c.l.bf16 %v3111_v53  ;;  %v2560_v23 = vunpack.c.h.bf16 %v5434_v44 }
 0x4e3   : > { %v4656_v39 = vadd.f32 %v1854_v42, %v1820_v6  ;;  %v1984_v6 = vrot.slane %v1958_v24, 1  ;;  %v2206_v42 = vunpack.c.l.bf16 %v3110_v55  ;;  %v2059_v55 = vrot.slane %v2032_v29, 1 }
 0x4e5   : > { %v4658_v41 = vpop.permute.xlu0 %3283  ;;  %v1986_v20 = vsel %vm361_vm0, %v1984_v6, %v1985_v22  ;;  %v2208_v36 = vrot.slane %v2206_v42, 6  ;;  %v2749_v22 = vrot.slane %v2747_v0, 6 }
 0x4e6   : > { %v3285_v5 = vunpack.i.l.bf16 %v4658_v41 }
 0x4e7   : > { %v3287_v13 = vpack.i.bf16 %v2435_v15, %v2208_v36 }
 0x4e8   : > { %v1869_v16 = vmul.f32 %v3285_v5, %v4435_v17  ;;  %v1868_v37 = vmul.f32 %v3285_v5, %v4439_v49  ;;  %v1871_v52 = vmul.f32 %v3285_v5, %v5431_v59  ;;  %v1870_v17 = vmul.f32 %v3285_v5, %v4453_v11  ;;  %v4681_v49 = vld [vmem:[%s3492_s6 + $0xe8] sm:$0xfe] }
 0x4e9   : > { %v1959_v11 = vmul.f32 %v3276_v30, %v4681_v49  ;;  %v1873_v28 = vmul.f32 %v3285_v5, %v4461_v21  ;;  %v1872_v27 = vmul.f32 %v3285_v5, %v4467_v9  ;;  %v1988_v9 = vrot.slane %v1961_v4, 1 }
 0x4ea   : > { %1882 = vrot.lane.b32.xlu0 %v1869_v16, %s3392_s15  ;;  %1880 = vrot.lane.b32.xlu1 %v1868_v37, %s3392_s15  ;;  %v1964_v59 = vmul.f32 %v3276_v30, %v4714_v1  ;;  %v1995_v5 = vsel %vm361_vm0, %v1993_v46, %v1994_v33  ;;  %v2052_v37 = vrot.slane %v2026_v25, 1  ;;  %v2049_v30 = vrot.slane %v2025_v45, 1 }
 0x4eb   : > { %v1987_v21 = vrot.slane %v1959_v11, 1  ;;  %v2029_v11 = vmul.f32 %v4723_v57, %v4687_v56  ;;  %v2030_v63 = vmul.f32 %v4723_v57, %v4681_v49  ;;  %v2036_v25 = vmul.f32 %v4723_v57, %v4708_v26 }
 0x4ec   : > { %v1991_v58 = vrot.slane %v1964_v59, 1  ;;  %v2054_v4 = vsel %vm361_vm0, %v2052_v37, %v2053_v35  ;;  %v2818_v59 = vunpack.c.h.bf16 %v3111_v53  ;;  %v2034_v53 = vmul.f32 %v4723_v57, %v4705_v7 }
 0x4ed   : > { %v1989_v10 = vsel %vm361_vm0, %v1987_v21, %v1988_v9  ;;  %v2055_v21 = vrot.slane %v2029_v11, 1 }
 0x4ee   : > { %1886 = vrot.lane.b32.xlu0 %v1871_v52, %s3392_s15  ;;  %1884 = vrot.lane.b32.xlu1 %v1870_v17, %s3392_s15  ;;  %v1992_v16 = vsel %vm361_vm0, %v1990_v3, %v1991_v58  ;;  %v2050_v52 = vrot.slane %v2027_v18, 1  ;;  %v2279_v17 = vrot.slane %v2277_v50, 6  ;;  %v2633_v3 = vrot.slane %v2631_v32, 7 }
 0x4ef   : > { %v2820_v58 = vrot.slane %v2818_v59, 6 }
 0x4f0   : > { %v2051_v24 = vsel %vm361_vm0, %v2049_v30, %v2050_v52  ;;  %v3292_v12 = vpack.i.bf16 %v2475_v54, %v2279_v17 }
 0x4f1   : > { %v3302_v42 = vpack.i.bf16 %v2820_v58, %v2633_v3 }
 0x4f2   : > { %1890 = vrot.lane.b32.xlu0 %v1873_v28, %s3392_s15  ;;  %1888 = vrot.lane.b32.xlu1 %v1872_v27, %s3392_s15  ;;  %v2031_v28 = vmul.f32 %v4723_v57, %v4694_v40  ;;  %v2348_v27 = vunpack.c.h.bf16 %v4632_v31  ;;  %v2562_v31 = vrot.slane %v2560_v23, 7 }
 0x4f4   : > { %v2056_v9 = vrot.slane %v2031_v28, 1  ;;  %v2350_v6 = vrot.slane %v2348_v27, 6  ;;  %v3297_v33 = vpack.i.bf16 %v2749_v22, %v2562_v31  ;;  %v3093_v31 = vld [vmem:[%s3474_s27 + $0x54] sm:$0xf] }
 0x4f6   : > { %1998 = vrot.lane.b32.xlu0 %v1983_v51, %s3390_s7  ;;  %1996 = vrot.lane.b32.xlu1 %v1980_v61, %s3390_s7  ;;  %v2058_v51 = vrot.slane %v2030_v63, 1  ;;  %v2033_v61 = vmul.f32 %v4723_v57, %v4711_v43  ;;  %v2057_v46 = vsel %vm361_vm0, %v2055_v21, %v2056_v9 }
 0x4f8   : > { %v2060_v8 = vsel %vm361_vm0, %v2058_v51, %v2059_v55 }
 0x4fa   : > { %2002 = vrot.lane.b32.xlu0 %v1989_v10, %s3390_s7  ;;  %2000 = vrot.lane.b32.xlu1 %v1986_v20, %s3390_s7  ;;  %v3286_v10 = vunpack.i.h.bf16 %v4658_v41  ;;  %v2035_v20 = vmul.f32 %v4723_v57, %v4714_v1  ;;  %v2061_v41 = vrot.slane %v2033_v61, 1 }
 0x4fc   : > { %v2062_v45 = vrot.slane %v2035_v20, 1  ;;  %v2096_v18 = vmul.f32 %v3286_v10, %v4673_v2  ;;  %v2098_v50 = vmul.f32 %v3286_v10, %v4676_v48  ;;  %v2100_v37 = vmul.f32 %v3286_v10, %v4687_v56 }
 0x4fd   : > { %v2102_v35 = vmul.f32 %v3286_v10, %v4694_v40  ;;  %v2097_v57 = vmul.f32 %v3286_v10, %v4665_v19  ;;  %v2099_v54 = vmul.f32 %v3286_v10, %v4668_v38  ;;  %v2104_v14 = vmul.f32 %v3286_v10, %v4711_v43 }
 0x4fe   : > { %2006 = vrot.lane.b32.xlu0 %v1995_v5, %s3390_s7  ;;  %2004 = vrot.lane.b32.xlu1 %v1992_v16, %s3390_s7  ;;  %v2064_v5 = vrot.slane %v2034_v53, 1  ;;  %v2065_v16 = vrot.slane %v2036_v25, 1  ;;  %v2063_v30 = vsel %vm361_vm0, %v2061_v41, %v2062_v45  ;;  %v2120_v52 = vrot.slane %v2096_v18, 1 }
 0x4ff   : > { %v2121_v17 = vrot.slane %v2098_v50, 1  ;;  %v2126_v15 = vrot.slane %v2100_v37, 1  ;;  %v2127_v11 = vrot.slane %v2102_v35, 1  ;;  %v2124_v28 = vrot.slane %v2099_v54, 1 }
 0x500   : > { %v2066_v36 = vsel %vm361_vm0, %v2064_v5, %v2065_v16  ;;  %v2101_v27 = vmul.f32 %v3286_v10, %v4681_v49  ;;  %v2103_v38 = vmul.f32 %v3286_v10, %v4684_v62  ;;  %v2105_v23 = vmul.f32 %v3286_v10, %v4705_v7 }
 0x501   : > { %v2122_v19 = vsel %vm361_vm0, %v2120_v52, %v2121_v17  ;;  %v2107_v9 = vmul.f32 %v3286_v10, %v4708_v26  ;;  %v1915_v26 = vunpack.c.l.bf16 %v3093_v31 }
 0x502   : > { %2069 = vrot.lane.b32.xlu0 %v2054_v4, %s3391_s8  ;;  %2067 = vrot.lane.b32.xlu1 %v2051_v24, %s3391_s8  ;;  %v2123_v4 = vrot.slane %v2097_v57, 1  ;;  %v2106_v24 = vmul.f32 %v3286_v10, %v4714_v1  ;;  %v2129_v63 = vrot.slane %v2101_v27, 1  ;;  %v2130_v21 = vrot.slane %v2103_v38, 1  ;;  %v4835_v27 = vld [vmem:[%s3492_s6 + $0xc8] sm:$0xfc] }
 0x503   : > { %v2136_v29 = vrot.slane %v2107_v9, 1  ;;  %v1917_v22 = vrot.slane %v1915_v26, 7  ;;  %v4838_v38 = vld [vmem:[%s3492_s6 + $0xd8] sm:$0x3]  ;;  %v4858_v9 = vld [vmem:[%s3492_s6 + $0xe0] sm:$0xfc] }
 0x504   : > { %v2133_v44 = vrot.slane %v2106_v24, 1  ;;  %v2125_v0 = vsel %vm361_vm0, %v2123_v4, %v2124_v28  ;;  %v2131_v62 = vsel %vm361_vm0, %v2129_v63, %v2130_v21  ;;  %v4855_v21 = vld [vmem:[%s3492_s6 + $0xf8] sm:$0x3] }
 0x505   : > { %v1919_v59 = vmul.f32 %v4673_v2, %v1917_v22  ;;  %v1920_v61 = vmul.f32 %v4676_v48, %v1917_v22  ;;  %v1921_v58 = vmul.f32 %v4687_v56, %v1917_v22  ;;  %v1922_v53 = vmul.f32 %v4694_v40, %v1917_v22 }
 0x506   : > { %3293 = vrot.lane.b32.xlu0 %v3292_v12, %s3388_s29  ;;  %3288 = vrot.lane.b32.xlu1 %v3287_v13, %s3387_s28  ;;  %v2128_v12 = vsel %vm361_vm0, %v2126_v15, %v2127_v11  ;;  %v2132_v13 = vrot.slane %v2104_v14, 1  ;;  %v1924_v48 = vmul.f32 %v4714_v1, %v1917_v22 }
 0x507   : > { %v1931_v20 = vrot.slane %v1919_v59, 1  ;;  %v1932_v3 = vrot.slane %v1920_v61, 1  ;;  %v1934_v18 = vrot.slane %v1921_v58, 1  ;;  %v1935_v50 = vrot.slane %v1922_v53, 1  ;;  %v4877_v61 = vld [vmem:[%s3492_s6 + $0x108] sm:$0xfc] }
 0x508   : > { %v2134_v49 = vsel %vm361_vm0, %v2132_v13, %v2133_v44  ;;  %v1938_v35 = vrot.slane %v1924_v48, 1  ;;  %v4845_v44 = vld [vmem:[%s3492_s6 + $0xc0] sm:$0xfc] }
 0x509   : > { %v1933_v45 = vsel %vm361_vm0, %v1931_v20, %v1932_v3  ;;  %v4883_v3 = vld [vmem:[%s3492_s6 + $0x100] sm:$0xfc] }
 0x50a   : > { %2071 = vrot.lane.b32.xlu0 %v2057_v46, %s3391_s8  ;;  %2351 = vrot.lane.b32.xlu1 %v2350_v6, %s3389_s30  ;;  %v2135_v6 = vrot.slane %v2105_v23, 1  ;;  %v4848_v23 = vld [vmem:[%s3492_s6 + $0xd0] sm:$0x3] }
 0x50c   : > { %v2137_v7 = vsel %vm361_vm0, %v2135_v6, %v2136_v29 }
 0x50e   : > { %3298 = vrot.lane.b32.xlu0 %v3297_v33, %s3387_s28  ;;  %2073 = vrot.lane.b32.xlu1 %v2060_v8, %s3391_s8  ;;  %v1923_v8 = vmul.f32 %v4711_v43, %v1917_v22  ;;  %s3307_s28 = scalar_lea.vmem %s5279_s23, 384 }
 0x50f   : > { %p3308_p12 = scmp.ne.s32.totalorder %s5279_s23, %s3307_s28 }
 0x510   : > { %v1937_v37 = vrot.slane %v1923_v8, 1 }
 0x511   : > { %p3309_p13 = pnand %p3308_p12, %p3451_p4 }
 0x512   : > { %2075 = vrot.lane.b32.xlu0 %v2063_v30, %s3391_s8  ;;  %3303 = vrot.lane.b32.xlu1 %v3302_v42, %s3388_s29  ;;  %s3393_s29 = smov [#allocation2]  }
 0x513   : > { %p3310_p0 = pneg %p3309_p13  ;;  %s3311_s30 = sshll.u32 %s3393_s29, 4  ;;  %s3312_s30 = int_to_ptr.vmem [resolvable:$false] %s3311_s30 }
 0x514   : > { %s3313_s3 = scalar_lea.vmem %s3312_s30, 768  ;;  %p3314_p1 = scmp.lt.s32.totalorder %s5279_s23, %s3312_s30 }
 0x515   : > { %p3315_p2 = scmp.lt.s32.totalorder %s3313_s3, %s3307_s28 }
 0x516   : > { %2138 = vrot.lane.b32.xlu0 %v2122_v19, %s3392_s15  ;;  %2077 = vrot.lane.b32.xlu1 %v2066_v36, %s3391_s8 }
 0x517   : > { %p3316_p3 = por %p3315_p2, %p3314_p1 }
 0x519   : > { %p3317_p5 = pnand %p3316_p3, %p3310_p0 }
 0x51a   : > { %2142 = vrot.lane.b32.xlu0 %v2128_v12, %s3392_s15  ;;  %2140 = vrot.lane.b32.xlu1 %v2125_v0, %s3392_s15  ;;  %v4851_v0 = vld [vmem:[%s3492_s6 + $0xe8] sm:$0xfc] }
 0x51e   : > { %2146 = vrot.lane.b32.xlu0 %v2134_v49, %s3392_s15  ;;  %2144 = vrot.lane.b32.xlu1 %v2131_v62, %s3392_s15  ;;  %v4861_v49 = vld [vmem:[%s3492_s6 + $0xf0] sm:$0x3] }
 0x522   : > { %2148 = vrot.lane.b32.xlu1 %v2137_v7, %s3392_s15 }
 0x55c   : > { %v1883_v47 = vpop.permute.xlu0 %1882  ;;  %v1881_v32 = vpop.permute.xlu1 %1880 }
 0x55d   : > { %v1892_v51 = vsel %vm321_vm5, %v1881_v32, %v1883_v47 }
 0x55e   : > { %v1898_v10 = vadd.f32 %v1892_v51, %v4650_v60 }
 0x560   : > { %v1887_v46 = vpop.permute.xlu0 %1886  ;;  %v1885_v55 = vpop.permute.xlu1 %1884  ;;  %v1943_v16 = vadd.f32 %v1933_v45, %v1898_v10  ;;  %v4880_v10 = vld [vmem:[%s3492_s6 + $0x118] sm:$0x3]  ;;  %v4890_v45 = vld [vmem:[%s3492_s6 + $0x110] sm:$0x3] }
 0x561   : > { %v1893_v33 = vsel %vm321_vm5, %v1885_v55, %v1887_v46 }
 0x562   : > { %v1899_v25 = vadd.f32 %v1893_v33, %v4653_v34  ;;  %v1936_v34 = vsel %vm361_vm0, %v1934_v18, %v1935_v50 }
 0x564   : > { %v1891_v41 = vpop.permute.xlu0 %1890  ;;  %v1889_v2 = vpop.permute.xlu1 %1888  ;;  %v1944_v57 = vadd.f32 %v1936_v34, %v1899_v25 }
 0x565   : > { %v1894_v60 = vsel %vm321_vm5, %v1889_v2, %v1891_v41 }
 0x566   : > { %v1900_v42 = vadd.f32 %v1894_v60, %v4656_v39  ;;  %v1939_v39 = vsel %vm361_vm0, %v1937_v37, %v1938_v35 }
 0x568   : > { %v1999_v5 = vpop.permute.xlu0 %1998  ;;  %v1997_v56 = vpop.permute.xlu1 %1996  ;;  %v1945_v36 = vadd.f32 %v1939_v39, %v1900_v42 }
 0x569   : > { %v2008_v40 = vsel %vm239_vm3, %v1997_v56, %v1999_v5 }
 0x56a   : > { %v2014_v43 = vadd.f32 %v2008_v40, %v1943_v16 }
 0x56c   : > { %v2003_v1 = vpop.permute.xlu0 %2002  ;;  %v2001_v30 = vpop.permute.xlu1 %2000 }
 0x56d   : > { %v2009_v52 = vsel %vm239_vm3, %v2001_v30, %v2003_v1 }
 0x56e   : > { %v2015_v17 = vadd.f32 %v2009_v52, %v1944_v57 }
 0x570   : > { %v2007_v54 = vpop.permute.xlu0 %2006  ;;  %v2005_v14 = vpop.permute.xlu1 %2004 }
 0x571   : > { %v2010_v15 = vsel %vm239_vm3, %v2005_v14, %v2007_v54 }
 0x572   : > { %v4829_v11 = vadd.f32 %v2010_v15, %v1945_v36 }
 0x574   : > { %v2070_v4 = vpop.permute.xlu0 %2069  ;;  %v2068_v24 = vpop.permute.xlu1 %2067 }
 0x575   : > { %v2079_v19 = vsel %vm280_vm4, %v2068_v24, %v2070_v4 }
 0x576   : > { %v4832_v28 = vadd.f32 %v2079_v19, %v2014_v43 }
 0x578   : > { %v4840_v12 = vpop.permute.xlu0 %3293  ;;  %v4842_v13 = vpop.permute.xlu1 %3288 }
 0x579   : > { %v3290_v63 = vunpack.i.l.bf16 %v4842_v13  ;;  %v4864_v62 = vunpack.i.l.bf16 %v4840_v12 }
 0x57b   : > { %v2213_v6 = vmul.f32 %v3290_v63, %v4835_v27  ;;  %v2215_v29 = vmul.f32 %v3290_v63, %v4838_v38  ;;  %v2212_v7 = vmul.f32 %v3290_v63, %v4845_v44  ;;  %v2214_v31 = vmul.f32 %v3290_v63, %v4848_v23 }
 0x57c   : > { %v2072_v26 = vpop.permute.xlu0 %2071  ;;  %v4870_v22 = vpop.permute.xlu1 %2351  ;;  %v2217_v47 = vmul.f32 %v3290_v63, %v4851_v0  ;;  %v2219_v32 = vmul.f32 %v3290_v63, %v4855_v21  ;;  %v2216_v59 = vmul.f32 %v3290_v63, %v4858_v9  ;;  %v2218_v51 = vmul.f32 %v3290_v63, %v4861_v49 }
 0x57d   : > { %v2239_v46 = vrot.slane %v2213_v6, 2  ;;  %v2240_v55 = vrot.slane %v2215_v29, 2  ;;  %v2236_v20 = vrot.slane %v2212_v7, 2  ;;  %v2237_v33 = vrot.slane %v2214_v31, 2 }
 0x57e   : > { %v2245_v58 = vrot.slane %v2217_v47, 2  ;;  %v2246_v53 = vrot.slane %v2219_v32, 2  ;;  %v2242_v25 = vrot.slane %v2216_v59, 2  ;;  %v2243_v41 = vrot.slane %v2218_v51, 2 }
 0x57f   : > { %v2241_v2 = vsel %vm620_vm1, %v2239_v46, %v2240_v55  ;;  %v2238_v8 = vsel %vm620_vm1, %v2236_v20, %v2237_v33  ;;  %v2221_v48 = vmul.f32 %v3290_v63, %v4877_v61  ;;  %v2223_v60 = vmul.f32 %v3290_v63, %v4880_v10 }
 0x580   : > { %v4892_v18 = vpop.permute.xlu0 %3298  ;;  %v2074_v50 = vpop.permute.xlu1 %2073  ;;  %2256 = vrot.lane.b32.xlu1 %v2241_v2, %s3390_s7  ;;  %2254 = vrot.lane.b32.xlu0 %v2238_v8, %s3390_s7  ;;  %v2220_v42 = vmul.f32 %v3290_v63, %v4883_v3  ;;  %v2247_v56 = vsel %vm620_vm1, %v2245_v58, %v2246_v53  ;;  %v2244_v16 = vsel %vm620_vm1, %v2242_v25, %v2243_v41 }
 0x581   : > { %v2080_v5 = vsel %vm280_vm4, %v2072_v26, %v2074_v50  ;;  %v2251_v40 = vrot.slane %v2221_v48, 2  ;;  %v2252_v37 = vrot.slane %v2223_v60, 2  ;;  %v2222_v35 = vmul.f32 %v3290_v63, %v4890_v45 }
 0x582   : > { %v4900_v34 = vadd.f32 %v2080_v5, %v2015_v17  ;;  %v2248_v43 = vrot.slane %v2220_v42, 2  ;;  %v2284_v1 = vmul.f32 %v4864_v62, %v4835_v27  ;;  %v2286_v57 = vmul.f32 %v4864_v62, %v4838_v38 }
 0x583   : > { %v2283_v30 = vmul.f32 %v4864_v62, %v4845_v44  ;;  %v2285_v52 = vmul.f32 %v4864_v62, %v4848_v23  ;;  %v2249_v17 = vrot.slane %v2222_v35, 2  ;;  %v2288_v15 = vmul.f32 %v4864_v62, %v4851_v0 }
 0x584   : > { %v2076_v39 = vpop.permute.xlu0 %2075  ;;  %v4911_v54 = vpop.permute.xlu1 %3303  ;;  %2260 = vrot.lane.b32.xlu1 %v2247_v56, %s3390_s7  ;;  %2258 = vrot.lane.b32.xlu0 %v2244_v16, %s3390_s7  ;;  %v2310_v36 = vrot.slane %v2284_v1, 2  ;;  %v2311_v14 = vrot.slane %v2286_v57, 2  ;;  %v2290_v19 = vmul.f32 %v4864_v62, %v4855_v21  ;;  %v2253_v63 = vsel %vm620_vm1, %v2251_v40, %v2252_v37 }
 0x585   : > { %v2307_v4 = vrot.slane %v2283_v30, 2  ;;  %v2308_v24 = vrot.slane %v2285_v52, 2  ;;  %v2250_v6 = vsel %vm620_vm1, %v2248_v43, %v2249_v17  ;;  %v2287_v29 = vmul.f32 %v4864_v62, %v4858_v9 }
 0x586   : > { %v2289_v7 = vmul.f32 %v4864_v62, %v4861_v49  ;;  %v2312_v47 = vsel %vm620_vm1, %v2310_v36, %v2311_v14  ;;  %v2316_v59 = vrot.slane %v2288_v15, 2  ;;  %v2317_v55 = vrot.slane %v2290_v19, 2 }
 0x587   : > { %v2309_v32 = vsel %vm620_vm1, %v2307_v4, %v2308_v24  ;;  %v2292_v20 = vmul.f32 %v4864_v62, %v4877_v61  ;;  %v2294_v33 = vmul.f32 %v4864_v62, %v4880_v10  ;;  %v2313_v58 = vrot.slane %v2287_v29, 2 }
 0x588   : > { %v2078_v31 = vpop.permute.xlu1 %2077  ;;  %2264 = vrot.lane.b32.xlu1 %v2253_v63, %s3390_s7  ;;  %2262 = vrot.lane.b32.xlu0 %v2250_v6, %s3390_s7  ;;  %v2139_v51 = vpop.permute.xlu0 %2138  ;;  %v2314_v53 = vrot.slane %v2289_v7, 2  ;;  %v2291_v25 = vmul.f32 %v4864_v62, %v4883_v3  ;;  %v2293_v41 = vmul.f32 %v4864_v62, %v4890_v45  ;;  %v2357_v48 = vmul.f32 %v4838_v38, %v4870_v22 }
 0x589   : > { %v2081_v26 = vsel %vm280_vm4, %v2076_v39, %v2078_v31  ;;  %v2354_v60 = vmul.f32 %v4845_v44, %v4870_v22  ;;  %v2356_v50 = vmul.f32 %v4848_v23, %v4870_v22  ;;  %v2318_v42 = vsel %vm620_vm1, %v2316_v59, %v2317_v55  ;;  %v3114_v55 = vld [vmem:[%s3492_s6 + $0x128] sm:$0xff] }
 0x58a   : > { %v4931_v46 = vadd.f32 %v2081_v26, %v4829_v11  ;;  %v2355_v11 = vmul.f32 %v4835_v27, %v4870_v22  ;;  %v2322_v5 = vrot.slane %v2292_v20, 2  ;;  %v2315_v56 = vsel %vm620_vm1, %v2313_v58, %v2314_v53  ;;  %v4996_v20 = vld [vmem:[%s3492_s6 + $0x120] sm:$0xff]  ;;  %v3116_v53 = vld [vmem:[%s3492_s6 + $0x148] sm:$0xff] }
 0x58b   : > { %v2323_v27 = vrot.slane %v2294_v33, 2  ;;  %v2319_v16 = vrot.slane %v2291_v25, 2  ;;  %v2320_v40 = vrot.slane %v2293_v41, 2  ;;  %v2382_v1 = vrot.slane %v2357_v48, 2  ;;  %v5003_v25 = vld [vmem:[%s3492_s6 + $0x140] sm:$0xff] }
 0x58c   : > { %v2141_v2 = vpop.permute.xlu1 %2140  ;;  %2327 = vrot.lane.b32.xlu1 %v2312_v47, %s3391_s8  ;;  %2325 = vrot.lane.b32.xlu0 %v2309_v32, %s3391_s8  ;;  %v2143_v37 = vpop.permute.xlu0 %2142  ;;  %v2381_v38 = vrot.slane %v2355_v11, 2  ;;  %v2379_v57 = vrot.slane %v2356_v50, 2  ;;  %v2359_v52 = vmul.f32 %v4851_v0, %v4870_v22  ;;  %v2361_v39 = vmul.f32 %v4855_v21, %v4870_v22  ;;  %v5010_v11 = vld [vmem:[%s3492_s6 + $0x160] sm:$0xff] }
 0x58d   : > { %v2150_v8 = vsel %vm321_vm5, %v2139_v51, %v2141_v2  ;;  %v2358_v17 = vmul.f32 %v4858_v9, %v4870_v22  ;;  %v2324_v36 = vsel %vm620_vm1, %v2322_v5, %v2323_v27  ;;  %v2321_v14 = vsel %vm620_vm1, %v2319_v16, %v2320_v40  ;;  %v3118_v2 = vld [vmem:[%s3492_s6 + $0x168] sm:$0xff]  ;;  %v3125_v5 = vld [vmem:[%s3492_s6 + $0x138] sm:$0x1]  ;;  %v3124_v27 = vld [vmem:[%s3492_s6 + $0x130] sm:$0x1] }
 0x58e   : > { %v4953_v62 = vadd.f32 %v2150_v8, %v4832_v28  ;;  %v2378_v28 = vrot.slane %v2354_v60, 2  ;;  %v2360_v15 = vmul.f32 %v4861_v49, %v4870_v22  ;;  %v2387_v4 = vrot.slane %v2359_v52, 2  ;;  %v3127_v16 = vld [vmem:[%s3492_s6 + $0x148] sm:$0xfe] }
 0x58f   : > { %v2388_v21 = vrot.slane %v2361_v39, 2  ;;  %v2384_v24 = vrot.slane %v2358_v17, 2  ;;  %v2363_v19 = vmul.f32 %v4877_v61, %v4870_v22  ;;  %v2365_v6 = vmul.f32 %v4880_v10, %v4870_v22 }
 0x590   : > { %v2145_v35 = vpop.permute.xlu1 %2144  ;;  %2331 = vrot.lane.b32.xlu1 %v2318_v42, %s3391_s8  ;;  %2329 = vrot.lane.b32.xlu0 %v2315_v56, %s3391_s8  ;;  %v2380_v0 = vsel %vm620_vm1, %v2378_v28, %v2379_v57  ;;  %v2385_v63 = vrot.slane %v2360_v15, 2  ;;  %v2362_v29 = vmul.f32 %v4883_v3, %v4870_v22  ;;  %v2364_v7 = vmul.f32 %v4890_v45, %v4870_v22  ;;  %v3123_v42 = vld [vmem:[%s3492_s6 + $0x128] sm:$0xfe]  ;;  %v3122_v56 = vld [vmem:[%s3492_s6 + $0x120] sm:$0xfe] }
 0x591   : > { %v2151_v43 = vsel %vm321_vm5, %v2143_v37, %v2145_v35  ;;  %v2389_v31 = vsel %vm620_vm1, %v2387_v4, %v2388_v21  ;;  %v2393_v26 = vrot.slane %v2363_v19, 2  ;;  %v2394_v10 = vrot.slane %v2365_v6, 2  ;;  %v5026_v35 = vld [vmem:[%s3492_s6 + $0x158] sm:$0x1]  ;;  %v5052_v6 = vld [vmem:[%s3492_s6 + $0x160] sm:$0xfe] }
 0x592   : > { %v4961_v30 = vadd.f32 %v2151_v43, %v4900_v34  ;;  %v2383_v34 = vsel %vm620_vm1, %v2381_v38, %v2382_v1  ;;  %v2386_v61 = vsel %vm620_vm1, %v2384_v24, %v2385_v63  ;;  %v2390_v47 = vrot.slane %v2362_v29, 2  ;;  %v5032_v38 = vld [vmem:[%s3492_s6 + $0x150] sm:$0x1]  ;;  %v5047_v4 = vld [vmem:[%s3492_s6 + $0x178] sm:$0x1] }
 0x593   : > { %v2391_v32 = vrot.slane %v2364_v7, 2  ;;  %v3291_v22 = vunpack.i.h.bf16 %v4842_v13  ;;  %v2395_v59 = vsel %vm620_vm1, %v2393_v26, %v2394_v10  ;;  %v3296_v8 = vunpack.i.h.bf16 %v4840_v12  ;;  %v5029_v12 = vld [vmem:[%s3492_s6 + $0x140] sm:$0xfe] }
 0x594   : > { %2335 = vrot.lane.b32.xlu1 %v2324_v36, %s3391_s8  ;;  %2333 = vrot.lane.b32.xlu0 %v2321_v14, %s3391_s8  ;;  %v3300_v50 = vunpack.i.l.bf16 %v4892_v18 }
 0x595   : > { %v2392_v51 = vsel %vm620_vm1, %v2390_v47, %v2391_v32  ;;  %v2441_v33 = vmul.f32 %v3291_v22, %v3114_v55  ;;  %v2440_v58 = vmul.f32 %v3291_v22, %v4996_v20  ;;  %v2443_v13 = vmul.f32 %v3291_v22, %v3116_v53 }
 0x596   : > { %v2442_v41 = vmul.f32 %v3291_v22, %v5003_v25  ;;  %v2445_v48 = vmul.f32 %v3291_v22, %v3118_v2  ;;  %v2444_v60 = vmul.f32 %v3291_v22, %v5010_v11  ;;  %v2481_v40 = vmul.f32 %v3296_v8, %v3114_v55 }
 0x597   : > { %v2480_v37 = vmul.f32 %v3296_v8, %v4996_v20  ;;  %v2567_v43 = vmul.f32 %v3300_v50, %v3123_v42  ;;  %v2569_v1 = vmul.f32 %v3300_v50, %v3125_v5  ;;  %v2566_v28 = vmul.f32 %v3300_v50, %v3122_v56 }
 0x598   : > { %2398 = vrot.lane.b32.xlu1 %v2383_v34, %s3392_s15  ;;  %2396 = vrot.lane.b32.xlu0 %v2380_v0, %s3392_s15  ;;  %v2568_v57 = vmul.f32 %v3300_v50, %v3124_v27  ;;  %v2571_v52 = vmul.f32 %v3300_v50, %v3127_v16  ;;  %v2573_v39 = vmul.f32 %v3300_v50, %v5026_v35  ;;  %v5041_v34 = vunpack.i.l.bf16 %v4911_v54  ;;  %v5044_v0 = vld [vmem:[%s3492_s6 + $0x168] sm:$0xfe] }
 0x599   : > { %v2570_v17 = vmul.f32 %v3300_v50, %v5029_v12  ;;  %v2572_v36 = vmul.f32 %v3300_v50, %v5032_v38  ;;  %v2483_v14 = vmul.f32 %v3296_v8, %v3116_v53  ;;  %v2482_v15 = vmul.f32 %v3296_v8, %v5003_v25 }
 0x59a   : > { %v2593_v21 = vrot.slane %v2567_v43, 1  ;;  %v2594_v24 = vrot.slane %v2569_v1, 1  ;;  %v2590_v19 = vrot.slane %v2566_v28, 1  ;;  %v2591_v63 = vrot.slane %v2568_v57, 1 }
 0x59b   : > { %v2599_v29 = vrot.slane %v2571_v52, 1  ;;  %v2600_v7 = vrot.slane %v2573_v39, 1  ;;  %v2597_v26 = vrot.slane %v2572_v36, 1  ;;  %v2485_v10 = vmul.f32 %v3296_v8, %v3118_v2 }
 0x59c   : > { %2402 = vrot.lane.b32.xlu1 %v2389_v31, %s3392_s15  ;;  %2400 = vrot.lane.b32.xlu0 %v2386_v61, %s3392_s15  ;;  %v2596_v31 = vrot.slane %v2570_v17, 1  ;;  %v5055_v61 = vld [vmem:[%s3492_s6 + $0x170] sm:$0x1]  ;;  %v2484_v47 = vmul.f32 %v3296_v8, %v5010_v11  ;;  %v2575_v32 = vmul.f32 %v3300_v50, %v5044_v0  ;;  %v2577_v22 = vmul.f32 %v3300_v50, %v5047_v4 }
 0x59d   : > { %v2576_v55 = vmul.f32 %v3300_v50, %v5055_v61  ;;  %v2592_v53 = vsel %vm361_vm0, %v2590_v19, %v2591_v63  ;;  %v2639_v43 = vmul.f32 %v5041_v34, %v3124_v27  ;;  %v2642_v39 = vmul.f32 %v5041_v34, %v3127_v16 }
 0x59e   : > { %v2605_v2 = vrot.slane %v2575_v32, 1  ;;  %v2606_v8 = vrot.slane %v2577_v22, 1  ;;  %v5101_v32 = vunpack.i.h.bf16 %v4892_v18  ;;  %v2646_v18 = vmul.f32 %v5041_v34, %v5044_v0 }
 0x59f   : > { %v2603_v1 = vrot.slane %v2576_v55, 1  ;;  %v2662_v16 = vrot.slane %v2639_v43, 1 }
 0x5a0   : > { %2406 = vrot.lane.b32.xlu1 %v2395_v59, %s3392_s15  ;;  %2404 = vrot.lane.b32.xlu0 %v2392_v51, %s3392_s15  ;;  %v2574_v59 = vmul.f32 %v3300_v50, %v5052_v6  ;;  %v5062_v51 = vld [vmem:[%s3474_s27 + $0x20] ss:$56 sps:$4 sm:$0xff]   ;;  %v2637_v50 = vmul.f32 %v5041_v34, %v3122_v56  ;;  %v2676_v43 = vrot.slane %v2646_v18, 1 }
 0x5a4   : > { %2454 = vrot.lane.b32.xlu1 %v2441_v33, %s3390_s7  ;;  %2452 = vrot.lane.b32.xlu0 %v2440_v58, %s3390_s7  ;;  %v2527_v33 = vunpack.c.h.bf16 %v5062_v51  ;;  %v2595_v58 = vsel %vm361_vm0, %v2593_v21, %v2594_v24 }
 0x5a8   : > { %2458 = vrot.lane.b32.xlu1 %v2443_v13, %s3390_s7  ;;  %2456 = vrot.lane.b32.xlu0 %v2442_v41, %s3390_s7  ;;  %v2601_v13 = vsel %vm361_vm0, %v2599_v29, %v2600_v7  ;;  %v2598_v41 = vsel %vm361_vm0, %v2596_v31, %v2597_v26  ;;  %v2644_v29 = vmul.f32 %v5041_v34, %v5026_v35 }
 0x5a9   : > { %v2641_v31 = vmul.f32 %v5041_v34, %v5029_v12  ;;  %v2643_v26 = vmul.f32 %v5041_v34, %v5032_v38  ;;  %v2607_v35 = vsel %vm361_vm0, %v2605_v2, %v2606_v8  ;;  %v2648_v2 = vmul.f32 %v5041_v34, %v5047_v4 }
 0x5aa   : > { %v2645_v8 = vmul.f32 %v5041_v34, %v5052_v6 }
 0x5ac   : > { %2462 = vrot.lane.b32.xlu1 %v2445_v48, %s3390_s7  ;;  %2460 = vrot.lane.b32.xlu0 %v2444_v60, %s3390_s7  ;;  %v2638_v48 = vmul.f32 %v5041_v34, %v3123_v42  ;;  %v2529_v60 = vrot.slane %v2527_v33, 7  ;;  %v2671_v33 = vrot.slane %v2644_v29, 1 }
 0x5ae   : > { %v2531_v28 = vmul.f32 %v3122_v56, %v2529_v60  ;;  %v2532_v57 = vmul.f32 %v3124_v27, %v2529_v60  ;;  %v2533_v52 = vmul.f32 %v5029_v12, %v2529_v60  ;;  %v2534_v42 = vmul.f32 %v5032_v38, %v2529_v60 }
 0x5af   : > { %v2535_v17 = vmul.f32 %v5052_v6, %v2529_v60  ;;  %v2664_v36 = vrot.slane %v2638_v48, 1  ;;  %v2661_v27 = vrot.slane %v2637_v50, 1  ;;  %v2670_v12 = vrot.slane %v2642_v39, 1  ;;  %v5125_v48 = vld [vmem:[%s3474_s27 + $0x8c] sm:$0xff]   ;;  %s5285_s27 = scalar_lea.hbm %s5337_s2, %s3158_s24 }
 0x5b0   : > { %2494 = vrot.lane.b32.xlu1 %v2481_v40, %s3391_s8  ;;  %2492 = vrot.lane.b32.xlu0 %v2480_v37, %s3391_s8  ;;  %v2602_v40 = vrot.slane %v2574_v59, 1  ;;  %v2640_v37 = vmul.f32 %v5041_v34, %v3125_v5  ;;  %v2536_v5 = vmul.f32 %v5055_v61, %v2529_v60  ;;  %v2546_v21 = vrot.slane %v2533_v52, 1  ;;  %v5106_v59 = vld [vmem:[%s3492_s6 + $0x128] sm:$0xfc]  ;;  %v5128_v60 = vld [vmem:[%s3492_s6 + $0x130] sm:$0x3] }
 0x5b1   : > { %v2547_v19 = vrot.slane %v2534_v42, 1  ;;  %v2549_v63 = vrot.slane %v2535_v17, 1  ;;  %v2663_v55 = vsel %vm361_vm0, %v2661_v27, %v2662_v16  ;;  %v2714_v0 = vunpack.c.h.bf16 %v5125_v48  ;;  %v5146_v52 = vld [vmem:[%s3492_s6 + $0x140] sm:$0xfc]  ;;  %v5149_v39 = vld [vmem:[%s3492_s6 + $0x150] sm:$0x3] }
 0x5b2   : > { %v2665_v24 = vrot.slane %v2640_v37, 1  ;;  %v2550_v56 = vrot.slane %v2536_v5, 1  ;;  %v2604_v22 = vsel %vm361_vm0, %v2602_v40, %v2603_v1  ;;  %v2647_v40 = vmul.f32 %v5041_v34, %v5055_v61  ;;  %v5152_v42 = vld [vmem:[%s3492_s6 + $0x148] sm:$0xfc]  ;;  %v5155_v17 = vld [vmem:[%s3492_s6 + $0x158] sm:$0x3] }
 0x5b3   : > { %v2754_v37 = vmul.f32 %v5101_v32, %v5106_v59  ;;  %v2672_v50 = vsel %vm361_vm0, %v2670_v12, %v2671_v33  ;;  %v2716_v1 = vrot.slane %v2714_v0, 6  ;;  %v2677_v61 = vrot.slane %v2648_v2, 1  ;;  %v3145_v12 = vld [vmem:[%s3492_s6 + $0x160] sm:$0xfc]  ;;  %v3146_v0 = vld [vmem:[%s3492_s6 + $0x168] sm:$0xfc] }
 0x5b4   : > { %2498 = vrot.lane.b32.xlu1 %v2483_v14, %s3391_s8  ;;  %2496 = vrot.lane.b32.xlu0 %v2482_v15, %s3391_s8  ;;  %v2543_v14 = vrot.slane %v2531_v28, 1  ;;  %v2544_v15 = vrot.slane %v2532_v57, 1  ;;  %v2666_v38 = vsel %vm361_vm0, %v2664_v36, %v2665_v24  ;;  %v2673_v28 = vrot.slane %v2645_v8, 1 }
 0x5b5   : > { %v2755_v57 = vmul.f32 %v5101_v32, %v5128_v60  ;;  %v2719_v36 = vmul.f32 %v5128_v60, %v2716_v1  ;;  %v2780_v24 = vrot.slane %v2754_v37, 2  ;;  %v2722_v18 = vmul.f32 %v3145_v12, %v2716_v1 }
 0x5b6   : > { %v5088_v7 = vsel %vm361_vm0, %v2543_v14, %v2544_v15  ;;  %v2720_v14 = vmul.f32 %v5146_v52, %v2716_v1  ;;  %v2721_v15 = vmul.f32 %v5149_v39, %v2716_v1  ;;  %v2759_v8 = vmul.f32 %v5101_v32, %v5149_v39 }
 0x5b7   : > { %v2731_v27 = vrot.slane %v2719_v36, 2  ;;  %v2736_v37 = vrot.slane %v2722_v18, 2 }
 0x5b8   : > { %2502 = vrot.lane.b32.xlu1 %v2485_v10, %s3391_s8  ;;  %2500 = vrot.lane.b32.xlu0 %v2484_v47, %s3391_s8  ;;  %v5095_v10 = vsel %vm361_vm0, %v2546_v21, %v2547_v19  ;;  %v5098_v47 = vsel %vm361_vm0, %v2549_v63, %v2550_v56  ;;  %v2674_v21 = vrot.slane %v2647_v40, 1  ;;  %v2733_v16 = vrot.slane %v2720_v14, 2  ;;  %v3148_v40 = vld [vmem:[%s3492_s6 + $0x178] sm:$0x3] }
 0x5b9   : > { %v2734_v29 = vrot.slane %v2721_v15, 2  ;;  %v2764_v36 = vmul.f32 %v5101_v32, %v3148_v40  ;;  %v2761_v14 = vmul.f32 %v5101_v32, %v3145_v12 }
 0x5ba   : > { %v2675_v2 = vsel %vm361_vm0, %v2673_v28, %v2674_v21  ;;  %v2762_v28 = vmul.f32 %v5101_v32, %v3146_v0 }
 0x5bb   : > { %v5175_v33 = vsel %vm620_vm1, %v2733_v16, %v2734_v29  ;;  %v2793_v16 = vrot.slane %v2764_v36, 2  ;;  %v2789_v29 = vrot.slane %v2761_v14, 2 }
 0x5bc   : > { %2610 = vrot.lane.b32.xlu1 %v2595_v58, %s3390_s7  ;;  %2608 = vrot.lane.b32.xlu0 %v2592_v53, %s3390_s7  ;;  %v5115_v58 = vld [vmem:[%s3492_s6 + $0x138] sm:$0x3]  ;;  %v5118_v53 = vld [vmem:[%s3492_s6 + $0x120] sm:$0xfc] }
 0x5bd   : > { %v2756_v4 = vmul.f32 %v5101_v32, %v5115_v58  ;;  %v2753_v6 = vmul.f32 %v5101_v32, %v5118_v53  ;;  %v2718_v5 = vmul.f32 %v5118_v53, %v2716_v1 }
 0x5bf   : > { %v2781_v19 = vrot.slane %v2756_v4, 2  ;;  %v2777_v63 = vrot.slane %v2753_v6, 2  ;;  %v2730_v56 = vrot.slane %v2718_v5, 2  ;;  %v3306_v6 = vunpack.i.h.bf16 %v4911_v54 }
 0x5c0   : > { %2614 = vrot.lane.b32.xlu1 %v2601_v13, %s3390_s7  ;;  %2612 = vrot.lane.b32.xlu0 %v2598_v41, %s3390_s7  ;;  %v2667_v13 = vrot.slane %v2641_v31, 1  ;;  %v2668_v41 = vrot.slane %v2643_v26, 1  ;;  %v2778_v31 = vrot.slane %v2755_v57, 2  ;;  %v2758_v26 = vmul.f32 %v5101_v32, %v5152_v42 }
 0x5c1   : > { %v2784_v5 = vrot.slane %v2759_v8, 2  ;;  %v2825_v54 = vmul.f32 %v3306_v6, %v5106_v59  ;;  %v2827_v21 = vmul.f32 %v3306_v6, %v5115_v58  ;;  %v2829_v58 = vmul.f32 %v3306_v6, %v5152_v42 }
 0x5c2   : > { %v2669_v34 = vsel %vm361_vm0, %v2667_v13, %v2668_v41  ;;  %v2678_v41 = vsel %vm361_vm0, %v2676_v43, %v2677_v61  ;;  %v2779_v43 = vsel %vm620_vm1, %v2777_v63, %v2778_v31  ;;  %v2824_v63 = vmul.f32 %v3306_v6, %v5118_v53 }
 0x5c3   : > { %v2851_v31 = vrot.slane %v2825_v54, 2  ;;  %v2852_v59 = vrot.slane %v2827_v21, 2  ;;  %v2828_v18 = vmul.f32 %v3306_v6, %v5146_v52  ;;  %v2173_v42 = vunpack.c.l.bf16 %v5125_v48  ;;  %v2147_v21 = vpop.permute.xlu0 %2146 }
 0x5c4   : > { %2618 = vrot.lane.b32.xlu1 %v2607_v35, %s3390_s7  ;;  %2616 = vrot.lane.b32.xlu0 %v2604_v22, %s3390_s7  ;;  %v2760_v35 = vmul.f32 %v5101_v32, %v5155_v17  ;;  %v2757_v22 = vmul.f32 %v5101_v32, %v5146_v52 }
 0x5c6   : > { %v2783_v61 = vrot.slane %v2757_v22, 2  ;;  %v2831_v22 = vmul.f32 %v3306_v6, %v5155_v17 }
 0x5c8   : > { %2681 = vrot.lane.b32.xlu1 %v2666_v38, %s3391_s8  ;;  %2679 = vrot.lane.b32.xlu0 %v2663_v55, %s3391_s8  ;;  %v3147_v38 = vld [vmem:[%s3492_s6 + $0x170] sm:$0x3]  ;;  %v5172_v55 = vsel %vm620_vm1, %v2730_v56, %v2731_v27  ;;  %v2826_v56 = vmul.f32 %v3306_v6, %v5128_v60  ;;  %v2785_v27 = vsel %vm620_vm1, %v2783_v61, %v2784_v5  ;;  %v2858_v17 = vrot.slane %v2831_v22, 2 }
 0x5c9   : > { %v2723_v13 = vmul.f32 %v3147_v38, %v2716_v1  ;;  %v2786_v1 = vrot.slane %v2758_v26, 2  ;;  %v2763_v15 = vmul.f32 %v5101_v32, %v3147_v38  ;;  %v2848_v26 = vrot.slane %v2824_v63, 2 }
 0x5ca   : > { %v2834_v52 = vmul.f32 %v3306_v6, %v3147_v38  ;;  %v2175_v61 = vrot.slane %v2173_v42, 6 }
 0x5cb   : > { %v2737_v4 = vrot.slane %v2723_v13, 2  ;;  %v2790_v32 = vrot.slane %v2763_v15, 2  ;;  %v2830_v13 = vmul.f32 %v3306_v6, %v5149_v39 }
 0x5cc   : > { %2685 = vrot.lane.b32.xlu1 %v2672_v50, %s3391_s8  ;;  %2683 = vrot.lane.b32.xlu0 %v2669_v34, %s3391_s8  ;;  %v2782_v50 = vsel %vm620_vm1, %v2780_v24, %v2781_v19  ;;  %v2787_v34 = vrot.slane %v2760_v35, 2  ;;  %v2792_v19 = vrot.slane %v2762_v28, 2  ;;  %v2849_v35 = vrot.slane %v2826_v56, 2 }
 0x5cd   : > { %v5190_v57 = vsel %vm620_vm1, %v2736_v37, %v2737_v4  ;;  %v2791_v60 = vsel %vm620_vm1, %v2789_v29, %v2790_v32  ;;  %v2833_v37 = vmul.f32 %v3306_v6, %v3146_v0  ;;  %v2835_v4 = vmul.f32 %v3306_v6, %v3148_v40 }
 0x5ce   : > { %v2788_v24 = vsel %vm620_vm1, %v2786_v1, %v2787_v34  ;;  %v2794_v53 = vsel %vm620_vm1, %v2792_v19, %v2793_v16  ;;  %v2850_v8 = vsel %vm620_vm1, %v2848_v26, %v2849_v35  ;;  %v2855_v1 = vrot.slane %v2830_v13, 2 }
 0x5cf   : > { %v2832_v34 = vmul.f32 %v3306_v6, %v3145_v12  ;;  %v2864_v48 = vrot.slane %v2835_v4, 2  ;;  %v2861_v36 = vrot.slane %v2834_v52, 2  ;;  %v2177_v0 = vmul.f32 %v4845_v44, %v2175_v61 }
 0x5d0   : > { %2689 = vrot.lane.b32.xlu1 %v2678_v41, %s3391_s8  ;;  %2687 = vrot.lane.b32.xlu0 %v2675_v2, %s3391_s8  ;;  %v2853_v41 = vsel %vm620_vm1, %v2851_v31, %v2852_v59  ;;  %v2857_v2 = vrot.slane %v2829_v58, 2  ;;  %v2178_v40 = vmul.f32 %v4848_v23, %v2175_v61  ;;  %v2179_v6 = vmul.f32 %v4858_v9, %v2175_v61 }
 0x5d1   : > { %v2860_v5 = vrot.slane %v2832_v34, 2  ;;  %v2180_v14 = vmul.f32 %v4861_v49, %v2175_v61  ;;  %v2189_v15 = vrot.slane %v2177_v0, 2  ;;  %v2181_v44 = vmul.f32 %v4883_v3, %v2175_v61 }
 0x5d2   : > { %v2859_v39 = vsel %vm620_vm1, %v2857_v2, %v2858_v17  ;;  %v2190_v54 = vrot.slane %v2178_v40, 2  ;;  %v2192_v19 = vrot.slane %v2179_v6, 2  ;;  %v2182_v23 = vmul.f32 %v4890_v45, %v2175_v61 }
 0x5d3   : > { %v2862_v38 = vsel %vm620_vm1, %v2860_v5, %v2861_v36  ;;  %v2193_v63 = vrot.slane %v2180_v14, 2  ;;  %v2195_v31 = vrot.slane %v2181_v44, 2  ;;  %v2426_v52 = vunpack.c.l.bf16 %v5062_v51 }
 0x5d4   : > { %2797 = vrot.lane.b32.xlu1 %v2782_v50, %s3390_s7  ;;  %2795 = vrot.lane.b32.xlu0 %v2779_v43, %s3390_s7  ;;  %v2854_v50 = vrot.slane %v2828_v18, 2  ;;  %v2863_v43 = vrot.slane %v2833_v37, 2  ;;  %v2191_v56 = vsel %vm620_vm1, %v2189_v15, %v2190_v54  ;;  %v2196_v59 = vrot.slane %v2182_v23, 2 }
 0x5d5   : > { %v2201_v29 = vadd.f32 %v2191_v56, %v4953_v62  ;;  %v2194_v9 = vsel %vm620_vm1, %v2192_v19, %v2193_v63  ;;  %v2428_v40 = vmul.f32 %v5003_v25, %v2426_v52 }
 0x5d6   : > { %v2856_v28 = vsel %vm620_vm1, %v2854_v50, %v2855_v1  ;;  %v2865_v12 = vsel %vm620_vm1, %v2863_v43, %v2864_v48  ;;  %v2202_v3 = vadd.f32 %v2194_v9, %v4961_v30  ;;  %v2427_v48 = vmul.f32 %v4996_v20, %v2426_v52 }
 0x5d8   : > { %2801 = vrot.lane.b32.xlu1 %v2788_v24, %s3390_s7  ;;  %2799 = vrot.lane.b32.xlu0 %v2785_v27, %s3390_s7  ;;  %v2149_v24 = vpop.permute.xlu1 %2148 }
 0x5d9   : > { %v2152_v49 = vsel %vm321_vm5, %v2147_v21, %v2149_v24  ;;  %v2429_v21 = vmul.f32 %v5010_v11, %v2426_v52 }
 0x5da   : > { %v2158_v26 = vadd.f32 %v2152_v49, %v4931_v46 }
 0x5dc   : > { %2805 = vrot.lane.b32.xlu1 %v2794_v53, %s3390_s7  ;;  %2803 = vrot.lane.b32.xlu0 %v2791_v60, %s3390_s7  ;;  %v2197_v53 = vsel %vm620_vm1, %v2195_v31, %v2196_v59 }
 0x5dd   : > { %v2203_v18 = vadd.f32 %v2197_v53, %v2158_v26 }
 0x5e0   : > { %2868 = vrot.lane.b32.xlu1 %v2853_v41, %s3391_s8  ;;  %2866 = vrot.lane.b32.xlu0 %v2850_v8, %s3391_s8 }
 0x5e4   : > { %2872 = vrot.lane.b32.xlu1 %v2859_v39, %s3391_s8  ;;  %2870 = vrot.lane.b32.xlu0 %v2856_v28, %s3391_s8 }
 0x5e8   : > { %2876 = vrot.lane.b32.xlu1 %v2865_v12, %s3391_s8  ;;  %2874 = vrot.lane.b32.xlu0 %v2862_v38, %s3391_s8 }
 0x5f2   : > { %v2257_v27 = vpop.permute.xlu1 %2256  ;;  %v2255_v16 = vpop.permute.xlu0 %2254 }
 0x5f3   : > { %v2266_v32 = vsel %vm239_vm3, %v2255_v16, %v2257_v27 }
 0x5f4   : > { %v2272_v58 = vadd.f32 %v2266_v32, %v2201_v29 }
 0x5f6   : > { %v2261_v35 = vpop.permute.xlu1 %2260  ;;  %v2259_v22 = vpop.permute.xlu0 %2258 }
 0x5f7   : > { %v2267_v45 = vsel %vm239_vm3, %v2259_v22, %v2261_v35 }
 0x5f8   : > { %v2273_v62 = vadd.f32 %v2267_v45, %v2202_v3 }
 0x5fa   : > { %v2265_v60 = vpop.permute.xlu1 %2264  ;;  %v2263_v13 = vpop.permute.xlu0 %2262 }
 0x5fb   : > { %v2268_v41 = vsel %vm239_vm3, %v2263_v13, %v2265_v60 }
 0x5fc   : > { %v2274_v2 = vadd.f32 %v2268_v41, %v2203_v18 }
 0x5fe   : > { %v2328_v42 = vpop.permute.xlu1 %2327  ;;  %v2326_v8 = vpop.permute.xlu0 %2325 }
 0x5ff   : > { %v2337_v17 = vsel %vm280_vm4, %v2326_v8, %v2328_v42 }
 0x600   : > { %v2343_v46 = vadd.f32 %v2337_v17, %v2272_v58 }
 0x602   : > { %v2332_v37 = vpop.permute.xlu1 %2331  ;;  %v2330_v4 = vpop.permute.xlu0 %2329 }
 0x603   : > { %v2338_v30 = vsel %vm280_vm4, %v2330_v4, %v2332_v37 }
 0x604   : > { %v2344_v50 = vadd.f32 %v2338_v30, %v2273_v62 }
 0x606   : > { %v2336_v1 = vpop.permute.xlu1 %2335  ;;  %v2334_v34 = vpop.permute.xlu0 %2333 }
 0x607   : > { %v2339_v39 = vsel %vm280_vm4, %v2334_v34, %v2336_v1 }
 0x608   : > { %v2345_v43 = vadd.f32 %v2339_v39, %v2274_v2 }
 0x60a   : > { %v2399_v61 = vpop.permute.xlu1 %2398  ;;  %v2397_v28 = vpop.permute.xlu0 %2396 }
 0x60b   : > { %v2408_v5 = vsel %vm321_vm5, %v2397_v28, %v2399_v61 }
 0x60c   : > { %v2414_v36 = vadd.f32 %v2408_v5, %v2343_v46 }
 0x60e   : > { %v2403_v12 = vpop.permute.xlu1 %2402  ;;  %v2401_v38 = vpop.permute.xlu0 %2400  ;;  %v2430_v0 = vadd.f32 %v2427_v48, %v2414_v36 }
 0x60f   : > { %v2409_v6 = vsel %vm321_vm5, %v2401_v38, %v2403_v12 }
 0x610   : > { %v2415_v14 = vadd.f32 %v2409_v6, %v2344_v50 }
 0x612   : > { %v2407_v15 = vpop.permute.xlu1 %2406  ;;  %v2405_v51 = vpop.permute.xlu0 %2404  ;;  %v2431_v54 = vadd.f32 %v2428_v40, %v2415_v14 }
 0x613   : > { %v2410_v24 = vsel %vm321_vm5, %v2405_v51, %v2407_v15 }
 0x614   : > { %v2416_v19 = vadd.f32 %v2410_v24, %v2345_v43 }
 0x616   : > { %v2455_v20 = vpop.permute.xlu1 %2454  ;;  %v2453_v63 = vpop.permute.xlu0 %2452  ;;  %v2432_v56 = vadd.f32 %v2429_v21, %v2416_v19 }
 0x617   : > { %v2464_v25 = vsel %vm239_vm3, %v2453_v63, %v2455_v20 }
 0x618   : > { %v2470_v29 = vadd.f32 %v2464_v25, %v2430_v0 }
 0x61a   : > { %v2459_v44 = vpop.permute.xlu1 %2458  ;;  %v2457_v23 = vpop.permute.xlu0 %2456 }
 0x61b   : > { %v2465_v32 = vsel %vm239_vm3, %v2457_v23, %v2459_v44 }
 0x61c   : > { %v2471_v59 = vadd.f32 %v2465_v32, %v2431_v54 }
 0x61e   : > { %v2463_v27 = vpop.permute.xlu1 %2462  ;;  %v2461_v16 = vpop.permute.xlu0 %2460 }
 0x61f   : > { %v2466_v3 = vsel %vm239_vm3, %v2461_v16, %v2463_v27 }
 0x620   : > { %v2472_v53 = vadd.f32 %v2466_v3, %v2432_v56 }
 0x622   : > { %v2495_v9 = vpop.permute.xlu1 %2494  ;;  %v2493_v49 = vpop.permute.xlu0 %2492 }
 0x623   : > { %v2504_v31 = vsel %vm280_vm4, %v2493_v49, %v2495_v9 }
 0x624   : > { %v2510_v11 = vadd.f32 %v2504_v31, %v2470_v29 }
 0x626   : > { %v2499_v58 = vpop.permute.xlu1 %2498  ;;  %v2497_v26 = vpop.permute.xlu0 %2496  ;;  %v2555_v35 = vadd.f32 %v5088_v7, %v2510_v11 }
 0x627   : > { %v2505_v22 = vsel %vm280_vm4, %v2497_v26, %v2499_v58 }
 0x628   : > { %v2511_v45 = vadd.f32 %v2505_v22, %v2471_v59 }
 0x62a   : > { %v2503_v62 = vpop.permute.xlu1 %2502  ;;  %v2501_v60 = vpop.permute.xlu0 %2500  ;;  %v2556_v18 = vadd.f32 %v5095_v10, %v2511_v45 }
 0x62b   : > { %v2506_v13 = vsel %vm280_vm4, %v2501_v60, %v2503_v62 }
 0x62c   : > { %v2512_v41 = vadd.f32 %v2506_v13, %v2472_v53 }
 0x62e   : > { %v2611_v2 = vpop.permute.xlu1 %2610  ;;  %v2609_v42 = vpop.permute.xlu0 %2608  ;;  %v2557_v8 = vadd.f32 %v5098_v47, %v2512_v41 }
 0x62f   : > { %v2620_v4 = vsel %vm239_vm3, %v2609_v42, %v2611_v2 }
 0x630   : > { %v2626_v30 = vadd.f32 %v2620_v4, %v2555_v35 }
 0x632   : > { %v2615_v17 = vpop.permute.xlu1 %2614  ;;  %v2613_v46 = vpop.permute.xlu0 %2612 }
 0x633   : > { %v2621_v34 = vsel %vm239_vm3, %v2613_v46, %v2615_v17 }
 0x634   : > { %v2627_v39 = vadd.f32 %v2621_v34, %v2556_v18 }
 0x636   : > { %v2619_v7 = vpop.permute.xlu1 %2618  ;;  %v2617_v37 = vpop.permute.xlu0 %2616 }
 0x637   : > { %v2622_v28 = vsel %vm239_vm3, %v2617_v37, %v2619_v7 }
 0x638   : > { %v2628_v36 = vadd.f32 %v2622_v28, %v2557_v8 }
 0x63a   : > { %v2682_v50 = vpop.permute.xlu1 %2681  ;;  %v2680_v1 = vpop.permute.xlu0 %2679 }
 0x63b   : > { %v2691_v10 = vsel %vm280_vm4, %v2680_v1, %v2682_v50 }
 0x63c   : > { %v2697_v52 = vadd.f32 %v2691_v10, %v2626_v30 }
 0x63e   : > { %v2686_v43 = vpop.permute.xlu1 %2685  ;;  %v2684_v61 = vpop.permute.xlu0 %2683  ;;  %v2742_v47 = vadd.f32 %v5172_v55, %v2697_v52 }
 0x63f   : > { %v2692_v48 = vsel %vm280_vm4, %v2684_v61, %v2686_v43 }
 0x640   : > { %v2698_v5 = vadd.f32 %v2692_v48, %v2627_v39 }
 0x642   : > { %v2690_v12 = vpop.permute.xlu1 %2689  ;;  %v2688_v38 = vpop.permute.xlu0 %2687  ;;  %v2743_v0 = vadd.f32 %v5175_v33, %v2698_v5 }
 0x643   : > { %v2693_v40 = vsel %vm280_vm4, %v2688_v38, %v2690_v12 }
 0x644   : > { %v2699_v6 = vadd.f32 %v2693_v40, %v2628_v36 }
 0x646   : > { %v2798_v14 = vpop.permute.xlu1 %2797  ;;  %v2796_v15 = vpop.permute.xlu0 %2795  ;;  %v2744_v51 = vadd.f32 %v5190_v57, %v2699_v6 }
 0x647   : > { %v2807_v19 = vsel %vm239_vm3, %v2796_v15, %v2798_v14 }
 0x648   : > { %v2813_v20 = vadd.f32 %v2807_v19, %v2742_v47 }
 0x64a   : > { %v2802_v54 = vpop.permute.xlu1 %2801  ;;  %v2800_v55 = vpop.permute.xlu0 %2799 }
 0x64b   : > { %v2808_v56 = vsel %vm239_vm3, %v2800_v55, %v2802_v54 }
 0x64c   : > { %v2814_v27 = vadd.f32 %v2808_v56, %v2743_v0 }
 0x64e   : > { %v2806_v21 = vpop.permute.xlu1 %2805  ;;  %v2804_v24 = vpop.permute.xlu0 %2803 }
 0x64f   : > { %v2809_v25 = vsel %vm239_vm3, %v2804_v24, %v2806_v21 }
 0x650   : > { %v2815_v49 = vadd.f32 %v2809_v25, %v2744_v51 }
 0x652   : > { %v2869_v63 = vpop.permute.xlu1 %2868  ;;  %v2867_v33 = vpop.permute.xlu0 %2866 }
 0x653   : > { %v2878_v44 = vsel %vm280_vm4, %v2867_v33, %v2869_v63 }
 0x654   : > { %v2884_v23 = vadd.f32 %v2878_v44, %v2813_v20 }
 0x656   : > { %2887 = vst [vmem:[%s178_s20] sm:$0xff] %v2884_v23  ;;  %v2873_v57 = vpop.permute.xlu1 %2872  ;;  %v2871_v16 = vpop.permute.xlu0 %2870 }
 0x657   : > { %v2879_v29 = vsel %vm280_vm4, %v2871_v16, %v2873_v57 }
 0x658   : > { %v2885_v9 = vadd.f32 %v2879_v29, %v2814_v27 }
 0x65a   : > { %2888 = vst [vmem:[%s178_s20 + $0x8] sm:$0xff] %v2885_v9  ;;  %v2877_v32 = vpop.permute.xlu1 %2876  ;;  %v2875_v31 = vpop.permute.xlu0 %2874 }
 0x65b   : > { %v2880_v11 = vsel %vm280_vm4, %v2875_v31, %v2877_v32 }
 0x65c   : > { %v2886_v59 = vadd.f32 %v2880_v11, %v2815_v49 }
 0x65e   : > { %2889 = vst [vmem:[%s178_s20 + $0x10] sm:$0xff] %v2886_v59 }
 0x65f   : > { %3320 = shalt.err (!%p3317_p5)
}
 0x660   : > { %s3321_s4 = scalar_lea.hbm %s5285_s27, 384  ;;  %s3325_s7 = scalar_lea.hbm %s5337_s2, 768 }
 0x661   : > { %p3322_p6 = scmp.ne.s32.totalorder %s5285_s27, %s3321_s4  ;;  %p3326_p10 = scmp.lt.u32.totalorder %s5285_s27, %s5337_s2 }
 0x662   : > { %p3327_p11 = scmp.lt.u32.totalorder %s3325_s7, %s3321_s4  ;;  %p3329_p13 = scmp.lt.u32.totalorder %s3321_s4, %s5285_s27 }
 0x663   : > { %p3323_p7 = pnand %p3322_p6, %p3451_p4 }
 0x664   : > { %p3328_p12 = por %p3327_p11, %p3326_p10 }
 0x665   : > { %p3324_p9 = pneg %p3323_p7 }
 0x666   : > { %p3330_p0 = por %p3329_p13, %p3328_p12 }
 0x668   : > { %p3331_p1 = pnand %p3330_p0, %p3324_p9 }
 0x66a   : > { %3334 = shalt.err (!%p3331_p1)
}
 0x66b   : > { %s3394_s16 = smov 128   ;;  %s3395_s18 = smov 8  }
 0x66c   : > { %3159 = dma.vmem_to_hbm [thread:$0]  (%p3451_p4), %s5279_s23, 384, %s5285_s27, %s5289_s12, %s3394_s16, %s3394_s16, %s3395_s18  }
 0x66d PF: > { %p3165_p2 = scmp.ge.s32.totalorder %s3385_s14, 2  ;;  %s2920_s20 = sand.u32 1, %s3365_s9  }
 0x66e   : > { %s2921_s24 = scalar_lea.sflag [#allocation3], %s2920_s20 }
 0x66f   : > { %p3162_p3 = pnand %p3165_p2, %p3458_p8 }
 0x671   : > { %3360 = dma.done.wait (!%p3162_p3), %s2921_s24, 384  }
 0x672   : > { %3362 = vsyncadd (!%p3162_p3), %s2921_s24, 4294966912  ;;  %s15_s14 = sadd.s32 1, %s3385_s14   ;;  %s5436_s9 = smov %s3369_s10 }
 0x673   : > { %p12_p5 = scmp.ge.s32.totalorder %s15_s14, 4   ;;  %s5437_s10 = smov %s3373_s11 }
 0x674   : > { %s5438_s11 = smov %s3464_s22  ;;  %s5439_s12 = smov %s3381_s13 }
 0x675   : > { %s5440_s13 = smov %s5442_s17  ;;  %14 = sbr.rel (!%p12_p5) target bundleno = 4 (0x4), region = 117 }
 0x67c   :  { %2926 = vsyncpa [#allocation3], 1 }
 0x67d   :  { %2928 = vsyncpa [#allocation3 + $0x1], 1 }

</bundles_post_ra>
